<compile_context>
chip_gen: v5e
topology: v5e:2x2
jax: 0.10.0
libtpu: 0.0.40
codegen_flags: <defaults>
</compile_context>

<pallas_src>
import functools
import math

import jax
import jax.numpy as jnp
import numpy as np
from jax.experimental import pallas as pl
from jax.experimental.pallas import tpu as pltpu

MODEL_DIM = 64
NUM_HEADS = 4
HEAD_DIM = MODEL_DIM // NUM_HEADS
NUM_LAYERS = 2
DIM_FF = 2048          # nn.TransformerEncoderLayer default
INPUT_SIZE = 1
OUTPUT_SIZE = 1
LN_EPS = 1e-5
MAX_LEN = 500
_ATTN_SCALE = 1.0 / math.sqrt(HEAD_DIM)

# Set True on v6e / v7x (bf16 VPU/EUP); keep False on v5e (no bf16 VPU/EUP).
USE_BF16_SOFTMAX_EXP = False


def _layernorm(x, g, b):
    mu = jnp.mean(x, axis=-1, keepdims=True)
    d = x - mu
    var = jnp.mean(d * d, axis=-1, keepdims=True)
    return d * jax.lax.rsqrt(var + LN_EPS) * g + b


# ---------------------------------------------------------------------------
# Single fused kernel: one grid step == NB batch elements.
# ---------------------------------------------------------------------------
def fused_forward_kernel(
        x_ref, pe_ref, win_ref, bin_ref,
        wqkv_ref, bqkv_ref, wo_ref, bo_ref, ln1g_ref, ln1b_ref,
        w1_ref, b1_ref, w2_ref, b2_ref, ln2g_ref, ln2b_ref,
        wfc_ref, bfc_ref, o_ref):
    NB, S, _ = x_ref.shape
    D, H, hd = MODEL_DIM, NUM_HEADS, HEAD_DIM
    bf16 = jnp.bfloat16
    f32 = jnp.float32

    # ---- input projection + positional encoding ------------------------------
    # INPUT_SIZE == 1 -> plain VPU broadcast-multiply, no K=1 MXU matmul.
    rows = []
    for b in range(NB):
        xb = x_ref[b]                                              # (S, 1) f32
        rows.append(xb * win_ref[...] + bin_ref[...] + pe_ref[...])
    h = rows[0] if NB == 1 else jnp.concatenate(rows, axis=0)      # (NB*S, D) f32

    # ---- NUM_LAYERS post-norm TransformerEncoderLayers ------------------------
    for l in range(NUM_LAYERS):
        # --- fused QKV projection: one lane-dense (M,64)@(64,192) matmul ------
        hb = h.astype(bf16)
        qkv = jnp.dot(hb, wqkv_ref[l],
                      preferred_element_type=f32) + bqkv_ref[l]    # (M, 192)

        # --- self-attention (per batch element; heads are lane slices) --------
        ctx_rows = []
        for b in range(NB):
            r0, r1 = b * S, (b + 1) * S
            q_b = qkv[r0:r1, 0:D].astype(bf16)          # scale folded into wqkv
            kt_b = qkv[r0:r1, D:2 * D].T.astype(bf16)   # (D, S): K pre-transposed once
            v_b = qkv[r0:r1, 2 * D:3 * D].astype(bf16)
            ctx_heads = []
            for hh in range(H):
                c0, c1 = hh * hd, (hh + 1) * hd
                s = jnp.dot(q_b[:, c0:c1], kt_b[c0:c1, :],
                            preferred_element_type=f32)            # (S, S)
                s = s - jnp.max(s, axis=-1, keepdims=True)
                if USE_BF16_SOFTMAX_EXP:
                    e = jnp.exp(s.astype(bf16))                    # v6e/v7x only
                    denom = jnp.sum(e, axis=-1, keepdims=True, dtype=f32)
                    p = e
                else:
                    e = jnp.exp(s)                                 # f32 (v5e-safe)
                    denom = jnp.sum(e, axis=-1, keepdims=True)
                    p = e.astype(bf16)
                ctx_h = jnp.dot(p, v_b[:, c0:c1],
                                preferred_element_type=f32)        # (S, hd)
                # deferred softmax normalization: S*hd multiplies instead of S*S
                ctx_heads.append(ctx_h * pl.reciprocal(denom, approx=True))
            ctx_rows.append(jnp.concatenate(ctx_heads, axis=-1))   # (S, D)
        ctx = ctx_rows[0] if NB == 1 else jnp.concatenate(ctx_rows, axis=0)

        # --- output projection: single (M,64)@(64,64), contraction depth 64 ---
        attn = jnp.dot(ctx.astype(bf16), wo_ref[l],
                       preferred_element_type=f32) + bo_ref[l]
        y = _layernorm(h + attn, ln1g_ref[l], ln1b_ref[l])         # dropout1 = id

        # --- feed-forward 64 -> 2048 -> 64, weights pre-transposed (K,N) RHS ---
        h1 = jnp.dot(y.astype(bf16), w1_ref[l],
                     preferred_element_type=f32) + b1_ref[l]       # (M, 2048)
        h1 = jnp.maximum(h1, 0.0)                                  # ReLU
        ff = jnp.dot(h1.astype(bf16), w2_ref[l],
                     preferred_element_type=f32) + b2_ref[l]       # (M, 64)
        h = _layernorm(y + ff, ln2g_ref[l], ln2b_ref[l])           # dropout2 = id

    # ---- final Linear on the last timestep (OUTPUT_SIZE == 1) ----------------
    for b in range(NB):
        y_last = h[(b + 1) * S - 1:(b + 1) * S, :]                 # (1, D)
        o_ref[b] = (jnp.sum(y_last * wfc_ref[...], axis=-1, keepdims=True)
                    + bfc_ref[...])                                # (1, 1)


def _resident_spec(arr):
    """Full-array block with a constant index_map -> DMA'd once, stays in VMEM."""
    n = arr.ndim
    return pl.BlockSpec(arr.shape, lambda b, _n=n: (0,) * _n)


def transformer_forward(packed, x, block_batch=1):
    B, S, _ = x.shape
    assert B % block_batch == 0, "block_batch must divide batch size"
    pe = packed['pe'][:S]                                          # (S, D)

    weight_args = (
        packed['win'], packed['bin'],
        packed['wqkv'], packed['bqkv'],
        packed['wo'], packed['bo'], packed['ln1g'], packed['ln1b'],
        packed['w1'], packed['b1'], packed['w2'], packed['b2'],
        packed['ln2g'], packed['ln2b'], packed['wfc'], packed['bfc'],
    )

    # Advisory cost estimate (FLOPs dominated by the 64->2048->64 FFN).
    per_layer = (2 * S * MODEL_DIM * 3 * MODEL_DIM      # fused QKV projection
                 + 4 * S * S * MODEL_DIM                # scores + p @ v
                 + 2 * S * MODEL_DIM * MODEL_DIM        # output projection
                 + 4 * S * MODEL_DIM * DIM_FF)          # feed-forward
    flops = B * (NUM_LAYERS * per_layer + 2 * S * MODEL_DIM + 2 * MODEL_DIM)
    transcendentals = B * NUM_LAYERS * NUM_HEADS * S * (S + 1)
    bytes_accessed = (x.size * x.dtype.itemsize
                      + pe.size * pe.dtype.itemsize
                      + sum(a.size * a.dtype.itemsize for a in weight_args)
                      + B * OUTPUT_SIZE * 4)

    in_specs = ([pl.BlockSpec((block_batch, S, INPUT_SIZE), lambda b: (b, 0, 0)),
                 _resident_spec(pe)]
                + [_resident_spec(a) for a in weight_args])

    out3 = pl.pallas_call(
        fused_forward_kernel,
        out_shape=jax.ShapeDtypeStruct((B, 1, OUTPUT_SIZE), jnp.float32),
        grid=(B // block_batch,),
        in_specs=in_specs,
        out_specs=pl.BlockSpec((block_batch, 1, OUTPUT_SIZE), lambda b: (b, 0, 0)),
        compiler_params=pltpu.CompilerParams(
            dimension_semantics=("parallel",),
            vmem_limit_bytes=48 * 1024 * 1024),
        cost_estimate=pl.CostEstimate(
            flops=flops, transcendentals=transcendentals,
            bytes_accessed=bytes_accessed),
    )(x, pe, *weight_args)
    return out3.reshape(B, OUTPUT_SIZE)


# ---------------------------------------------------------------------------
# Parameters: stored in native PyTorch layouts, packed into kernel layouts once.
# ---------------------------------------------------------------------------
def make_positional_encoding(max_len, d):
    pos = jnp.arange(max_len, dtype=jnp.float32)[:, None]
    div = jnp.exp(jnp.arange(0, d, 2, dtype=jnp.float32) *
                  (-jnp.log(jnp.float32(1000.0)) / d))             # base 1000, per module
    pe = jnp.zeros((max_len, d), jnp.float32)
    pe = pe.at[:, 0::2].set(jnp.sin(pos * div))
    pe = pe.at[:, 1::2].set(jnp.cos(pos * div))
    return pe


def init_params(key):
    """Synthetic parameters in native PyTorch layouts (weight = (out_features, in_features))."""
    def w(k, shape, scale=0.02):
        return (scale * jax.random.normal(k, shape)).astype(jnp.float32)

    keys = jax.random.split(key, 4 + NUM_LAYERS)
    params = {
        'input_proj.weight': w(keys[0], (MODEL_DIM, INPUT_SIZE)),
        'input_proj.bias':   w(keys[1], (MODEL_DIM,)),
        'fc.weight':         w(keys[2], (OUTPUT_SIZE, MODEL_DIM)),
        'fc.bias':           w(keys[3], (OUTPUT_SIZE,)),
        'layers': [],
    }
    for l in range(NUM_LAYERS):
        lk = jax.random.split(keys[4 + l], 8)
        params['layers'].append({
            'self_attn.in_proj_weight':  w(lk[0], (3 * MODEL_DIM, MODEL_DIM)),
            'self_attn.in_proj_bias':    w(lk[1], (3 * MODEL_DIM,)),
            'self_attn.out_proj.weight': w(lk[2], (MODEL_DIM, MODEL_DIM)),
            'self_attn.out_proj.bias':   w(lk[3], (MODEL_DIM,)),
            'norm1.weight': jnp.ones((MODEL_DIM,), jnp.float32),
            'norm1.bias':   jnp.zeros((MODEL_DIM,), jnp.float32),
            'linear1.weight': w(lk[4], (DIM_FF, MODEL_DIM)),
            'linear1.bias':   w(lk[5], (DIM_FF,)),
            'linear2.weight': w(lk[6], (MODEL_DIM, DIM_FF)),
            'linear2.bias':   w(lk[7], (MODEL_DIM,)),
            'norm2.weight': jnp.ones((MODEL_DIM,), jnp.float32),
            'norm2.bias':   jnp.zeros((MODEL_DIM,), jnp.float32),
        })
    return params


def pack_params(params):
    """PyTorch-layout params -> fused-kernel layout:
       QKV fused as x @ [Wq|Wk|Wv]^T (L, D, 3D) bf16 with attn scale folded into Q,
       Wo^T (L, D, D), W1^T (L, D, FF), W2^T (L, FF, D) bf16 (native (K,N) RHS),
       biases / LN params f32."""
    L, D, FF = NUM_LAYERS, MODEL_DIM, DIM_FF
    bf16 = jnp.bfloat16

    def stack(name):
        return jnp.stack([lp[name] for lp in params['layers']])

    in_w = stack('self_attn.in_proj_weight')                   # (L, 3D, D)
    in_b = stack('self_attn.in_proj_bias')                     # (L, 3D)
    # fold 1/sqrt(head_dim) into the Q rows of in_proj (exact power of two)
    row_scale = jnp.concatenate([jnp.full((D,), _ATTN_SCALE, jnp.float32),
                                 jnp.ones((2 * D,), jnp.float32)])
    in_w = in_w * row_scale[None, :, None]
    in_b = in_b * row_scale[None, :]

    return {
        'pe':  make_positional_encoding(MAX_LEN, MODEL_DIM),
        'win': params['input_proj.weight'].reshape(1, D),      # (1, D)  (INPUT_SIZE == 1)
        'bin': params['input_proj.bias'].reshape(1, D),
        'wfc': params['fc.weight'].reshape(1, D),              # (1, D)  (OUTPUT_SIZE == 1)
        'bfc': params['fc.bias'].reshape(1, OUTPUT_SIZE),
        'wqkv': jnp.swapaxes(in_w, 1, 2).astype(bf16),         # (L, D, 3D): x @ Wqkv
        'bqkv': in_b.reshape(L, 1, 3 * D),
        'wo': jnp.swapaxes(stack('self_attn.out_proj.weight'), 1, 2).astype(bf16),  # (L, D, D)
        'bo': stack('self_attn.out_proj.bias').reshape(L, 1, D),
        'ln1g': stack('norm1.weight').reshape(L, 1, D),
        'ln1b': stack('norm1.bias').reshape(L, 1, D),
        'w1': jnp.swapaxes(stack('linear1.weight'), 1, 2).astype(bf16),  # (L, D, FF)
        'b1': stack('linear1.bias').reshape(L, 1, FF),
        'w2': jnp.swapaxes(stack('linear2.weight'), 1, 2).astype(bf16),  # (L, FF, D)
        'b2': stack('linear2.bias').reshape(L, 1, D),
        'ln2g': stack('norm2.weight').reshape(L, 1, D),
        'ln2b': stack('norm2.bias').reshape(L, 1, D),
    }


# ---------------------------------------------------------------------------
# Pure-JAX f32 reference (PyTorch layouts) for a tolerance check.
# ---------------------------------------------------------------------------
def reference_forward(params, x):
    B, S, _ = x.shape
    pe = make_positional_encoding(MAX_LEN, MODEL_DIM)[:S]
    h = x @ params['input_proj.weight'].T + params['input_proj.bias']
    h = h + pe[None]
    for lp in params['layers']:
        wi, bi = lp['self_attn.in_proj_weight'], lp['self_attn.in_proj_bias']
        D = MODEL_DIM
        q = h @ wi[0:D].T + bi[0:D]
        k = h @ wi[D:2 * D].T + bi[D:2 * D]
        v = h @ wi[2 * D:3 * D].T + bi[2 * D:3 * D]

        def split(t):
            return t.reshape(B, S, NUM_HEADS, HEAD_DIM).transpose(0, 2, 1, 3)
        qh, kh, vh = split(q), split(k), split(v)
        s = jnp.einsum('bhqc,bhkc->bhqk', qh, kh) * _ATTN_SCALE
        p = jax.nn.softmax(s, axis=-1)
        ctx = jnp.einsum('bhqk,bhkc->bhqc', p, vh)
        ctx = ctx.transpose(0, 2, 1, 3).reshape(B, S, MODEL_DIM)
        attn = ctx @ lp['self_attn.out_proj.weight'].T + lp['self_attn.out_proj.bias']
        y = _layernorm(h + attn, lp['norm1.weight'], lp['norm1.bias'])
        h1 = jnp.maximum(y @ lp['linear1.weight'].T + lp['linear1.bias'], 0.0)
        ff = h1 @ lp['linear2.weight'].T + lp['linear2.bias']
        h = _layernorm(y + ff, lp['norm2.weight'], lp['norm2.bias'])
    return h[:, -1, :] @ params['fc.weight'].T + params['fc.bias']

# TODO(synk): training utilities (Adam loop, TensorBoard logging, sklearn metrics) and the
# classification head have no Pallas equivalent and are not ported; dropout is identity (eval).


if __name__ == "__main__":
    key = jax.random.PRNGKey(0)
    pkey, xkey = jax.random.split(key)
    params = init_params(pkey)
    packed = pack_params(params)

    B, S, NB = 4, 8, 2          # small demo shapes; NB = batch elements per grid step
    x = jax.random.normal(xkey, (B, S, INPUT_SIZE), dtype=jnp.float32)

    fwd = jax.jit(functools.partial(transformer_forward, block_batch=NB))
    out = jax.block_until_ready(fwd(packed, x))

    assert out.shape == (B, OUTPUT_SIZE), out.shape
    assert bool(jnp.all(jnp.isfinite(out)))

    ref = reference_forward(params, x)
    np.testing.assert_allclose(np.asarray(out), np.asarray(ref), rtol=5e-2, atol=2e-2)

    print("KERNEL_OK")
</pallas_src>

<mosaic_0001>
module attributes {stable_mosaic.version = 11 : i64} {
  func.func @fused_forward_kernel(%arg0: i32, %arg1: memref<2x8x1xf32, #tpu.memory_space<vmem>>, %arg2: memref<8x64xf32, #tpu.memory_space<vmem>>, %arg3: memref<1x64xf32, #tpu.memory_space<vmem>>, %arg4: memref<1x64xf32, #tpu.memory_space<vmem>>, %arg5: memref<2x64x192xbf16, #tpu.memory_space<vmem>>, %arg6: memref<2x1x192xf32, #tpu.memory_space<vmem>>, %arg7: memref<2x64x64xbf16, #tpu.memory_space<vmem>>, %arg8: memref<2x1x64xf32, #tpu.memory_space<vmem>>, %arg9: memref<2x1x64xf32, #tpu.memory_space<vmem>>, %arg10: memref<2x1x64xf32, #tpu.memory_space<vmem>>, %arg11: memref<2x64x2048xbf16, #tpu.memory_space<vmem>>, %arg12: memref<2x1x2048xf32, #tpu.memory_space<vmem>>, %arg13: memref<2x2048x64xbf16, #tpu.memory_space<vmem>>, %arg14: memref<2x1x64xf32, #tpu.memory_space<vmem>>, %arg15: memref<2x1x64xf32, #tpu.memory_space<vmem>>, %arg16: memref<2x1x64xf32, #tpu.memory_space<vmem>>, %arg17: memref<1x64xf32, #tpu.memory_space<vmem>>, %arg18: memref<1x1xf32, #tpu.memory_space<vmem>>, %arg19: memref<2x1x1xf32, #tpu.memory_space<vmem>>) attributes {dimension_semantics = [#tpu.dimension_semantics<parallel>], iteration_bounds = array<i64: 2>, scalar_prefetch = 0 : i64, scratch_operands = 0 : i64, tpu.core_type = #tpu.core_type<tc>, window_params = [{transform_indices = @transform_0, window_bounds = array<i64: 2, 8, 1>}, {pipeline_mode = #tpu.pipeline_mode<synchronous>, transform_indices = @transform_1, window_bounds = array<i64: 8, 64>}, {pipeline_mode = #tpu.pipeline_mode<synchronous>, transform_indices = @transform_2, window_bounds = array<i64: 1, 64>}, {pipeline_mode = #tpu.pipeline_mode<synchronous>, transform_indices = @transform_3, window_bounds = array<i64: 1, 64>}, {pipeline_mode = #tpu.pipeline_mode<synchronous>, transform_indices = @transform_4, window_bounds = array<i64: 2, 64, 192>}, {pipeline_mode = #tpu.pipeline_mode<synchronous>, transform_indices = @transform_5, window_bounds = array<i64: 2, 1, 192>}, {pipeline_mode = #tpu.pipeline_mode<synchronous>, transform_indices = @transform_6, window_bounds = array<i64: 2, 64, 64>}, {pipeline_mode = #tpu.pipeline_mode<synchronous>, transform_indices = @transform_7, window_bounds = array<i64: 2, 1, 64>}, {pipeline_mode = #tpu.pipeline_mode<synchronous>, transform_indices = @transform_8, window_bounds = array<i64: 2, 1, 64>}, {pipeline_mode = #tpu.pipeline_mode<synchronous>, transform_indices = @transform_9, window_bounds = array<i64: 2, 1, 64>}, {pipeline_mode = #tpu.pipeline_mode<synchronous>, transform_indices = @transform_10, window_bounds = array<i64: 2, 64, 2048>}, {pipeline_mode = #tpu.pipeline_mode<synchronous>, transform_indices = @transform_11, window_bounds = array<i64: 2, 1, 2048>}, {pipeline_mode = #tpu.pipeline_mode<synchronous>, transform_indices = @transform_12, window_bounds = array<i64: 2, 2048, 64>}, {pipeline_mode = #tpu.pipeline_mode<synchronous>, transform_indices = @transform_13, window_bounds = array<i64: 2, 1, 64>}, {pipeline_mode = #tpu.pipeline_mode<synchronous>, transform_indices = @transform_14, window_bounds = array<i64: 2, 1, 64>}, {pipeline_mode = #tpu.pipeline_mode<synchronous>, transform_indices = @transform_15, window_bounds = array<i64: 2, 1, 64>}, {pipeline_mode = #tpu.pipeline_mode<synchronous>, transform_indices = @transform_16, window_bounds = array<i64: 1, 64>}, {pipeline_mode = #tpu.pipeline_mode<synchronous>, transform_indices = @transform_17, window_bounds = array<i64: 1, 1>}, {transform_indices = @transform_18, window_bounds = array<i64: 2, 1, 1>}]} {
    %c0 = arith.constant 0 : index
    %c0_0 = arith.constant 0 : index
    %c0_1 = arith.constant 0 : index
    %0 = vector.load %arg1[%c0, %c0_0, %c0_1] : memref<2x8x1xf32, #tpu.memory_space<vmem>>, vector<1x8x1xf32>
    %1 = vector.shape_cast %0 : vector<1x8x1xf32> to vector<8x1xf32>
    %c0_2 = arith.constant 0 : index
    %c0_3 = arith.constant 0 : index
    %2 = vector.load %arg3[%c0_2, %c0_3] : memref<1x64xf32, #tpu.memory_space<vmem>>, vector<1x64xf32>
    %3 = vector.broadcast %1 : vector<8x1xf32> to vector<8x64xf32>
    %4 = vector.broadcast %2 : vector<1x64xf32> to vector<8x64xf32>
    %5 = arith.mulf %3, %4 : vector<8x64xf32>
    %c0_4 = arith.constant 0 : index
    %c0_5 = arith.constant 0 : index
    %6 = vector.load %arg4[%c0_4, %c0_5] : memref<1x64xf32, #tpu.memory_space<vmem>>, vector<1x64xf32>
    %7 = vector.broadcast %6 : vector<1x64xf32> to vector<8x64xf32>
    %8 = arith.addf %5, %7 : vector<8x64xf32>
    %c0_6 = arith.constant 0 : index
    %c0_7 = arith.constant 0 : index
    %9 = vector.load %arg2[%c0_6, %c0_7] : memref<8x64xf32, #tpu.memory_space<vmem>>, vector<8x64xf32>
    %10 = arith.addf %8, %9 : vector<8x64xf32>
    %c1 = arith.constant 1 : index
    %c0_8 = arith.constant 0 : index
    %c0_9 = arith.constant 0 : index
    %11 = vector.load %arg1[%c1, %c0_8, %c0_9] : memref<2x8x1xf32, #tpu.memory_space<vmem>>, vector<1x8x1xf32>
    %12 = vector.shape_cast %11 : vector<1x8x1xf32> to vector<8x1xf32>
    %c0_10 = arith.constant 0 : index
    %c0_11 = arith.constant 0 : index
    %13 = vector.load %arg3[%c0_10, %c0_11] : memref<1x64xf32, #tpu.memory_space<vmem>>, vector<1x64xf32>
    %14 = vector.broadcast %12 : vector<8x1xf32> to vector<8x64xf32>
    %15 = vector.broadcast %13 : vector<1x64xf32> to vector<8x64xf32>
    %16 = arith.mulf %14, %15 : vector<8x64xf32>
    %c0_12 = arith.constant 0 : index
    %c0_13 = arith.constant 0 : index
    %17 = vector.load %arg4[%c0_12, %c0_13] : memref<1x64xf32, #tpu.memory_space<vmem>>, vector<1x64xf32>
    %18 = vector.broadcast %17 : vector<1x64xf32> to vector<8x64xf32>
    %19 = arith.addf %16, %18 : vector<8x64xf32>
    %c0_14 = arith.constant 0 : index
    %c0_15 = arith.constant 0 : index
    %20 = vector.load %arg2[%c0_14, %c0_15] : memref<8x64xf32, #tpu.memory_space<vmem>>, vector<8x64xf32>
    %21 = arith.addf %19, %20 : vector<8x64xf32>
    %22 = tpu.concatenate %10, %21 in 0 : vector<8x64xf32>, vector<8x64xf32> -> vector<16x64xf32>
    %23 = arith.truncf %22 : vector<16x64xf32> to vector<16x64xbf16>
    %c0_16 = arith.constant 0 : index
    %c0_17 = arith.constant 0 : index
    %c0_18 = arith.constant 0 : index
    %24 = vector.load %arg5[%c0_16, %c0_17, %c0_18] : memref<2x64x192xbf16, #tpu.memory_space<vmem>>, vector<1x64x192xbf16>
    %25 = vector.shape_cast %24 : vector<1x64x192xbf16> to vector<64x192xbf16>
    %cst = arith.constant dense<0.000000e+00> : vector<16x192xf32>
    %26 = tpu.matmul %23, %25, %cst {dimension_numbers = #tpu.dot_dimension_numbers<[1], [0], [0], [1], [0, 0, 1, 1], [], []>} : vector<16x64xbf16>, vector<64x192xbf16>, vector<16x192xf32> -> vector<16x192xf32>
    %c0_19 = arith.constant 0 : index
    %c0_20 = arith.constant 0 : index
    %c0_21 = arith.constant 0 : index
    %27 = vector.load %arg6[%c0_19, %c0_20, %c0_21] : memref<2x1x192xf32, #tpu.memory_space<vmem>>, vector<1x1x192xf32>
    %28 = vector.shape_cast %27 : vector<1x1x192xf32> to vector<1x192xf32>
    %29 = vector.broadcast %28 : vector<1x192xf32> to vector<16x192xf32>
    %30 = arith.addf %26, %29 : vector<16x192xf32>
    %31 = vector.extract_strided_slice %30 {offsets = [0, 0], sizes = [8, 64], strides = [1, 1]} : vector<16x192xf32> to vector<8x64xf32>
    %32 = arith.truncf %31 : vector<8x64xf32> to vector<8x64xbf16>
    %33 = vector.extract_strided_slice %30 {offsets = [0, 64], sizes = [8, 64], strides = [1, 1]} : vector<16x192xf32> to vector<8x64xf32>
    %34 = tpu.transpose %33, [1, 0] : vector<8x64xf32> -> vector<64x8xf32>
    %35 = arith.truncf %34 : vector<64x8xf32> to vector<64x8xbf16>
    %36 = vector.extract_strided_slice %30 {offsets = [0, 128], sizes = [8, 64], strides = [1, 1]} : vector<16x192xf32> to vector<8x64xf32>
    %37 = arith.truncf %36 : vector<8x64xf32> to vector<8x64xbf16>
    %38 = vector.extract_strided_slice %32 {offsets = [0, 0], sizes = [8, 16], strides = [1, 1]} : vector<8x64xbf16> to vector<8x16xbf16>
    %39 = vector.extract_strided_slice %35 {offsets = [0, 0], sizes = [16, 8], strides = [1, 1]} : vector<64x8xbf16> to vector<16x8xbf16>
    %cst_22 = arith.constant dense<0.000000e+00> : vector<8x8xf32>
    %40 = tpu.matmul %38, %39, %cst_22 {dimension_numbers = #tpu.dot_dimension_numbers<[1], [0], [0], [1], [0, 0, 1, 1], [], []>} : vector<8x16xbf16>, vector<16x8xbf16>, vector<8x8xf32> -> vector<8x8xf32>
    %cst_23 = arith.constant dense<0xFF800000> : vector<8xf32>
    %41 = vector.multi_reduction <maximumf>, %40, %cst_23 [1] : vector<8x8xf32> to vector<8xf32>
    %42 = vector.shape_cast %41 : vector<8xf32> to vector<8x1xf32>
    %43 = vector.broadcast %42 : vector<8x1xf32> to vector<8x8xf32>
    %44 = arith.subf %40, %43 : vector<8x8xf32>
    %45 = math.exp %44 : vector<8x8xf32>
    %cst_24 = arith.constant dense<0.000000e+00> : vector<8xf32>
    %46 = vector.multi_reduction <add>, %45, %cst_24 [1] : vector<8x8xf32> to vector<8xf32>
    %47 = vector.shape_cast %46 : vector<8xf32> to vector<8x1xf32>
    %48 = arith.truncf %45 : vector<8x8xf32> to vector<8x8xbf16>
    %49 = vector.extract_strided_slice %37 {offsets = [0, 0], sizes = [8, 16], strides = [1, 1]} : vector<8x64xbf16> to vector<8x16xbf16>
    %cst_25 = arith.constant dense<0.000000e+00> : vector<8x16xf32>
    %50 = tpu.matmul %48, %49, %cst_25 {dimension_numbers = #tpu.dot_dimension_numbers<[1], [0], [0], [1], [0, 0, 1, 1], [], []>} : vector<8x8xbf16>, vector<8x16xbf16>, vector<8x16xf32> -> vector<8x16xf32>
    %51 = tpu.reciprocal %47 {approx = true} : vector<8x1xf32> -> vector<8x1xf32>
    %52 = vector.broadcast %51 : vector<8x1xf32> to vector<8x16xf32>
    %53 = arith.mulf %50, %52 : vector<8x16xf32>
    %54 = vector.extract_strided_slice %32 {offsets = [0, 16], sizes = [8, 16], strides = [1, 1]} : vector<8x64xbf16> to vector<8x16xbf16>
    %55 = vector.extract_strided_slice %35 {offsets = [16, 0], sizes = [16, 8], strides = [1, 1]} : vector<64x8xbf16> to vector<16x8xbf16>
    %cst_26 = arith.constant dense<0.000000e+00> : vector<8x8xf32>
    %56 = tpu.matmul %54, %55, %cst_26 {dimension_numbers = #tpu.dot_dimension_numbers<[1], [0], [0], [1], [0, 0, 1, 1], [], []>} : vector<8x16xbf16>, vector<16x8xbf16>, vector<8x8xf32> -> vector<8x8xf32>
    %cst_27 = arith.constant dense<0xFF800000> : vector<8xf32>
    %57 = vector.multi_reduction <maximumf>, %56, %cst_27 [1] : vector<8x8xf32> to vector<8xf32>
    %58 = vector.shape_cast %57 : vector<8xf32> to vector<8x1xf32>
    %59 = vector.broadcast %58 : vector<8x1xf32> to vector<8x8xf32>
    %60 = arith.subf %56, %59 : vector<8x8xf32>
    %61 = math.exp %60 : vector<8x8xf32>
    %cst_28 = arith.constant dense<0.000000e+00> : vector<8xf32>
    %62 = vector.multi_reduction <add>, %61, %cst_28 [1] : vector<8x8xf32> to vector<8xf32>
    %63 = vector.shape_cast %62 : vector<8xf32> to vector<8x1xf32>
    %64 = arith.truncf %61 : vector<8x8xf32> to vector<8x8xbf16>
    %65 = vector.extract_strided_slice %37 {offsets = [0, 16], sizes = [8, 16], strides = [1, 1]} : vector<8x64xbf16> to vector<8x16xbf16>
    %cst_29 = arith.constant dense<0.000000e+00> : vector<8x16xf32>
    %66 = tpu.matmul %64, %65, %cst_29 {dimension_numbers = #tpu.dot_dimension_numbers<[1], [0], [0], [1], [0, 0, 1, 1], [], []>} : vector<8x8xbf16>, vector<8x16xbf16>, vector<8x16xf32> -> vector<8x16xf32>
    %67 = tpu.reciprocal %63 {approx = true} : vector<8x1xf32> -> vector<8x1xf32>
    %68 = vector.broadcast %67 : vector<8x1xf32> to vector<8x16xf32>
    %69 = arith.mulf %66, %68 : vector<8x16xf32>
    %70 = vector.extract_strided_slice %32 {offsets = [0, 32], sizes = [8, 16], strides = [1, 1]} : vector<8x64xbf16> to vector<8x16xbf16>
    %71 = vector.extract_strided_slice %35 {offsets = [32, 0], sizes = [16, 8], strides = [1, 1]} : vector<64x8xbf16> to vector<16x8xbf16>
    %cst_30 = arith.constant dense<0.000000e+00> : vector<8x8xf32>
    %72 = tpu.matmul %70, %71, %cst_30 {dimension_numbers = #tpu.dot_dimension_numbers<[1], [0], [0], [1], [0, 0, 1, 1], [], []>} : vector<8x16xbf16>, vector<16x8xbf16>, vector<8x8xf32> -> vector<8x8xf32>
    %cst_31 = arith.constant dense<0xFF800000> : vector<8xf32>
    %73 = vector.multi_reduction <maximumf>, %72, %cst_31 [1] : vector<8x8xf32> to vector<8xf32>
    %74 = vector.shape_cast %73 : vector<8xf32> to vector<8x1xf32>
    %75 = vector.broadcast %74 : vector<8x1xf32> to vector<8x8xf32>
    %76 = arith.subf %72, %75 : vector<8x8xf32>
    %77 = math.exp %76 : vector<8x8xf32>
    %cst_32 = arith.constant dense<0.000000e+00> : vector<8xf32>
    %78 = vector.multi_reduction <add>, %77, %cst_32 [1] : vector<8x8xf32> to vector<8xf32>
    %79 = vector.shape_cast %78 : vector<8xf32> to vector<8x1xf32>
    %80 = arith.truncf %77 : vector<8x8xf32> to vector<8x8xbf16>
    %81 = vector.extract_strided_slice %37 {offsets = [0, 32], sizes = [8, 16], strides = [1, 1]} : vector<8x64xbf16> to vector<8x16xbf16>
    %cst_33 = arith.constant dense<0.000000e+00> : vector<8x16xf32>
    %82 = tpu.matmul %80, %81, %cst_33 {dimension_numbers = #tpu.dot_dimension_numbers<[1], [0], [0], [1], [0, 0, 1, 1], [], []>} : vector<8x8xbf16>, vector<8x16xbf16>, vector<8x16xf32> -> vector<8x16xf32>
    %83 = tpu.reciprocal %79 {approx = true} : vector<8x1xf32> -> vector<8x1xf32>
    %84 = vector.broadcast %83 : vector<8x1xf32> to vector<8x16xf32>
    %85 = arith.mulf %82, %84 : vector<8x16xf32>
    %86 = vector.extract_strided_slice %32 {offsets = [0, 48], sizes = [8, 16], strides = [1, 1]} : vector<8x64xbf16> to vector<8x16xbf16>
    %87 = vector.extract_strided_slice %35 {offsets = [48, 0], sizes = [16, 8], strides = [1, 1]} : vector<64x8xbf16> to vector<16x8xbf16>
    %cst_34 = arith.constant dense<0.000000e+00> : vector<8x8xf32>
    %88 = tpu.matmul %86, %87, %cst_34 {dimension_numbers = #tpu.dot_dimension_numbers<[1], [0], [0], [1], [0, 0, 1, 1], [], []>} : vector<8x16xbf16>, vector<16x8xbf16>, vector<8x8xf32> -> vector<8x8xf32>
    %cst_35 = arith.constant dense<0xFF800000> : vector<8xf32>
    %89 = vector.multi_reduction <maximumf>, %88, %cst_35 [1] : vector<8x8xf32> to vector<8xf32>
    %90 = vector.shape_cast %89 : vector<8xf32> to vector<8x1xf32>
    %91 = vector.broadcast %90 : vector<8x1xf32> to vector<8x8xf32>
    %92 = arith.subf %88, %91 : vector<8x8xf32>
    %93 = math.exp %92 : vector<8x8xf32>
    %cst_36 = arith.constant dense<0.000000e+00> : vector<8xf32>
    %94 = vector.multi_reduction <add>, %93, %cst_36 [1] : vector<8x8xf32> to vector<8xf32>
    %95 = vector.shape_cast %94 : vector<8xf32> to vector<8x1xf32>
    %96 = arith.truncf %93 : vector<8x8xf32> to vector<8x8xbf16>
    %97 = vector.extract_strided_slice %37 {offsets = [0, 48], sizes = [8, 16], strides = [1, 1]} : vector<8x64xbf16> to vector<8x16xbf16>
    %cst_37 = arith.constant dense<0.000000e+00> : vector<8x16xf32>
    %98 = tpu.matmul %96, %97, %cst_37 {dimension_numbers = #tpu.dot_dimension_numbers<[1], [0], [0], [1], [0, 0, 1, 1], [], []>} : vector<8x8xbf16>, vector<8x16xbf16>, vector<8x16xf32> -> vector<8x16xf32>
    %99 = tpu.reciprocal %95 {approx = true} : vector<8x1xf32> -> vector<8x1xf32>
    %100 = vector.broadcast %99 : vector<8x1xf32> to vector<8x16xf32>
    %101 = arith.mulf %98, %100 : vector<8x16xf32>
    %102 = tpu.concatenate %53, %69, %85, %101 in 1 : vector<8x16xf32>, vector<8x16xf32>, vector<8x16xf32>, vector<8x16xf32> -> vector<8x64xf32>
    %103 = vector.extract_strided_slice %30 {offsets = [8, 0], sizes = [8, 64], strides = [1, 1]} : vector<16x192xf32> to vector<8x64xf32>
    %104 = arith.truncf %103 : vector<8x64xf32> to vector<8x64xbf16>
    %105 = vector.extract_strided_slice %30 {offsets = [8, 64], sizes = [8, 64], strides = [1, 1]} : vector<16x192xf32> to vector<8x64xf32>
    %106 = tpu.transpose %105, [1, 0] : vector<8x64xf32> -> vector<64x8xf32>
    %107 = arith.truncf %106 : vector<64x8xf32> to vector<64x8xbf16>
    %108 = vector.extract_strided_slice %30 {offsets = [8, 128], sizes = [8, 64], strides = [1, 1]} : vector<16x192xf32> to vector<8x64xf32>
    %109 = arith.truncf %108 : vector<8x64xf32> to vector<8x64xbf16>
    %110 = vector.extract_strided_slice %104 {offsets = [0, 0], sizes = [8, 16], strides = [1, 1]} : vector<8x64xbf16> to vector<8x16xbf16>
    %111 = vector.extract_strided_slice %107 {offsets = [0, 0], sizes = [16, 8], strides = [1, 1]} : vector<64x8xbf16> to vector<16x8xbf16>
    %cst_38 = arith.constant dense<0.000000e+00> : vector<8x8xf32>
    %112 = tpu.matmul %110, %111, %cst_38 {dimension_numbers = #tpu.dot_dimension_numbers<[1], [0], [0], [1], [0, 0, 1, 1], [], []>} : vector<8x16xbf16>, vector<16x8xbf16>, vector<8x8xf32> -> vector<8x8xf32>
    %cst_39 = arith.constant dense<0xFF800000> : vector<8xf32>
    %113 = vector.multi_reduction <maximumf>, %112, %cst_39 [1] : vector<8x8xf32> to vector<8xf32>
    %114 = vector.shape_cast %113 : vector<8xf32> to vector<8x1xf32>
    %115 = vector.broadcast %114 : vector<8x1xf32> to vector<8x8xf32>
    %116 = arith.subf %112, %115 : vector<8x8xf32>
    %117 = math.exp %116 : vector<8x8xf32>
    %cst_40 = arith.constant dense<0.000000e+00> : vector<8xf32>
    %118 = vector.multi_reduction <add>, %117, %cst_40 [1] : vector<8x8xf32> to vector<8xf32>
    %119 = vector.shape_cast %118 : vector<8xf32> to vector<8x1xf32>
    %120 = arith.truncf %117 : vector<8x8xf32> to vector<8x8xbf16>
    %121 = vector.extract_strided_slice %109 {offsets = [0, 0], sizes = [8, 16], strides = [1, 1]} : vector<8x64xbf16> to vector<8x16xbf16>
    %cst_41 = arith.constant dense<0.000000e+00> : vector<8x16xf32>
    %122 = tpu.matmul %120, %121, %cst_41 {dimension_numbers = #tpu.dot_dimension_numbers<[1], [0], [0], [1], [0, 0, 1, 1], [], []>} : vector<8x8xbf16>, vector<8x16xbf16>, vector<8x16xf32> -> vector<8x16xf32>
    %123 = tpu.reciprocal %119 {approx = true} : vector<8x1xf32> -> vector<8x1xf32>
    %124 = vector.broadcast %123 : vector<8x1xf32> to vector<8x16xf32>
    %125 = arith.mulf %122, %124 : vector<8x16xf32>
    %126 = vector.extract_strided_slice %104 {offsets = [0, 16], sizes = [8, 16], strides = [1, 1]} : vector<8x64xbf16> to vector<8x16xbf16>
    %127 = vector.extract_strided_slice %107 {offsets = [16, 0], sizes = [16, 8], strides = [1, 1]} : vector<64x8xbf16> to vector<16x8xbf16>
    %cst_42 = arith.constant dense<0.000000e+00> : vector<8x8xf32>
    %128 = tpu.matmul %126, %127, %cst_42 {dimension_numbers = #tpu.dot_dimension_numbers<[1], [0], [0], [1], [0, 0, 1, 1], [], []>} : vector<8x16xbf16>, vector<16x8xbf16>, vector<8x8xf32> -> vector<8x8xf32>
    %cst_43 = arith.constant dense<0xFF800000> : vector<8xf32>
    %129 = vector.multi_reduction <maximumf>, %128, %cst_43 [1] : vector<8x8xf32> to vector<8xf32>
    %130 = vector.shape_cast %129 : vector<8xf32> to vector<8x1xf32>
    %131 = vector.broadcast %130 : vector<8x1xf32> to vector<8x8xf32>
    %132 = arith.subf %128, %131 : vector<8x8xf32>
    %133 = math.exp %132 : vector<8x8xf32>
    %cst_44 = arith.constant dense<0.000000e+00> : vector<8xf32>
    %134 = vector.multi_reduction <add>, %133, %cst_44 [1] : vector<8x8xf32> to vector<8xf32>
    %135 = vector.shape_cast %134 : vector<8xf32> to vector<8x1xf32>
    %136 = arith.truncf %133 : vector<8x8xf32> to vector<8x8xbf16>
    %137 = vector.extract_strided_slice %109 {offsets = [0, 16], sizes = [8, 16], strides = [1, 1]} : vector<8x64xbf16> to vector<8x16xbf16>
    %cst_45 = arith.constant dense<0.000000e+00> : vector<8x16xf32>
    %138 = tpu.matmul %136, %137, %cst_45 {dimension_numbers = #tpu.dot_dimension_numbers<[1], [0], [0], [1], [0, 0, 1, 1], [], []>} : vector<8x8xbf16>, vector<8x16xbf16>, vector<8x16xf32> -> vector<8x16xf32>
    %139 = tpu.reciprocal %135 {approx = true} : vector<8x1xf32> -> vector<8x1xf32>
    %140 = vector.broadcast %139 : vector<8x1xf32> to vector<8x16xf32>
    %141 = arith.mulf %138, %140 : vector<8x16xf32>
    %142 = vector.extract_strided_slice %104 {offsets = [0, 32], sizes = [8, 16], strides = [1, 1]} : vector<8x64xbf16> to vector<8x16xbf16>
    %143 = vector.extract_strided_slice %107 {offsets = [32, 0], sizes = [16, 8], strides = [1, 1]} : vector<64x8xbf16> to vector<16x8xbf16>
    %cst_46 = arith.constant dense<0.000000e+00> : vector<8x8xf32>
    %144 = tpu.matmul %142, %143, %cst_46 {dimension_numbers = #tpu.dot_dimension_numbers<[1], [0], [0], [1], [0, 0, 1, 1], [], []>} : vector<8x16xbf16>, vector<16x8xbf16>, vector<8x8xf32> -> vector<8x8xf32>
    %cst_47 = arith.constant dense<0xFF800000> : vector<8xf32>
    %145 = vector.multi_reduction <maximumf>, %144, %cst_47 [1] : vector<8x8xf32> to vector<8xf32>
    %146 = vector.shape_cast %145 : vector<8xf32> to vector<8x1xf32>
    %147 = vector.broadcast %146 : vector<8x1xf32> to vector<8x8xf32>
    %148 = arith.subf %144, %147 : vector<8x8xf32>
    %149 = math.exp %148 : vector<8x8xf32>
    %cst_48 = arith.constant dense<0.000000e+00> : vector<8xf32>
    %150 = vector.multi_reduction <add>, %149, %cst_48 [1] : vector<8x8xf32> to vector<8xf32>
    %151 = vector.shape_cast %150 : vector<8xf32> to vector<8x1xf32>
    %152 = arith.truncf %149 : vector<8x8xf32> to vector<8x8xbf16>
    %153 = vector.extract_strided_slice %109 {offsets = [0, 32], sizes = [8, 16], strides = [1, 1]} : vector<8x64xbf16> to vector<8x16xbf16>
    %cst_49 = arith.constant dense<0.000000e+00> : vector<8x16xf32>
    %154 = tpu.matmul %152, %153, %cst_49 {dimension_numbers = #tpu.dot_dimension_numbers<[1], [0], [0], [1], [0, 0, 1, 1], [], []>} : vector<8x8xbf16>, vector<8x16xbf16>, vector<8x16xf32> -> vector<8x16xf32>
    %155 = tpu.reciprocal %151 {approx = true} : vector<8x1xf32> -> vector<8x1xf32>
    %156 = vector.broadcast %155 : vector<8x1xf32> to vector<8x16xf32>
    %157 = arith.mulf %154, %156 : vector<8x16xf32>
    %158 = vector.extract_strided_slice %104 {offsets = [0, 48], sizes = [8, 16], strides = [1, 1]} : vector<8x64xbf16> to vector<8x16xbf16>
    %159 = vector.extract_strided_slice %107 {offsets = [48, 0], sizes = [16, 8], strides = [1, 1]} : vector<64x8xbf16> to vector<16x8xbf16>
    %cst_50 = arith.constant dense<0.000000e+00> : vector<8x8xf32>
    %160 = tpu.matmul %158, %159, %cst_50 {dimension_numbers = #tpu.dot_dimension_numbers<[1], [0], [0], [1], [0, 0, 1, 1], [], []>} : vector<8x16xbf16>, vector<16x8xbf16>, vector<8x8xf32> -> vector<8x8xf32>
    %cst_51 = arith.constant dense<0xFF800000> : vector<8xf32>
    %161 = vector.multi_reduction <maximumf>, %160, %cst_51 [1] : vector<8x8xf32> to vector<8xf32>
    %162 = vector.shape_cast %161 : vector<8xf32> to vector<8x1xf32>
    %163 = vector.broadcast %162 : vector<8x1xf32> to vector<8x8xf32>
    %164 = arith.subf %160, %163 : vector<8x8xf32>
    %165 = math.exp %164 : vector<8x8xf32>
    %cst_52 = arith.constant dense<0.000000e+00> : vector<8xf32>
    %166 = vector.multi_reduction <add>, %165, %cst_52 [1] : vector<8x8xf32> to vector<8xf32>
    %167 = vector.shape_cast %166 : vector<8xf32> to vector<8x1xf32>
    %168 = arith.truncf %165 : vector<8x8xf32> to vector<8x8xbf16>
    %169 = vector.extract_strided_slice %109 {offsets = [0, 48], sizes = [8, 16], strides = [1, 1]} : vector<8x64xbf16> to vector<8x16xbf16>
    %cst_53 = arith.constant dense<0.000000e+00> : vector<8x16xf32>
    %170 = tpu.matmul %168, %169, %cst_53 {dimension_numbers = #tpu.dot_dimension_numbers<[1], [0], [0], [1], [0, 0, 1, 1], [], []>} : vector<8x8xbf16>, vector<8x16xbf16>, vector<8x16xf32> -> vector<8x16xf32>
    %171 = tpu.reciprocal %167 {approx = true} : vector<8x1xf32> -> vector<8x1xf32>
    %172 = vector.broadcast %171 : vector<8x1xf32> to vector<8x16xf32>
    %173 = arith.mulf %170, %172 : vector<8x16xf32>
    %174 = tpu.concatenate %125, %141, %157, %173 in 1 : vector<8x16xf32>, vector<8x16xf32>, vector<8x16xf32>, vector<8x16xf32> -> vector<8x64xf32>
    %175 = tpu.concatenate %102, %174 in 0 : vector<8x64xf32>, vector<8x64xf32> -> vector<16x64xf32>
    %176 = arith.truncf %175 : vector<16x64xf32> to vector<16x64xbf16>
    %c0_54 = arith.constant 0 : index
    %c0_55 = arith.constant 0 : index
    %c0_56 = arith.constant 0 : index
    %177 = vector.load %arg7[%c0_54, %c0_55, %c0_56] : memref<2x64x64xbf16, #tpu.memory_space<vmem>>, vector<1x64x64xbf16>
    %178 = vector.shape_cast %177 : vector<1x64x64xbf16> to vector<64x64xbf16>
    %cst_57 = arith.constant dense<0.000000e+00> : vector<16x64xf32>
    %179 = tpu.matmul %176, %178, %cst_57 {dimension_numbers = #tpu.dot_dimension_numbers<[1], [0], [0], [1], [0, 0, 1, 1], [], []>} : vector<16x64xbf16>, vector<64x64xbf16>, vector<16x64xf32> -> vector<16x64xf32>
    %c0_58 = arith.constant 0 : index
    %c0_59 = arith.constant 0 : index
    %c0_60 = arith.constant 0 : index
    %180 = vector.load %arg8[%c0_58, %c0_59, %c0_60] : memref<2x1x64xf32, #tpu.memory_space<vmem>>, vector<1x1x64xf32>
    %181 = vector.shape_cast %180 : vector<1x1x64xf32> to vector<1x64xf32>
    %182 = vector.broadcast %181 : vector<1x64xf32> to vector<16x64xf32>
    %183 = arith.addf %179, %182 : vector<16x64xf32>
    %184 = arith.addf %22, %183 : vector<16x64xf32>
    %c0_61 = arith.constant 0 : index
    %c0_62 = arith.constant 0 : index
    %c0_63 = arith.constant 0 : index
    %185 = vector.load %arg9[%c0_61, %c0_62, %c0_63] : memref<2x1x64xf32, #tpu.memory_space<vmem>>, vector<1x1x64xf32>
    %186 = vector.shape_cast %185 : vector<1x1x64xf32> to vector<1x64xf32>
    %c0_64 = arith.constant 0 : index
    %c0_65 = arith.constant 0 : index
    %c0_66 = arith.constant 0 : index
    %187 = vector.load %arg10[%c0_64, %c0_65, %c0_66] : memref<2x1x64xf32, #tpu.memory_space<vmem>>, vector<1x1x64xf32>
    %188 = vector.shape_cast %187 : vector<1x1x64xf32> to vector<1x64xf32>
    %cst_67 = arith.constant dense<0.000000e+00> : vector<16xf32>
    %189 = vector.multi_reduction <add>, %184, %cst_67 [1] : vector<16x64xf32> to vector<16xf32>
    %190 = vector.shape_cast %189 : vector<16xf32> to vector<16x1xf32>
    %cst_68 = arith.constant 6.400000e+01 : f32
    %191 = vector.broadcast %cst_68 : f32 to vector<16x1xf32>
    %192 = arith.divf %190, %191 : vector<16x1xf32>
    %193 = vector.broadcast %192 : vector<16x1xf32> to vector<16x64xf32>
    %194 = arith.subf %184, %193 : vector<16x64xf32>
    %195 = arith.mulf %194, %194 : vector<16x64xf32>
    %cst_69 = arith.constant dense<0.000000e+00> : vector<16xf32>
    %196 = vector.multi_reduction <add>, %195, %cst_69 [1] : vector<16x64xf32> to vector<16xf32>
    %197 = vector.shape_cast %196 : vector<16xf32> to vector<16x1xf32>
    %cst_70 = arith.constant 6.400000e+01 : f32
    %198 = vector.broadcast %cst_70 : f32 to vector<16x1xf32>
    %199 = arith.divf %197, %198 : vector<16x1xf32>
    %cst_71 = arith.constant 9.99999974E-6 : f32
    %200 = vector.broadcast %cst_71 : f32 to vector<16x1xf32>
    %201 = arith.addf %199, %200 : vector<16x1xf32>
    %202 = math.rsqrt %201 : vector<16x1xf32>
    %203 = vector.broadcast %202 : vector<16x1xf32> to vector<16x64xf32>
    %204 = arith.mulf %194, %203 : vector<16x64xf32>
    %205 = vector.broadcast %186 : vector<1x64xf32> to vector<16x64xf32>
    %206 = arith.mulf %204, %205 : vector<16x64xf32>
    %207 = vector.broadcast %188 : vector<1x64xf32> to vector<16x64xf32>
    %208 = arith.addf %206, %207 : vector<16x64xf32>
    %209 = arith.truncf %208 : vector<16x64xf32> to vector<16x64xbf16>
    %c0_72 = arith.constant 0 : index
    %c0_73 = arith.constant 0 : index
    %c0_74 = arith.constant 0 : index
    %210 = vector.load %arg11[%c0_72, %c0_73, %c0_74] : memref<2x64x2048xbf16, #tpu.memory_space<vmem>>, vector<1x64x2048xbf16>
    %211 = vector.shape_cast %210 : vector<1x64x2048xbf16> to vector<64x2048xbf16>
    %cst_75 = arith.constant dense<0.000000e+00> : vector<16x2048xf32>
    %212 = tpu.matmul %209, %211, %cst_75 {dimension_numbers = #tpu.dot_dimension_numbers<[1], [0], [0], [1], [0, 0, 1, 1], [], []>} : vector<16x64xbf16>, vector<64x2048xbf16>, vector<16x2048xf32> -> vector<16x2048xf32>
    %c0_76 = arith.constant 0 : index
    %c0_77 = arith.constant 0 : index
    %c0_78 = arith.constant 0 : index
    %213 = vector.load %arg12[%c0_76, %c0_77, %c0_78] : memref<2x1x2048xf32, #tpu.memory_space<vmem>>, vector<1x1x2048xf32>
    %214 = vector.shape_cast %213 : vector<1x1x2048xf32> to vector<1x2048xf32>
    %215 = vector.broadcast %214 : vector<1x2048xf32> to vector<16x2048xf32>
    %216 = arith.addf %212, %215 : vector<16x2048xf32>
    %cst_79 = arith.constant 0.000000e+00 : f32
    %217 = vector.broadcast %cst_79 : f32 to vector<16x2048xf32>
    %218 = arith.maximumf %216, %217 : vector<16x2048xf32>
    %219 = arith.truncf %218 : vector<16x2048xf32> to vector<16x2048xbf16>
    %c0_80 = arith.constant 0 : index
    %c0_81 = arith.constant 0 : index
    %c0_82 = arith.constant 0 : index
    %220 = vector.load %arg13[%c0_80, %c0_81, %c0_82] : memref<2x2048x64xbf16, #tpu.memory_space<vmem>>, vector<1x2048x64xbf16>
    %221 = vector.shape_cast %220 : vector<1x2048x64xbf16> to vector<2048x64xbf16>
    %cst_83 = arith.constant dense<0.000000e+00> : vector<16x64xf32>
    %222 = tpu.matmul %219, %221, %cst_83 {dimension_numbers = #tpu.dot_dimension_numbers<[1], [0], [0], [1], [0, 0, 1, 1], [], []>} : vector<16x2048xbf16>, vector<2048x64xbf16>, vector<16x64xf32> -> vector<16x64xf32>
    %c0_84 = arith.constant 0 : index
    %c0_85 = arith.constant 0 : index
    %c0_86 = arith.constant 0 : index
    %223 = vector.load %arg14[%c0_84, %c0_85, %c0_86] : memref<2x1x64xf32, #tpu.memory_space<vmem>>, vector<1x1x64xf32>
    %224 = vector.shape_cast %223 : vector<1x1x64xf32> to vector<1x64xf32>
    %225 = vector.broadcast %224 : vector<1x64xf32> to vector<16x64xf32>
    %226 = arith.addf %222, %225 : vector<16x64xf32>
    %227 = arith.addf %208, %226 : vector<16x64xf32>
    %c0_87 = arith.constant 0 : index
    %c0_88 = arith.constant 0 : index
    %c0_89 = arith.constant 0 : index
    %228 = vector.load %arg15[%c0_87, %c0_88, %c0_89] : memref<2x1x64xf32, #tpu.memory_space<vmem>>, vector<1x1x64xf32>
    %229 = vector.shape_cast %228 : vector<1x1x64xf32> to vector<1x64xf32>
    %c0_90 = arith.constant 0 : index
    %c0_91 = arith.constant 0 : index
    %c0_92 = arith.constant 0 : index
    %230 = vector.load %arg16[%c0_90, %c0_91, %c0_92] : memref<2x1x64xf32, #tpu.memory_space<vmem>>, vector<1x1x64xf32>
    %231 = vector.shape_cast %230 : vector<1x1x64xf32> to vector<1x64xf32>
    %cst_93 = arith.constant dense<0.000000e+00> : vector<16xf32>
    %232 = vector.multi_reduction <add>, %227, %cst_93 [1] : vector<16x64xf32> to vector<16xf32>
    %233 = vector.shape_cast %232 : vector<16xf32> to vector<16x1xf32>
    %cst_94 = arith.constant 6.400000e+01 : f32
    %234 = vector.broadcast %cst_94 : f32 to vector<16x1xf32>
    %235 = arith.divf %233, %234 : vector<16x1xf32>
    %236 = vector.broadcast %235 : vector<16x1xf32> to vector<16x64xf32>
    %237 = arith.subf %227, %236 : vector<16x64xf32>
    %238 = arith.mulf %237, %237 : vector<16x64xf32>
    %cst_95 = arith.constant dense<0.000000e+00> : vector<16xf32>
    %239 = vector.multi_reduction <add>, %238, %cst_95 [1] : vector<16x64xf32> to vector<16xf32>
    %240 = vector.shape_cast %239 : vector<16xf32> to vector<16x1xf32>
    %cst_96 = arith.constant 6.400000e+01 : f32
    %241 = vector.broadcast %cst_96 : f32 to vector<16x1xf32>
    %242 = arith.divf %240, %241 : vector<16x1xf32>
    %cst_97 = arith.constant 9.99999974E-6 : f32
    %243 = vector.broadcast %cst_97 : f32 to vector<16x1xf32>
    %244 = arith.addf %242, %243 : vector<16x1xf32>
    %245 = math.rsqrt %244 : vector<16x1xf32>
    %246 = vector.broadcast %245 : vector<16x1xf32> to vector<16x64xf32>
    %247 = arith.mulf %237, %246 : vector<16x64xf32>
    %248 = vector.broadcast %229 : vector<1x64xf32> to vector<16x64xf32>
    %249 = arith.mulf %247, %248 : vector<16x64xf32>
    %250 = vector.broadcast %231 : vector<1x64xf32> to vector<16x64xf32>
    %251 = arith.addf %249, %250 : vector<16x64xf32>
    %252 = arith.truncf %251 : vector<16x64xf32> to vector<16x64xbf16>
    %c1_98 = arith.constant 1 : index
    %c0_99 = arith.constant 0 : index
    %c0_100 = arith.constant 0 : index
    %253 = vector.load %arg5[%c1_98, %c0_99, %c0_100] : memref<2x64x192xbf16, #tpu.memory_space<vmem>>, vector<1x64x192xbf16>
    %254 = vector.shape_cast %253 : vector<1x64x192xbf16> to vector<64x192xbf16>
    %cst_101 = arith.constant dense<0.000000e+00> : vector<16x192xf32>
    %255 = tpu.matmul %252, %254, %cst_101 {dimension_numbers = #tpu.dot_dimension_numbers<[1], [0], [0], [1], [0, 0, 1, 1], [], []>} : vector<16x64xbf16>, vector<64x192xbf16>, vector<16x192xf32> -> vector<16x192xf32>
    %c1_102 = arith.constant 1 : index
    %c0_103 = arith.constant 0 : index
    %c0_104 = arith.constant 0 : index
    %256 = vector.load %arg6[%c1_102, %c0_103, %c0_104] : memref<2x1x192xf32, #tpu.memory_space<vmem>>, vector<1x1x192xf32>
    %257 = vector.shape_cast %256 : vector<1x1x192xf32> to vector<1x192xf32>
    %258 = vector.broadcast %257 : vector<1x192xf32> to vector<16x192xf32>
    %259 = arith.addf %255, %258 : vector<16x192xf32>
    %260 = vector.extract_strided_slice %259 {offsets = [0, 0], sizes = [8, 64], strides = [1, 1]} : vector<16x192xf32> to vector<8x64xf32>
    %261 = arith.truncf %260 : vector<8x64xf32> to vector<8x64xbf16>
    %262 = vector.extract_strided_slice %259 {offsets = [0, 64], sizes = [8, 64], strides = [1, 1]} : vector<16x192xf32> to vector<8x64xf32>
    %263 = tpu.transpose %262, [1, 0] : vector<8x64xf32> -> vector<64x8xf32>
    %264 = arith.truncf %263 : vector<64x8xf32> to vector<64x8xbf16>
    %265 = vector.extract_strided_slice %259 {offsets = [0, 128], sizes = [8, 64], strides = [1, 1]} : vector<16x192xf32> to vector<8x64xf32>
    %266 = arith.truncf %265 : vector<8x64xf32> to vector<8x64xbf16>
    %267 = vector.extract_strided_slice %261 {offsets = [0, 0], sizes = [8, 16], strides = [1, 1]} : vector<8x64xbf16> to vector<8x16xbf16>
    %268 = vector.extract_strided_slice %264 {offsets = [0, 0], sizes = [16, 8], strides = [1, 1]} : vector<64x8xbf16> to vector<16x8xbf16>
    %cst_105 = arith.constant dense<0.000000e+00> : vector<8x8xf32>
    %269 = tpu.matmul %267, %268, %cst_105 {dimension_numbers = #tpu.dot_dimension_numbers<[1], [0], [0], [1], [0, 0, 1, 1], [], []>} : vector<8x16xbf16>, vector<16x8xbf16>, vector<8x8xf32> -> vector<8x8xf32>
    %cst_106 = arith.constant dense<0xFF800000> : vector<8xf32>
    %270 = vector.multi_reduction <maximumf>, %269, %cst_106 [1] : vector<8x8xf32> to vector<8xf32>
    %271 = vector.shape_cast %270 : vector<8xf32> to vector<8x1xf32>
    %272 = vector.broadcast %271 : vector<8x1xf32> to vector<8x8xf32>
    %273 = arith.subf %269, %272 : vector<8x8xf32>
    %274 = math.exp %273 : vector<8x8xf32>
    %cst_107 = arith.constant dense<0.000000e+00> : vector<8xf32>
    %275 = vector.multi_reduction <add>, %274, %cst_107 [1] : vector<8x8xf32> to vector<8xf32>
    %276 = vector.shape_cast %275 : vector<8xf32> to vector<8x1xf32>
    %277 = arith.truncf %274 : vector<8x8xf32> to vector<8x8xbf16>
    %278 = vector.extract_strided_slice %266 {offsets = [0, 0], sizes = [8, 16], strides = [1, 1]} : vector<8x64xbf16> to vector<8x16xbf16>
    %cst_108 = arith.constant dense<0.000000e+00> : vector<8x16xf32>
    %279 = tpu.matmul %277, %278, %cst_108 {dimension_numbers = #tpu.dot_dimension_numbers<[1], [0], [0], [1], [0, 0, 1, 1], [], []>} : vector<8x8xbf16>, vector<8x16xbf16>, vector<8x16xf32> -> vector<8x16xf32>
    %280 = tpu.reciprocal %276 {approx = true} : vector<8x1xf32> -> vector<8x1xf32>
    %281 = vector.broadcast %280 : vector<8x1xf32> to vector<8x16xf32>
    %282 = arith.mulf %279, %281 : vector<8x16xf32>
    %283 = vector.extract_strided_slice %261 {offsets = [0, 16], sizes = [8, 16], strides = [1, 1]} : vector<8x64xbf16> to vector<8x16xbf16>
    %284 = vector.extract_strided_slice %264 {offsets = [16, 0], sizes = [16, 8], strides = [1, 1]} : vector<64x8xbf16> to vector<16x8xbf16>
    %cst_109 = arith.constant dense<0.000000e+00> : vector<8x8xf32>
    %285 = tpu.matmul %283, %284, %cst_109 {dimension_numbers = #tpu.dot_dimension_numbers<[1], [0], [0], [1], [0, 0, 1, 1], [], []>} : vector<8x16xbf16>, vector<16x8xbf16>, vector<8x8xf32> -> vector<8x8xf32>
    %cst_110 = arith.constant dense<0xFF800000> : vector<8xf32>
    %286 = vector.multi_reduction <maximumf>, %285, %cst_110 [1] : vector<8x8xf32> to vector<8xf32>
    %287 = vector.shape_cast %286 : vector<8xf32> to vector<8x1xf32>
    %288 = vector.broadcast %287 : vector<8x1xf32> to vector<8x8xf32>
    %289 = arith.subf %285, %288 : vector<8x8xf32>
    %290 = math.exp %289 : vector<8x8xf32>
    %cst_111 = arith.constant dense<0.000000e+00> : vector<8xf32>
    %291 = vector.multi_reduction <add>, %290, %cst_111 [1] : vector<8x8xf32> to vector<8xf32>
    %292 = vector.shape_cast %291 : vector<8xf32> to vector<8x1xf32>
    %293 = arith.truncf %290 : vector<8x8xf32> to vector<8x8xbf16>
    %294 = vector.extract_strided_slice %266 {offsets = [0, 16], sizes = [8, 16], strides = [1, 1]} : vector<8x64xbf16> to vector<8x16xbf16>
    %cst_112 = arith.constant dense<0.000000e+00> : vector<8x16xf32>
    %295 = tpu.matmul %293, %294, %cst_112 {dimension_numbers = #tpu.dot_dimension_numbers<[1], [0], [0], [1], [0, 0, 1, 1], [], []>} : vector<8x8xbf16>, vector<8x16xbf16>, vector<8x16xf32> -> vector<8x16xf32>
    %296 = tpu.reciprocal %292 {approx = true} : vector<8x1xf32> -> vector<8x1xf32>
    %297 = vector.broadcast %296 : vector<8x1xf32> to vector<8x16xf32>
    %298 = arith.mulf %295, %297 : vector<8x16xf32>
    %299 = vector.extract_strided_slice %261 {offsets = [0, 32], sizes = [8, 16], strides = [1, 1]} : vector<8x64xbf16> to vector<8x16xbf16>
    %300 = vector.extract_strided_slice %264 {offsets = [32, 0], sizes = [16, 8], strides = [1, 1]} : vector<64x8xbf16> to vector<16x8xbf16>
    %cst_113 = arith.constant dense<0.000000e+00> : vector<8x8xf32>
    %301 = tpu.matmul %299, %300, %cst_113 {dimension_numbers = #tpu.dot_dimension_numbers<[1], [0], [0], [1], [0, 0, 1, 1], [], []>} : vector<8x16xbf16>, vector<16x8xbf16>, vector<8x8xf32> -> vector<8x8xf32>
    %cst_114 = arith.constant dense<0xFF800000> : vector<8xf32>
    %302 = vector.multi_reduction <maximumf>, %301, %cst_114 [1] : vector<8x8xf32> to vector<8xf32>
    %303 = vector.shape_cast %302 : vector<8xf32> to vector<8x1xf32>
    %304 = vector.broadcast %303 : vector<8x1xf32> to vector<8x8xf32>
    %305 = arith.subf %301, %304 : vector<8x8xf32>
    %306 = math.exp %305 : vector<8x8xf32>
    %cst_115 = arith.constant dense<0.000000e+00> : vector<8xf32>
    %307 = vector.multi_reduction <add>, %306, %cst_115 [1] : vector<8x8xf32> to vector<8xf32>
    %308 = vector.shape_cast %307 : vector<8xf32> to vector<8x1xf32>
    %309 = arith.truncf %306 : vector<8x8xf32> to vector<8x8xbf16>
    %310 = vector.extract_strided_slice %266 {offsets = [0, 32], sizes = [8, 16], strides = [1, 1]} : vector<8x64xbf16> to vector<8x16xbf16>
    %cst_116 = arith.constant dense<0.000000e+00> : vector<8x16xf32>
    %311 = tpu.matmul %309, %310, %cst_116 {dimension_numbers = #tpu.dot_dimension_numbers<[1], [0], [0], [1], [0, 0, 1, 1], [], []>} : vector<8x8xbf16>, vector<8x16xbf16>, vector<8x16xf32> -> vector<8x16xf32>
    %312 = tpu.reciprocal %308 {approx = true} : vector<8x1xf32> -> vector<8x1xf32>
    %313 = vector.broadcast %312 : vector<8x1xf32> to vector<8x16xf32>
    %314 = arith.mulf %311, %313 : vector<8x16xf32>
    %315 = vector.extract_strided_slice %261 {offsets = [0, 48], sizes = [8, 16], strides = [1, 1]} : vector<8x64xbf16> to vector<8x16xbf16>
    %316 = vector.extract_strided_slice %264 {offsets = [48, 0], sizes = [16, 8], strides = [1, 1]} : vector<64x8xbf16> to vector<16x8xbf16>
    %cst_117 = arith.constant dense<0.000000e+00> : vector<8x8xf32>
    %317 = tpu.matmul %315, %316, %cst_117 {dimension_numbers = #tpu.dot_dimension_numbers<[1], [0], [0], [1], [0, 0, 1, 1], [], []>} : vector<8x16xbf16>, vector<16x8xbf16>, vector<8x8xf32> -> vector<8x8xf32>
    %cst_118 = arith.constant dense<0xFF800000> : vector<8xf32>
    %318 = vector.multi_reduction <maximumf>, %317, %cst_118 [1] : vector<8x8xf32> to vector<8xf32>
    %319 = vector.shape_cast %318 : vector<8xf32> to vector<8x1xf32>
    %320 = vector.broadcast %319 : vector<8x1xf32> to vector<8x8xf32>
    %321 = arith.subf %317, %320 : vector<8x8xf32>
    %322 = math.exp %321 : vector<8x8xf32>
    %cst_119 = arith.constant dense<0.000000e+00> : vector<8xf32>
    %323 = vector.multi_reduction <add>, %322, %cst_119 [1] : vector<8x8xf32> to vector<8xf32>
    %324 = vector.shape_cast %323 : vector<8xf32> to vector<8x1xf32>
    %325 = arith.truncf %322 : vector<8x8xf32> to vector<8x8xbf16>
    %326 = vector.extract_strided_slice %266 {offsets = [0, 48], sizes = [8, 16], strides = [1, 1]} : vector<8x64xbf16> to vector<8x16xbf16>
    %cst_120 = arith.constant dense<0.000000e+00> : vector<8x16xf32>
    %327 = tpu.matmul %325, %326, %cst_120 {dimension_numbers = #tpu.dot_dimension_numbers<[1], [0], [0], [1], [0, 0, 1, 1], [], []>} : vector<8x8xbf16>, vector<8x16xbf16>, vector<8x16xf32> -> vector<8x16xf32>
    %328 = tpu.reciprocal %324 {approx = true} : vector<8x1xf32> -> vector<8x1xf32>
    %329 = vector.broadcast %328 : vector<8x1xf32> to vector<8x16xf32>
    %330 = arith.mulf %327, %329 : vector<8x16xf32>
    %331 = tpu.concatenate %282, %298, %314, %330 in 1 : vector<8x16xf32>, vector<8x16xf32>, vector<8x16xf32>, vector<8x16xf32> -> vector<8x64xf32>
    %332 = vector.extract_strided_slice %259 {offsets = [8, 0], sizes = [8, 64], strides = [1, 1]} : vector<16x192xf32> to vector<8x64xf32>
    %333 = arith.truncf %332 : vector<8x64xf32> to vector<8x64xbf16>
    %334 = vector.extract_strided_slice %259 {offsets = [8, 64], sizes = [8, 64], strides = [1, 1]} : vector<16x192xf32> to vector<8x64xf32>
    %335 = tpu.transpose %334, [1, 0] : vector<8x64xf32> -> vector<64x8xf32>
    %336 = arith.truncf %335 : vector<64x8xf32> to vector<64x8xbf16>
    %337 = vector.extract_strided_slice %259 {offsets = [8, 128], sizes = [8, 64], strides = [1, 1]} : vector<16x192xf32> to vector<8x64xf32>
    %338 = arith.truncf %337 : vector<8x64xf32> to vector<8x64xbf16>
    %339 = vector.extract_strided_slice %333 {offsets = [0, 0], sizes = [8, 16], strides = [1, 1]} : vector<8x64xbf16> to vector<8x16xbf16>
    %340 = vector.extract_strided_slice %336 {offsets = [0, 0], sizes = [16, 8], strides = [1, 1]} : vector<64x8xbf16> to vector<16x8xbf16>
    %cst_121 = arith.constant dense<0.000000e+00> : vector<8x8xf32>
    %341 = tpu.matmul %339, %340, %cst_121 {dimension_numbers = #tpu.dot_dimension_numbers<[1], [0], [0], [1], [0, 0, 1, 1], [], []>} : vector<8x16xbf16>, vector<16x8xbf16>, vector<8x8xf32> -> vector<8x8xf32>
    %cst_122 = arith.constant dense<0xFF800000> : vector<8xf32>
    %342 = vector.multi_reduction <maximumf>, %341, %cst_122 [1] : vector<8x8xf32> to vector<8xf32>
    %343 = vector.shape_cast %342 : vector<8xf32> to vector<8x1xf32>
    %344 = vector.broadcast %343 : vector<8x1xf32> to vector<8x8xf32>
    %345 = arith.subf %341, %344 : vector<8x8xf32>
    %346 = math.exp %345 : vector<8x8xf32>
    %cst_123 = arith.constant dense<0.000000e+00> : vector<8xf32>
    %347 = vector.multi_reduction <add>, %346, %cst_123 [1] : vector<8x8xf32> to vector<8xf32>
    %348 = vector.shape_cast %347 : vector<8xf32> to vector<8x1xf32>
    %349 = arith.truncf %346 : vector<8x8xf32> to vector<8x8xbf16>
    %350 = vector.extract_strided_slice %338 {offsets = [0, 0], sizes = [8, 16], strides = [1, 1]} : vector<8x64xbf16> to vector<8x16xbf16>
    %cst_124 = arith.constant dense<0.000000e+00> : vector<8x16xf32>
    %351 = tpu.matmul %349, %350, %cst_124 {dimension_numbers = #tpu.dot_dimension_numbers<[1], [0], [0], [1], [0, 0, 1, 1], [], []>} : vector<8x8xbf16>, vector<8x16xbf16>, vector<8x16xf32> -> vector<8x16xf32>
    %352 = tpu.reciprocal %348 {approx = true} : vector<8x1xf32> -> vector<8x1xf32>
    %353 = vector.broadcast %352 : vector<8x1xf32> to vector<8x16xf32>
    %354 = arith.mulf %351, %353 : vector<8x16xf32>
    %355 = vector.extract_strided_slice %333 {offsets = [0, 16], sizes = [8, 16], strides = [1, 1]} : vector<8x64xbf16> to vector<8x16xbf16>
    %356 = vector.extract_strided_slice %336 {offsets = [16, 0], sizes = [16, 8], strides = [1, 1]} : vector<64x8xbf16> to vector<16x8xbf16>
    %cst_125 = arith.constant dense<0.000000e+00> : vector<8x8xf32>
    %357 = tpu.matmul %355, %356, %cst_125 {dimension_numbers = #tpu.dot_dimension_numbers<[1], [0], [0], [1], [0, 0, 1, 1], [], []>} : vector<8x16xbf16>, vector<16x8xbf16>, vector<8x8xf32> -> vector<8x8xf32>
    %cst_126 = arith.constant dense<0xFF800000> : vector<8xf32>
    %358 = vector.multi_reduction <maximumf>, %357, %cst_126 [1] : vector<8x8xf32> to vector<8xf32>
    %359 = vector.shape_cast %358 : vector<8xf32> to vector<8x1xf32>
    %360 = vector.broadcast %359 : vector<8x1xf32> to vector<8x8xf32>
    %361 = arith.subf %357, %360 : vector<8x8xf32>
    %362 = math.exp %361 : vector<8x8xf32>
    %cst_127 = arith.constant dense<0.000000e+00> : vector<8xf32>
    %363 = vector.multi_reduction <add>, %362, %cst_127 [1] : vector<8x8xf32> to vector<8xf32>
    %364 = vector.shape_cast %363 : vector<8xf32> to vector<8x1xf32>
    %365 = arith.truncf %362 : vector<8x8xf32> to vector<8x8xbf16>
    %366 = vector.extract_strided_slice %338 {offsets = [0, 16], sizes = [8, 16], strides = [1, 1]} : vector<8x64xbf16> to vector<8x16xbf16>
    %cst_128 = arith.constant dense<0.000000e+00> : vector<8x16xf32>
    %367 = tpu.matmul %365, %366, %cst_128 {dimension_numbers = #tpu.dot_dimension_numbers<[1], [0], [0], [1], [0, 0, 1, 1], [], []>} : vector<8x8xbf16>, vector<8x16xbf16>, vector<8x16xf32> -> vector<8x16xf32>
    %368 = tpu.reciprocal %364 {approx = true} : vector<8x1xf32> -> vector<8x1xf32>
    %369 = vector.broadcast %368 : vector<8x1xf32> to vector<8x16xf32>
    %370 = arith.mulf %367, %369 : vector<8x16xf32>
    %371 = vector.extract_strided_slice %333 {offsets = [0, 32], sizes = [8, 16], strides = [1, 1]} : vector<8x64xbf16> to vector<8x16xbf16>
    %372 = vector.extract_strided_slice %336 {offsets = [32, 0], sizes = [16, 8], strides = [1, 1]} : vector<64x8xbf16> to vector<16x8xbf16>
    %cst_129 = arith.constant dense<0.000000e+00> : vector<8x8xf32>
    %373 = tpu.matmul %371, %372, %cst_129 {dimension_numbers = #tpu.dot_dimension_numbers<[1], [0], [0], [1], [0, 0, 1, 1], [], []>} : vector<8x16xbf16>, vector<16x8xbf16>, vector<8x8xf32> -> vector<8x8xf32>
    %cst_130 = arith.constant dense<0xFF800000> : vector<8xf32>
    %374 = vector.multi_reduction <maximumf>, %373, %cst_130 [1] : vector<8x8xf32> to vector<8xf32>
    %375 = vector.shape_cast %374 : vector<8xf32> to vector<8x1xf32>
    %376 = vector.broadcast %375 : vector<8x1xf32> to vector<8x8xf32>
    %377 = arith.subf %373, %376 : vector<8x8xf32>
    %378 = math.exp %377 : vector<8x8xf32>
    %cst_131 = arith.constant dense<0.000000e+00> : vector<8xf32>
    %379 = vector.multi_reduction <add>, %378, %cst_131 [1] : vector<8x8xf32> to vector<8xf32>
    %380 = vector.shape_cast %379 : vector<8xf32> to vector<8x1xf32>
    %381 = arith.truncf %378 : vector<8x8xf32> to vector<8x8xbf16>
    %382 = vector.extract_strided_slice %338 {offsets = [0, 32], sizes = [8, 16], strides = [1, 1]} : vector<8x64xbf16> to vector<8x16xbf16>
    %cst_132 = arith.constant dense<0.000000e+00> : vector<8x16xf32>
    %383 = tpu.matmul %381, %382, %cst_132 {dimension_numbers = #tpu.dot_dimension_numbers<[1], [0], [0], [1], [0, 0, 1, 1], [], []>} : vector<8x8xbf16>, vector<8x16xbf16>, vector<8x16xf32> -> vector<8x16xf32>
    %384 = tpu.reciprocal %380 {approx = true} : vector<8x1xf32> -> vector<8x1xf32>
    %385 = vector.broadcast %384 : vector<8x1xf32> to vector<8x16xf32>
    %386 = arith.mulf %383, %385 : vector<8x16xf32>
    %387 = vector.extract_strided_slice %333 {offsets = [0, 48], sizes = [8, 16], strides = [1, 1]} : vector<8x64xbf16> to vector<8x16xbf16>
    %388 = vector.extract_strided_slice %336 {offsets = [48, 0], sizes = [16, 8], strides = [1, 1]} : vector<64x8xbf16> to vector<16x8xbf16>
    %cst_133 = arith.constant dense<0.000000e+00> : vector<8x8xf32>
    %389 = tpu.matmul %387, %388, %cst_133 {dimension_numbers = #tpu.dot_dimension_numbers<[1], [0], [0], [1], [0, 0, 1, 1], [], []>} : vector<8x16xbf16>, vector<16x8xbf16>, vector<8x8xf32> -> vector<8x8xf32>
    %cst_134 = arith.constant dense<0xFF800000> : vector<8xf32>
    %390 = vector.multi_reduction <maximumf>, %389, %cst_134 [1] : vector<8x8xf32> to vector<8xf32>
    %391 = vector.shape_cast %390 : vector<8xf32> to vector<8x1xf32>
    %392 = vector.broadcast %391 : vector<8x1xf32> to vector<8x8xf32>
    %393 = arith.subf %389, %392 : vector<8x8xf32>
    %394 = math.exp %393 : vector<8x8xf32>
    %cst_135 = arith.constant dense<0.000000e+00> : vector<8xf32>
    %395 = vector.multi_reduction <add>, %394, %cst_135 [1] : vector<8x8xf32> to vector<8xf32>
    %396 = vector.shape_cast %395 : vector<8xf32> to vector<8x1xf32>
    %397 = arith.truncf %394 : vector<8x8xf32> to vector<8x8xbf16>
    %398 = vector.extract_strided_slice %338 {offsets = [0, 48], sizes = [8, 16], strides = [1, 1]} : vector<8x64xbf16> to vector<8x16xbf16>
    %cst_136 = arith.constant dense<0.000000e+00> : vector<8x16xf32>
    %399 = tpu.matmul %397, %398, %cst_136 {dimension_numbers = #tpu.dot_dimension_numbers<[1], [0], [0], [1], [0, 0, 1, 1], [], []>} : vector<8x8xbf16>, vector<8x16xbf16>, vector<8x16xf32> -> vector<8x16xf32>
    %400 = tpu.reciprocal %396 {approx = true} : vector<8x1xf32> -> vector<8x1xf32>
    %401 = vector.broadcast %400 : vector<8x1xf32> to vector<8x16xf32>
    %402 = arith.mulf %399, %401 : vector<8x16xf32>
    %403 = tpu.concatenate %354, %370, %386, %402 in 1 : vector<8x16xf32>, vector<8x16xf32>, vector<8x16xf32>, vector<8x16xf32> -> vector<8x64xf32>
    %404 = tpu.concatenate %331, %403 in 0 : vector<8x64xf32>, vector<8x64xf32> -> vector<16x64xf32>
    %405 = arith.truncf %404 : vector<16x64xf32> to vector<16x64xbf16>
    %c1_137 = arith.constant 1 : index
    %c0_138 = arith.constant 0 : index
    %c0_139 = arith.constant 0 : index
    %406 = vector.load %arg7[%c1_137, %c0_138, %c0_139] : memref<2x64x64xbf16, #tpu.memory_space<vmem>>, vector<1x64x64xbf16>
    %407 = vector.shape_cast %406 : vector<1x64x64xbf16> to vector<64x64xbf16>
    %cst_140 = arith.constant dense<0.000000e+00> : vector<16x64xf32>
    %408 = tpu.matmul %405, %407, %cst_140 {dimension_numbers = #tpu.dot_dimension_numbers<[1], [0], [0], [1], [0, 0, 1, 1], [], []>} : vector<16x64xbf16>, vector<64x64xbf16>, vector<16x64xf32> -> vector<16x64xf32>
    %c1_141 = arith.constant 1 : index
    %c0_142 = arith.constant 0 : index
    %c0_143 = arith.constant 0 : index
    %409 = vector.load %arg8[%c1_141, %c0_142, %c0_143] : memref<2x1x64xf32, #tpu.memory_space<vmem>>, vector<1x1x64xf32>
    %410 = vector.shape_cast %409 : vector<1x1x64xf32> to vector<1x64xf32>
    %411 = vector.broadcast %410 : vector<1x64xf32> to vector<16x64xf32>
    %412 = arith.addf %408, %411 : vector<16x64xf32>
    %413 = arith.addf %251, %412 : vector<16x64xf32>
    %c1_144 = arith.constant 1 : index
    %c0_145 = arith.constant 0 : index
    %c0_146 = arith.constant 0 : index
    %414 = vector.load %arg9[%c1_144, %c0_145, %c0_146] : memref<2x1x64xf32, #tpu.memory_space<vmem>>, vector<1x1x64xf32>
    %415 = vector.shape_cast %414 : vector<1x1x64xf32> to vector<1x64xf32>
    %c1_147 = arith.constant 1 : index
    %c0_148 = arith.constant 0 : index
    %c0_149 = arith.constant 0 : index
    %416 = vector.load %arg10[%c1_147, %c0_148, %c0_149] : memref<2x1x64xf32, #tpu.memory_space<vmem>>, vector<1x1x64xf32>
    %417 = vector.shape_cast %416 : vector<1x1x64xf32> to vector<1x64xf32>
    %cst_150 = arith.constant dense<0.000000e+00> : vector<16xf32>
    %418 = vector.multi_reduction <add>, %413, %cst_150 [1] : vector<16x64xf32> to vector<16xf32>
    %419 = vector.shape_cast %418 : vector<16xf32> to vector<16x1xf32>
    %cst_151 = arith.constant 6.400000e+01 : f32
    %420 = vector.broadcast %cst_151 : f32 to vector<16x1xf32>
    %421 = arith.divf %419, %420 : vector<16x1xf32>
    %422 = vector.broadcast %421 : vector<16x1xf32> to vector<16x64xf32>
    %423 = arith.subf %413, %422 : vector<16x64xf32>
    %424 = arith.mulf %423, %423 : vector<16x64xf32>
    %cst_152 = arith.constant dense<0.000000e+00> : vector<16xf32>
    %425 = vector.multi_reduction <add>, %424, %cst_152 [1] : vector<16x64xf32> to vector<16xf32>
    %426 = vector.shape_cast %425 : vector<16xf32> to vector<16x1xf32>
    %cst_153 = arith.constant 6.400000e+01 : f32
    %427 = vector.broadcast %cst_153 : f32 to vector<16x1xf32>
    %428 = arith.divf %426, %427 : vector<16x1xf32>
    %cst_154 = arith.constant 9.99999974E-6 : f32
    %429 = vector.broadcast %cst_154 : f32 to vector<16x1xf32>
    %430 = arith.addf %428, %429 : vector<16x1xf32>
    %431 = math.rsqrt %430 : vector<16x1xf32>
    %432 = vector.broadcast %431 : vector<16x1xf32> to vector<16x64xf32>
    %433 = arith.mulf %423, %432 : vector<16x64xf32>
    %434 = vector.broadcast %415 : vector<1x64xf32> to vector<16x64xf32>
    %435 = arith.mulf %433, %434 : vector<16x64xf32>
    %436 = vector.broadcast %417 : vector<1x64xf32> to vector<16x64xf32>
    %437 = arith.addf %435, %436 : vector<16x64xf32>
    %438 = arith.truncf %437 : vector<16x64xf32> to vector<16x64xbf16>
    %c1_155 = arith.constant 1 : index
    %c0_156 = arith.constant 0 : index
    %c0_157 = arith.constant 0 : index
    %439 = vector.load %arg11[%c1_155, %c0_156, %c0_157] : memref<2x64x2048xbf16, #tpu.memory_space<vmem>>, vector<1x64x2048xbf16>
    %440 = vector.shape_cast %439 : vector<1x64x2048xbf16> to vector<64x2048xbf16>
    %cst_158 = arith.constant dense<0.000000e+00> : vector<16x2048xf32>
    %441 = tpu.matmul %438, %440, %cst_158 {dimension_numbers = #tpu.dot_dimension_numbers<[1], [0], [0], [1], [0, 0, 1, 1], [], []>} : vector<16x64xbf16>, vector<64x2048xbf16>, vector<16x2048xf32> -> vector<16x2048xf32>
    %c1_159 = arith.constant 1 : index
    %c0_160 = arith.constant 0 : index
    %c0_161 = arith.constant 0 : index
    %442 = vector.load %arg12[%c1_159, %c0_160, %c0_161] : memref<2x1x2048xf32, #tpu.memory_space<vmem>>, vector<1x1x2048xf32>
    %443 = vector.shape_cast %442 : vector<1x1x2048xf32> to vector<1x2048xf32>
    %444 = vector.broadcast %443 : vector<1x2048xf32> to vector<16x2048xf32>
    %445 = arith.addf %441, %444 : vector<16x2048xf32>
    %cst_162 = arith.constant 0.000000e+00 : f32
    %446 = vector.broadcast %cst_162 : f32 to vector<16x2048xf32>
    %447 = arith.maximumf %445, %446 : vector<16x2048xf32>
    %448 = arith.truncf %447 : vector<16x2048xf32> to vector<16x2048xbf16>
    %c1_163 = arith.constant 1 : index
    %c0_164 = arith.constant 0 : index
    %c0_165 = arith.constant 0 : index
    %449 = vector.load %arg13[%c1_163, %c0_164, %c0_165] : memref<2x2048x64xbf16, #tpu.memory_space<vmem>>, vector<1x2048x64xbf16>
    %450 = vector.shape_cast %449 : vector<1x2048x64xbf16> to vector<2048x64xbf16>
    %cst_166 = arith.constant dense<0.000000e+00> : vector<16x64xf32>
    %451 = tpu.matmul %448, %450, %cst_166 {dimension_numbers = #tpu.dot_dimension_numbers<[1], [0], [0], [1], [0, 0, 1, 1], [], []>} : vector<16x2048xbf16>, vector<2048x64xbf16>, vector<16x64xf32> -> vector<16x64xf32>
    %c1_167 = arith.constant 1 : index
    %c0_168 = arith.constant 0 : index
    %c0_169 = arith.constant 0 : index
    %452 = vector.load %arg14[%c1_167, %c0_168, %c0_169] : memref<2x1x64xf32, #tpu.memory_space<vmem>>, vector<1x1x64xf32>
    %453 = vector.shape_cast %452 : vector<1x1x64xf32> to vector<1x64xf32>
    %454 = vector.broadcast %453 : vector<1x64xf32> to vector<16x64xf32>
    %455 = arith.addf %451, %454 : vector<16x64xf32>
    %456 = arith.addf %437, %455 : vector<16x64xf32>
    %c1_170 = arith.constant 1 : index
    %c0_171 = arith.constant 0 : index
    %c0_172 = arith.constant 0 : index
    %457 = vector.load %arg15[%c1_170, %c0_171, %c0_172] : memref<2x1x64xf32, #tpu.memory_space<vmem>>, vector<1x1x64xf32>
    %458 = vector.shape_cast %457 : vector<1x1x64xf32> to vector<1x64xf32>
    %c1_173 = arith.constant 1 : index
    %c0_174 = arith.constant 0 : index
    %c0_175 = arith.constant 0 : index
    %459 = vector.load %arg16[%c1_173, %c0_174, %c0_175] : memref<2x1x64xf32, #tpu.memory_space<vmem>>, vector<1x1x64xf32>
    %460 = vector.shape_cast %459 : vector<1x1x64xf32> to vector<1x64xf32>
    %cst_176 = arith.constant dense<0.000000e+00> : vector<16xf32>
    %461 = vector.multi_reduction <add>, %456, %cst_176 [1] : vector<16x64xf32> to vector<16xf32>
    %462 = vector.shape_cast %461 : vector<16xf32> to vector<16x1xf32>
    %cst_177 = arith.constant 6.400000e+01 : f32
    %463 = vector.broadcast %cst_177 : f32 to vector<16x1xf32>
    %464 = arith.divf %462, %463 : vector<16x1xf32>
    %465 = vector.broadcast %464 : vector<16x1xf32> to vector<16x64xf32>
    %466 = arith.subf %456, %465 : vector<16x64xf32>
    %467 = arith.mulf %466, %466 : vector<16x64xf32>
    %cst_178 = arith.constant dense<0.000000e+00> : vector<16xf32>
    %468 = vector.multi_reduction <add>, %467, %cst_178 [1] : vector<16x64xf32> to vector<16xf32>
    %469 = vector.shape_cast %468 : vector<16xf32> to vector<16x1xf32>
    %cst_179 = arith.constant 6.400000e+01 : f32
    %470 = vector.broadcast %cst_179 : f32 to vector<16x1xf32>
    %471 = arith.divf %469, %470 : vector<16x1xf32>
    %cst_180 = arith.constant 9.99999974E-6 : f32
    %472 = vector.broadcast %cst_180 : f32 to vector<16x1xf32>
    %473 = arith.addf %471, %472 : vector<16x1xf32>
    %474 = math.rsqrt %473 : vector<16x1xf32>
    %475 = vector.broadcast %474 : vector<16x1xf32> to vector<16x64xf32>
    %476 = arith.mulf %466, %475 : vector<16x64xf32>
    %477 = vector.broadcast %458 : vector<1x64xf32> to vector<16x64xf32>
    %478 = arith.mulf %476, %477 : vector<16x64xf32>
    %479 = vector.broadcast %460 : vector<1x64xf32> to vector<16x64xf32>
    %480 = arith.addf %478, %479 : vector<16x64xf32>
    %481 = vector.extract_strided_slice %480 {offsets = [7, 0], sizes = [1, 64], strides = [1, 1]} : vector<16x64xf32> to vector<1x64xf32>
    %c0_181 = arith.constant 0 : index
    %c0_182 = arith.constant 0 : index
    %482 = vector.load %arg17[%c0_181, %c0_182] : memref<1x64xf32, #tpu.memory_space<vmem>>, vector<1x64xf32>
    %483 = arith.mulf %481, %482 : vector<1x64xf32>
    %cst_183 = arith.constant dense<0.000000e+00> : vector<1xf32>
    %484 = vector.multi_reduction <add>, %483, %cst_183 [1] : vector<1x64xf32> to vector<1xf32>
    %485 = vector.shape_cast %484 : vector<1xf32> to vector<1x1xf32>
    %c0_184 = arith.constant 0 : index
    %c0_185 = arith.constant 0 : index
    %486 = vector.load %arg18[%c0_184, %c0_185] : memref<1x1xf32, #tpu.memory_space<vmem>>, vector<1x1xf32>
    %487 = arith.addf %485, %486 : vector<1x1xf32>
    %c0_186 = arith.constant 0 : index
    %c0_187 = arith.constant 0 : index
    %c0_188 = arith.constant 0 : index
    %488 = vector.load %arg19[%c0_186, %c0_187, %c0_188] : memref<2x1x1xf32, #tpu.memory_space<vmem>>, vector<1x1x1xf32>
    %489 = vector.shape_cast %488 : vector<1x1x1xf32> to vector<1x1xf32>
    %490 = vector.shape_cast %487 : vector<1x1xf32> to vector<1x1x1xf32>
    tpu.vector_store %arg19[%c0_186, %c0_187, %c0_188], %490 {strides = array<i32>} : memref<2x1x1xf32, #tpu.memory_space<vmem>>, vector<1x1x1xf32>,
    %491 = vector.extract_strided_slice %480 {offsets = [15, 0], sizes = [1, 64], strides = [1, 1]} : vector<16x64xf32> to vector<1x64xf32>
    %c0_189 = arith.constant 0 : index
    %c0_190 = arith.constant 0 : index
    %492 = vector.load %arg17[%c0_189, %c0_190] : memref<1x64xf32, #tpu.memory_space<vmem>>, vector<1x64xf32>
    %493 = arith.mulf %491, %492 : vector<1x64xf32>
    %cst_191 = arith.constant dense<0.000000e+00> : vector<1xf32>
    %494 = vector.multi_reduction <add>, %493, %cst_191 [1] : vector<1x64xf32> to vector<1xf32>
    %495 = vector.shape_cast %494 : vector<1xf32> to vector<1x1xf32>
    %c0_192 = arith.constant 0 : index
    %c0_193 = arith.constant 0 : index
    %496 = vector.load %arg18[%c0_192, %c0_193] : memref<1x1xf32, #tpu.memory_space<vmem>>, vector<1x1xf32>
    %497 = arith.addf %495, %496 : vector<1x1xf32>
    %c1_194 = arith.constant 1 : index
    %c0_195 = arith.constant 0 : index
    %c0_196 = arith.constant 0 : index
    %498 = vector.load %arg19[%c1_194, %c0_195, %c0_196] : memref<2x1x1xf32, #tpu.memory_space<vmem>>, vector<1x1x1xf32>
    %499 = vector.shape_cast %498 : vector<1x1x1xf32> to vector<1x1xf32>
    %500 = vector.shape_cast %497 : vector<1x1xf32> to vector<1x1x1xf32>
    tpu.vector_store %arg19[%c1_194, %c0_195, %c0_196], %500 {strides = array<i32>} : memref<2x1x1xf32, #tpu.memory_space<vmem>>, vector<1x1x1xf32>,
    return
  }
  func.func @transform_0(%arg0: i32) -> (i32, i32, i32) {
    %c0_i32 = arith.constant 0 : i32
    %c0_i32_0 = arith.constant 0 : i32
    %c0_i32_1 = arith.constant 0 : i32
    return %arg0, %c0_i32, %c0_i32_0 : i32, i32, i32
  }
  func.func @transform_1(%arg0: i32) -> (i32, i32) {
    %c0_i32 = arith.constant 0 : i32
    %c0_i32_0 = arith.constant 0 : i32
    %c0_i32_1 = arith.constant 0 : i32
    return %c0_i32, %c0_i32_0 : i32, i32
  }
  func.func @transform_2(%arg0: i32) -> (i32, i32) {
    %c0_i32 = arith.constant 0 : i32
    %c0_i32_0 = arith.constant 0 : i32
    %c0_i32_1 = arith.constant 0 : i32
    return %c0_i32, %c0_i32_0 : i32, i32
  }
  func.func @transform_3(%arg0: i32) -> (i32, i32) {
    %c0_i32 = arith.constant 0 : i32
    %c0_i32_0 = arith.constant 0 : i32
    %c0_i32_1 = arith.constant 0 : i32
    return %c0_i32, %c0_i32_0 : i32, i32
  }
  func.func @transform_4(%arg0: i32) -> (i32, i32, i32) {
    %c0_i32 = arith.constant 0 : i32
    %c0_i32_0 = arith.constant 0 : i32
    %c0_i32_1 = arith.constant 0 : i32
    %c0_i32_2 = arith.constant 0 : i32
    return %c0_i32, %c0_i32_0, %c0_i32_1 : i32, i32, i32
  }
  func.func @transform_5(%arg0: i32) -> (i32, i32, i32) {
    %c0_i32 = arith.constant 0 : i32
    %c0_i32_0 = arith.constant 0 : i32
    %c0_i32_1 = arith.constant 0 : i32
    %c0_i32_2 = arith.constant 0 : i32
    return %c0_i32, %c0_i32_0, %c0_i32_1 : i32, i32, i32
  }
  func.func @transform_6(%arg0: i32) -> (i32, i32, i32) {
    %c0_i32 = arith.constant 0 : i32
    %c0_i32_0 = arith.constant 0 : i32
    %c0_i32_1 = arith.constant 0 : i32
    %c0_i32_2 = arith.constant 0 : i32
    return %c0_i32, %c0_i32_0, %c0_i32_1 : i32, i32, i32
  }
  func.func @transform_7(%arg0: i32) -> (i32, i32, i32) {
    %c0_i32 = arith.constant 0 : i32
    %c0_i32_0 = arith.constant 0 : i32
    %c0_i32_1 = arith.constant 0 : i32
    %c0_i32_2 = arith.constant 0 : i32
    return %c0_i32, %c0_i32_0, %c0_i32_1 : i32, i32, i32
  }
  func.func @transform_8(%arg0: i32) -> (i32, i32, i32) {
    %c0_i32 = arith.constant 0 : i32
    %c0_i32_0 = arith.constant 0 : i32
    %c0_i32_1 = arith.constant 0 : i32
    %c0_i32_2 = arith.constant 0 : i32
    return %c0_i32, %c0_i32_0, %c0_i32_1 : i32, i32, i32
  }
  func.func @transform_9(%arg0: i32) -> (i32, i32, i32) {
    %c0_i32 = arith.constant 0 : i32
    %c0_i32_0 = arith.constant 0 : i32
    %c0_i32_1 = arith.constant 0 : i32
    %c0_i32_2 = arith.constant 0 : i32
    return %c0_i32, %c0_i32_0, %c0_i32_1 : i32, i32, i32
  }
  func.func @transform_10(%arg0: i32) -> (i32, i32, i32) {
    %c0_i32 = arith.constant 0 : i32
    %c0_i32_0 = arith.constant 0 : i32
    %c0_i32_1 = arith.constant 0 : i32
    %c0_i32_2 = arith.constant 0 : i32
    return %c0_i32, %c0_i32_0, %c0_i32_1 : i32, i32, i32
  }
  func.func @transform_11(%arg0: i32) -> (i32, i32, i32) {
    %c0_i32 = arith.constant 0 : i32
    %c0_i32_0 = arith.constant 0 : i32
    %c0_i32_1 = arith.constant 0 : i32
    %c0_i32_2 = arith.constant 0 : i32
    return %c0_i32, %c0_i32_0, %c0_i32_1 : i32, i32, i32
  }
  func.func @transform_12(%arg0: i32) -> (i32, i32, i32) {
    %c0_i32 = arith.constant 0 : i32
    %c0_i32_0 = arith.constant 0 : i32
    %c0_i32_1 = arith.constant 0 : i32
    %c0_i32_2 = arith.constant 0 : i32
    return %c0_i32, %c0_i32_0, %c0_i32_1 : i32, i32, i32
  }
  func.func @transform_13(%arg0: i32) -> (i32, i32, i32) {
    %c0_i32 = arith.constant 0 : i32
    %c0_i32_0 = arith.constant 0 : i32
    %c0_i32_1 = arith.constant 0 : i32
    %c0_i32_2 = arith.constant 0 : i32
    return %c0_i32, %c0_i32_0, %c0_i32_1 : i32, i32, i32
  }
  func.func @transform_14(%arg0: i32) -> (i32, i32, i32) {
    %c0_i32 = arith.constant 0 : i32
    %c0_i32_0 = arith.constant 0 : i32
    %c0_i32_1 = arith.constant 0 : i32
    %c0_i32_2 = arith.constant 0 : i32
    return %c0_i32, %c0_i32_0, %c0_i32_1 : i32, i32, i32
  }
  func.func @transform_15(%arg0: i32) -> (i32, i32, i32) {
    %c0_i32 = arith.constant 0 : i32
    %c0_i32_0 = arith.constant 0 : i32
    %c0_i32_1 = arith.constant 0 : i32
    %c0_i32_2 = arith.constant 0 : i32
    return %c0_i32, %c0_i32_0, %c0_i32_1 : i32, i32, i32
  }
  func.func @transform_16(%arg0: i32) -> (i32, i32) {
    %c0_i32 = arith.constant 0 : i32
    %c0_i32_0 = arith.constant 0 : i32
    %c0_i32_1 = arith.constant 0 : i32
    return %c0_i32, %c0_i32_0 : i32, i32
  }
  func.func @transform_17(%arg0: i32) -> (i32, i32) {
    %c0_i32 = arith.constant 0 : i32
    %c0_i32_0 = arith.constant 0 : i32
    %c0_i32_1 = arith.constant 0 : i32
    return %c0_i32, %c0_i32_0 : i32, i32
  }
  func.func @transform_18(%arg0: i32) -> (i32, i32, i32) {
    %c0_i32 = arith.constant 0 : i32
    %c0_i32_0 = arith.constant 0 : i32
    %c0_i32_1 = arith.constant 0 : i32
    return %arg0, %c0_i32, %c0_i32_0 : i32, i32, i32
  }
}

</mosaic_0001>

<bundles_post_ra>
// kernel: transformer_forward.1
= control target key start
LH: loop header
LB: loop body
LE: loop exit
PB: predicated region body
PF: predicated region fallthrough
CT: control target
= control target key end

     0   :  { %s9111_s29 = smov 0   ;;  %s11260_s0 = inlined_call_operand.vmem [shape: f32[4,8,1], index: 0, kind: input, shape index: {}]   ;;  %s11261_s1 = inlined_call_operand.vmem [shape: f32[8,64], index: 1, kind: input, shape index: {}]   ;;  %s11262_s2 = inlined_call_operand.vmem [shape: f32[1,64], index: 2, kind: input, shape index: {}]   ;;  %s11263_s3 = inlined_call_operand.vmem [shape: f32[1,64], index: 3, kind: input, shape index: {}]   ;;  %s11264_s4 = inlined_call_operand.vmem [shape: bf16[2,64,192], index: 4, kind: input, shape index: {}]   ;;  %s11265_s5 = inlined_call_operand.vmem [shape: f32[2,1,192], index: 5, kind: input, shape index: {}]   ;;  %s11266_s6 = inlined_call_operand.vmem [shape: bf16[2,64,64], index: 6, kind: input, shape index: {}]   ;;  %s11267_s7 = inlined_call_operand.vmem [shape: f32[2,1,64], index: 7, kind: input, shape index: {}]   ;;  %s11268_s8 = inlined_call_operand.vmem [shape: f32[2,1,64], index: 8, kind: input, shape index: {}]   ;;  %s11269_s9 = inlined_call_operand.vmem [shape: f32[2,1,64], index: 9, kind: input, shape index: {}]   ;;  %s11270_s10 = inlined_call_operand.vmem [shape: bf16[2,64,2048], index: 10, kind: input, shape index: {}]   ;;  %s11271_s11 = inlined_call_operand.vmem [shape: f32[2,1,2048], index: 11, kind: input, shape index: {}]   ;;  %s11272_s12 = inlined_call_operand.vmem [shape: bf16[2,2048,64], index: 12, kind: input, shape index: {}]   ;;  %s11273_s13 = inlined_call_operand.vmem [shape: f32[2,1,64], index: 13, kind: input, shape index: {}]   ;;  %s11274_s14 = inlined_call_operand.vmem [shape: f32[2,1,64], index: 14, kind: input, shape index: {}]   ;;  %s11275_s15 = inlined_call_operand.vmem [shape: f32[2,1,64], index: 15, kind: input, shape index: {}]   ;;  %s11276_s16 = inlined_call_operand.vmem [shape: f32[1,64], index: 16, kind: input, shape index: {}]   ;;  %s11277_s17 = inlined_call_operand.<no memory space> [shape: f32[1,1], index: 17, kind: input, shape index: {}]   ;;  %s11278_s18 = inlined_call_operand.vmem [shape: f32[4,1,1], index: 18, kind: output, shape index: {}]  }
   0x1   :  { %11286 = sst [smem:[#allocation3_spill]] %s11260_s0  ;;  %v23_v0 = vstv %s11277_s17 }
   0x2   :  { %11287 = sst [smem:[#allocation4_spill]] %s11261_s1  ;;  %24 = vst [vmem:[#allocation2] sm:$0x1] %v23_v0 }
   0x3   :  { %11288 = sst [smem:[#allocation5_spill]] %s11262_s2 }
   0x4 LB: > { %s6286_s30 = sadd.s32 4294967295, %s9002_s29   ;;  %p6290_p0 = scmp.ge.s32.totalorder %s9002_s29, 1  ;;  %s9002_s29 = sphi %s9111_s29, %s30_s29  }
   0x5   : > { %p515_p1 = scmp.lt.s32.totalorder %s9002_s29, 3 }
   0x7   : > { %p516_p2 = pnand %p6290_p0, %p515_p1 }
   0x8   : > { %s6291_s0 = sshll.u32 (!%p516_p2), %s6286_s30, 1  ;;  %s11289_s20 = sld [smem:[#allocation3_spill]] (!%p516_p2) }
   0x9   : > { %519 = sbr.rel (%p516_p2) target bundleno = 4392 (0x1128), region = 92  ;;  %p569_p3 = scmp.lt.s32.totalorder (!%p516_p2), %s6291_s0, 3 }
   0xa   : > { %s11290_s27 = sld [smem:[#allocation5_spill]] (!%p516_p2)  ;;  %s11282_s22 = smov (!%p516_p2), 96  }
   0xb   : > { %s11291_s1 = sld [smem:[#allocation4_spill]] (!%p516_p2)  ;;  %s9006_s2 = smov (!%p516_p2), 112  }
   0xc   : > { %s9007_s23 = smov (!%p516_p2), 64   ;;  %s11284_s24 = smov (!%p516_p2), 80  }
   0xd   : > { %s11281_s25 = smov (!%p516_p2), 16   ;;  %s11279_s26 = smov (!%p516_p2), 48  }
   0xe   : > { %v9004_v1 = vmov 0   ;;  %s11298_s0 = smov (!%p569_p3, %s6291_s0), 3  ;;  %v6321_v4 = vld [vmem:[%s11264_s4 + $0x30] sm:$0xf]  ;;  %v8352_v5 = vld [vmem:[%s11264_s4 + $0x34] sm:$0xf0] }
   0xf   : > { %8771 = vset.pattern.permute.xlu0 %v9004_v1  ;;  %s6292_s17 = sshll.u32 %s11298_s0, 3  ;;  %v8351_v6 = vld [vmem:[%s11264_s4 + $0x34] sm:$0xf]  ;;  %v6322_v7 = vor.u32 %v8352_v5, %v6321_v4  ;;  %v6323_v8 = vld [vmem:[%s11264_s4 + $0x38] sm:$0xf0]  ;;  %vm663_vm0 = vcmask 523264  }
  0x10   : > { %s572_s21 = scalar_lea.vmem %s11289_s20, %s6292_s17  ;;  %v6326_v9 = vor.u32 %v8351_v6, %v6323_v8  ;;  %v6313_v10 = vld [vmem:[%s11264_s4 + $0x20] sm:$0xf]  ;;  %v8350_v11 = vld [vmem:[%s11264_s4 + $0x24] sm:$0xf0]  ;;  %v8349_v12 = vld [vmem:[%s11264_s4 + $0x24] sm:$0xf] }
  0x11   : > { %v580_v2 = vld [vmem:[%s572_s21] sm:$0xff]  ;;  %v6294_v3 = vld [vmem:[%s572_s21 + $0x8] sm:$0xff]  ;;  %671 = vmatpush.bf16.msra.mxu0 %v6322_v7  ;;  %v6314_v13 = vor.u32 %v8350_v11, %v6313_v10  ;;  %v6305_v16 = vld [vmem:[%s11264_s4 + $0x10] sm:$0xf]  ;;  %vm778_vm1 = vcmask 1043456   ;;  %vm747_vm2 = vcmask 130048  }
  0x12   : > { %584 = vperm.xlu0 %8771, %v580_v2   ;;  %685 = vmatpush.bf16.msra.mxu1 %v6326_v9  ;;  %v6315_v14 = vld [vmem:[%s11264_s4 + $0x28] sm:$0xf0]  ;;  %v8348_v17 = vld [vmem:[%s11264_s4 + $0x14] sm:$0xf0]  ;;  %v8347_v18 = vld [vmem:[%s11264_s4 + $0x14] sm:$0xf] }
  0x13   : > { %v6318_v15 = vor.u32 %v8349_v12, %v6315_v14  ;;  %v6306_v19 = vor.u32 %v8348_v17, %v6305_v16  ;;  %v6307_v20 = vld [vmem:[%s11264_s4 + $0x18] sm:$0xf0]  ;;  %v6297_v22 = vld [vmem:[%s11264_s4] sm:$0xf]  ;;  %v8346_v23 = vld [vmem:[%s11264_s4 + $0x4] sm:$0xf0] }
  0x14   : > { %v6310_v21 = vor.u32 %v8347_v18, %v6307_v20  ;;  %v8345_v24 = vld [vmem:[%s11264_s4 + $0x4] sm:$0xf]  ;;  %v6298_v25 = vor.u32 %v8346_v23, %v6297_v22  ;;  %v6299_v26 = vld [vmem:[%s11264_s4 + $0x8] sm:$0xf0]  ;;  %v8896_v29 = vld [vmem:[%s11290_s27] ss:$0 sm:$0xff] }
  0x15   : > { %672 = vmatpush.bf16.msra.mxu0 %v6314_v13  ;;  %v6302_v27 = vor.u32 %v8345_v24, %v6299_v26  ;;  %v8897_v30 = vld [vmem:[%s11263_s3] ss:$0 sm:$0xff]  ;;  %vm764_vm3 = vcmask 64512   ;;  %s11280_s27 = smov 32   ;;  %vm987_vm4 = vcmask 261120   ;;  %vm989_vm5 = vcmask 392192  }
  0x16   : > { %686 = vmatpush.bf16.msra.mxu1 %v6318_v15  ;;  %v596_v35 = vld [vmem:[%s11291_s1] sm:$0xff]  ;;  %s11292_s28 = smov 80   ;;  %s11293_s30 = smov 96  }
  0x17   : > { %v617_v40 = vld [vmem:[%s11265_s5] sm:$0x3]  ;;  %s11296_s17 = smov 48  }
  0x18   : > { %v619_v41 = vperm.slane %v617_v40, 0  ;;  %v620_v42 = vperm.slane %v617_v40, 1 }
  0x19   : > { %673 = vmatpush.bf16.msra.mxu0 %v6306_v19 }
  0x1a   : > { %602 = vperm.xlu0 %8771, %v6294_v3   ;;  %687 = vmatpush.bf16.msra.mxu1 %v6310_v21 }
  0x1d   : > { %674 = vmatpush.bf16.msra.mxu0 %v6298_v25 }
  0x1e   : > { %688 = vmatpush.bf16.msra.mxu1 %v6302_v27 }
  0x84   : > { %v585_v28 = vpop.permute.xlu0 %584 }
  0x85   : > { %v590_v31 = vmul.f32 %v8896_v29, %v585_v28 }
  0x87   : > { %v595_v33 = vadd.f32 %v8897_v30, %v590_v31 }
  0x89   : > { %v9182_v37 = vadd.f32 %v596_v35, %v595_v33 }
  0x8c   : > { %v603_v32 = vpop.permute.xlu0 %602 }
  0x8d   : > { %v605_v34 = vmul.f32 %v8896_v29, %v603_v32 }
  0x8f   : > { %v606_v36 = vadd.f32 %v8897_v30, %v605_v34 }
  0x91   : > { %v9184_v38 = vadd.f32 %v606_v36, %v596_v35 }
  0x93   : > { %v608_v39 = vpack.c.bf16 %v9184_v38, %v9182_v37 }
  0x95   : > { %6327 = vmatmul.msk.bf16.vlgmr.msra.gmra.mxu0 %vm663_vm0, %v608_v39  ;;  %6328 = vmatmul.msk.bf16.vlgmr.msra.gmra.mxu1 %vm663_vm0, %v608_v39 }
 0x112   : > { %v676_v43 = vpop.f32.mrf.mxu0  ;;  %v690_v44 = vpop.f32.mrf.mxu1 }
 0x113   : > { %v677_v45 = vadd.f32 %v676_v43, %v619_v41  ;;  %v691_v46 = vadd.f32 %v690_v44, %v620_v42 }
 0x115   : > { %v695_v47 = vpack.c.bf16 %v677_v45, %v677_v45  ;;  %v740_v48 = vpack.c.bf16 %v691_v46, %v691_v46 }
 0x117   : > { %v780_v49 = vsel %vm778_vm1, %v740_v48, 0  ;;  %v798_v50 = vunpack.c.l.b16 %v695_v47  ;;  %v835_v58 = vunpack.c.l.b16 %v740_v48 }
 0x118   : > { %789 = vmatpush.bf16.msra.mxu3 %v780_v49 }
 0x119   : > { %v799_v51 = vpack.c.b16 %v798_v50, %v798_v50  ;;  %v836_v59 = vpack.c.b16 %v835_v58, %v835_v58 }
 0x11a   : > { %v678_v52 = vpop.f32.mrf.mxu0  ;;  %v692_v62 = vpop.f32.mrf.mxu1 }
 0x11b   : > { %v679_v53 = vadd.f32 %v678_v52, %v619_v41  ;;  %860 = vrot.lane.b32.xlu0 %v799_v51, %s11282_s22  ;;  %800 = vrot.lane.b32.xlu2 %v799_v51, %s9006_s2  ;;  %v693_v0 = vadd.f32 %v692_v62, %v620_v42 }
 0x11d   : > { %v9196_v54 = vpack.c.bf16 %v679_v53, %v679_v53  ;;  %v8772_v55 = vpack.i.bf16 %v679_v53, %v677_v45  ;;  %v9210_v1 = vpack.c.bf16 %v693_v0, %v693_v0 }
 0x11f   : > { %8773 = vrot.lane.b32.xlu1 %v8772_v55, %s9007_s23  ;;  %v1091_v56 = vunpack.c.l.b16 %v9196_v54  ;;  %v1073_v4 = vsel %vm778_vm1, %v9210_v1, 0 }
 0x121   : > { %v1092_v57 = vpack.c.b16 %v1091_v56, %v1091_v56 }
 0x123   : > { %1210 = vrot.lane.b32.xlu0 %v1092_v57, %s11284_s24  ;;  %917 = vrot.lane.b32.xlu2 %v799_v51, %s11284_s24 }
 0x12b   : > { %894 = vrot.lane.b32.xlu0 %v836_v59, %s11282_s22  ;;  %1093 = vrot.lane.b32.xlu2 %v1092_v57, %s9006_s2 }
 0x133   : > { %1153 = vrot.lane.b32.xlu2 %v1092_v57, %s11282_s22 }
 0x13b   : > { %951 = vrot.lane.b32.xlu2 %v836_v59, %s11284_s24 }
 0x175   : > { %v801_v24 = vpop.permute.xlu2 %800 }
 0x18d   : > { %v9206_v60 = vpop.permute.xlu0 %860 }
 0x191   : > { %v8774_v61 = vpop.permute.xlu1 %8773 }
 0x192   : > { %8778 = vxpose.xlu1.b32.start.end [1/1] (short) (narrow) %v8774_v61, 64 }
 0x195   : > { %v9208_v63 = vpop.permute.xlu0 %1210 }
 0x19d   : > { %v895_v2 = vpop.permute.xlu0 %894 }
 0x19e   : > { %v900_v3 = vsel %vm778_vm1, %v895_v2, 0 }
 0x19f   : > { %909 = vmatpush.bf16.msrb.mxu1 %v900_v3 }
 0x1a3   : > { %1082 = vmatpush.bf16.msra.mxu1 %v1073_v4 }
 0x224   : > { %837 = vrot.lane.b32.xlu1 %v836_v59, %s9006_s2 }
 0x236   : > { %v8779_v5 = vpop.trf.xlu1 }
 0x237   : > { %v8780_v6 = vunpack.i.l.bf16 %v8779_v5  ;;  %v8783_v27 = vunpack.i.h.bf16 %v8779_v5 }
 0x239   : > { %v732_v9 = vpack.c.bf16 %v8780_v6, %v8780_v6  ;;  %v1028_v34 = vpack.c.bf16 %v8783_v27, %v8783_v27 }
 0x23b   : > { %v743_v12 = vunpack.c.l.b16 %v732_v9  ;;  %v1039_v43 = vunpack.c.l.b16 %v1028_v34 }
 0x23e   : > { %v8784_v7 = vpop.trf.xlu1 }
 0x23f   : > { %v8785_v8 = vunpack.i.l.bf16 %v8784_v7  ;;  %v8788_v25 = vunpack.i.h.bf16 %v8784_v7  ;;  %v918_v7 = vpop.permute.xlu2 %917 }
 0x241   : > { %v733_v10 = vpack.c.bf16 %v8785_v8, %v8785_v8  ;;  %v1029_v28 = vpack.c.bf16 %v8788_v25, %v8788_v25 }
 0x243   : > { %v744_v11 = vunpack.c.l.b16 %v733_v10  ;;  %v1040_v39 = vunpack.c.l.b16 %v1029_v28 }
 0x245   : > { %v745_v13 = vpack.c.b16 %v744_v11, %v743_v12 }
 0x246   : > { %v8789_v14 = vpop.trf.xlu1 }
 0x247   : > { %758 = vmatpush.bf16.msra.mxu2 %v745_v13  ;;  %v8790_v15 = vunpack.i.l.bf16 %v8789_v14  ;;  %v8793_v52 = vunpack.i.h.bf16 %v8789_v14  ;;  %v1094_v12 = vpop.permute.xlu2 %1093 }
 0x249   : > { %v734_v18 = vpack.c.bf16 %v8790_v15, %v8790_v15  ;;  %v1030_v61 = vpack.c.bf16 %v8793_v52, %v8793_v52 }
 0x24a   : > { %6329 = vmatmul.msk.bf16.vlgmr.msra.gmra.mxu2 %vm747_vm2, %v695_v47  ;;  %v1041_v47 = vpack.c.b16 %v1040_v39, %v1039_v43 }
 0x24b   : > { %v804_v21 = vunpack.c.l.b16 %v734_v18  ;;  %v1097_v6 = vunpack.c.l.b16 %v1030_v61  ;;  %v1128_v18 = vunpack.c.l.b16 %v9210_v1 }
 0x24e   : > { %v8794_v16 = vpop.trf.xlu1 }
 0x24f   : > { %v8795_v17 = vunpack.i.l.bf16 %v8794_v16  ;;  %v8798_v50 = vunpack.i.h.bf16 %v8794_v16  ;;  %v1154_v13 = vpop.permute.xlu2 %1153 }
 0x251   : > { %v735_v19 = vpack.c.bf16 %v8795_v17, %v8795_v17  ;;  %v1031_v53 = vpack.c.bf16 %v8798_v50, %v8798_v50 }
 0x253   : > { %v805_v20 = vunpack.c.l.b16 %v735_v19  ;;  %v1098_v2 = vunpack.c.l.b16 %v1031_v53 }
 0x255   : > { %v806_v22 = vpack.c.b16 %v805_v20, %v804_v21  ;;  %v1129_v21 = vpack.c.b16 %v1128_v18, %v1128_v18 }
 0x256   : > { %v8799_v23 = vpop.trf.xlu1 }
 0x257   : > { %818 = vmatpush.bf16.msrb.mxu2 %v806_v22  ;;  %v8800_v26 = vunpack.i.l.bf16 %v8799_v23  ;;  %v8803_v29 = vunpack.i.h.bf16 %v8799_v23 }
 0x259   : > { %v736_v31 = vpack.c.bf16 %v8800_v26, %v8800_v26  ;;  %v1032_v40 = vpack.c.bf16 %v8803_v29, %v8803_v29 }
 0x25a   : > { %6331 = vmatmul.msk.bf16.vlgmr.msrb.gmra.mxu2 %vm747_vm2, %v801_v24 }
 0x25b   : > { %v864_v42 = vunpack.c.l.b16 %v736_v31  ;;  %v1157_v48 = vunpack.c.l.b16 %v1032_v40 }
 0x25e   : > { %v8804_v30 = vpop.trf.xlu1 }
 0x25f   : > { %v8808_v32 = vunpack.i.h.bf16 %v8804_v30  ;;  %v8805_v33 = vunpack.i.l.bf16 %v8804_v30 }
 0x261   : > { %v1033_v35 = vpack.c.bf16 %v8808_v32, %v8808_v32  ;;  %v737_v36 = vpack.c.bf16 %v8805_v33, %v8805_v33 }
 0x263   : > { %v865_v41 = vunpack.c.l.b16 %v737_v36  ;;  %v1158_v44 = vunpack.c.l.b16 %v1033_v35 }
 0x265   : > { %v866_v45 = vpack.c.b16 %v865_v41, %v864_v42  ;;  %v1159_v49 = vpack.c.b16 %v1158_v44, %v1157_v48  ;;  %v952_v44 = vpop.permute.xlu2 %951 }
 0x266   : > { %v8809_v46 = vpop.trf.xlu1 }
 0x267   : > { %878 = vmatpush.bf16.msrb.mxu0 %v866_v45  ;;  %v8810_v51 = vunpack.i.l.bf16 %v8809_v46  ;;  %v8813_v55 = vunpack.i.h.bf16 %v8809_v46 }
 0x269   : > { %v738_v56 = vpack.c.bf16 %v8810_v51, %v8810_v51  ;;  %v1034_v3 = vpack.c.bf16 %v8813_v55, %v8813_v55 }
 0x26a   : > { %6333 = vmatmul.msk.bf16.vlgmr.msrb.gmra.mxu0 %vm747_vm2, %v9206_v60  ;;  %v1099_v60 = vpack.c.b16 %v1098_v2, %v1097_v6 }
 0x26b   : > { %1053 = vmatpush.bf16.msra.mxu0 %v1041_v47  ;;  %v921_v4 = vunpack.c.l.b16 %v738_v56  ;;  %v1214_v10 = vunpack.c.l.b16 %v1034_v3  ;;  %v957_v47 = vsel %vm778_vm1, %v952_v44, 0 }
 0x26e   : > { %v8814_v57 = vpop.trf.xlu1 }
 0x26f   : > { %1171 = vmatpush.bf16.msrb.mxu0 %v1159_v49  ;;  %v8818_v58 = vunpack.i.h.bf16 %v8814_v57  ;;  %v8815_v59 = vunpack.i.l.bf16 %v8814_v57 }
 0x271   : > { %v1035_v62 = vpack.c.bf16 %v8818_v58, %v8818_v58  ;;  %v739_v0 = vpack.c.bf16 %v8815_v59, %v8815_v59 }
 0x273   : > { %v922_v5 = vunpack.c.l.b16 %v739_v0  ;;  %v1215_v8 = vunpack.c.l.b16 %v1035_v62 }
 0x275   : > { %v923_v9 = vpack.c.b16 %v922_v5, %v921_v4  ;;  %v1216_v11 = vpack.c.b16 %v1215_v8, %v1214_v10 }
 0x277   : > { %935 = vmatpush.bf16.msra.mxu2 %v923_v9 }
 0x27a   : > { %6335 = vmatmul.msk.bf16.vlgmr.msra.gmra.mxu2 %vm747_vm2, %v918_v7  ;;  %6337 = vmatmul.msk.bf16.vlgmr.msra.gmra.mxu0 %vm747_vm2, %v9196_v54 }
 0x27b   : > { %1111 = vmatpush.bf16.msrb.mxu2 %v1099_v60 }
 0x27f   : > { %1228 = vmatpush.bf16.msra.mxu2 %v1216_v11 }
 0x28a   : > { %6339 = vmatmul.msk.bf16.vlgmr.msrb.gmra.mxu2 %vm747_vm2, %v1094_v12  ;;  %6341 = vmatmul.msk.bf16.vlgmr.msrb.gmra.mxu0 %vm747_vm2, %v1154_v13 }
 0x296   : > { %v838_v14 = vpop.permute.xlu1 %837 }
 0x297   : > { %v843_v15 = vsel %vm778_vm1, %v838_v14, 0 }
 0x298   : > { %852 = vmatpush.bf16.msrb.mxu3 %v843_v15 }
 0x29a   : > { %6343 = vmatmul.msk.bf16.vlgmr.msra.gmra.mxu2 %vm747_vm2, %v9208_v63 }
 0x2cd   : > { %v760_v16 = vpop.f32.mrf.mxu2 }
 0x2ce   : > { %v765_v17 = vsel %vm764_vm3, %v760_v16, -inf }
 0x2cf   : > { %766 = vmax.xlane.f32.xlu0 %v765_v17 }
 0x2d5   : > { %v762_v54 = vpop.f32.mrf.mxu2 }
 0x2dd   : > { %v820_v19 = vpop.f32.mrf.mxu2 }
 0x2de   : > { %v824_v20 = vsel %vm764_vm3, %v820_v19, -inf }
 0x2df   : > { %825 = vmax.xlane.f32.xlu2 %v824_v20 }
 0x2e3   : > { %1130 = vrot.lane.b32.xlu0 %v1129_v21, %s9006_s2 }
 0x2e5   : > { %v822_v22 = vpop.f32.mrf.mxu2 }
 0x2e7   : > { %v9232_v23 = vpop.f32.mrf.mxu0 }
 0x2e8   : > { %v884_v31 = vsel %vm764_vm3, %v9232_v23, -inf }
 0x2ef   : > { %v882_v24 = vpop.f32.mrf.mxu0 }
 0x2f7   : > { %v9234_v63 = vpop.f32.mrf.mxu0 }
 0x2f8   : > { %v1059_v25 = vsel %vm764_vm3, %v9234_v63, -inf }
 0x2f9   : > { %1060 = vmax.xlane.f32.xlu2 %v1059_v25 }
 0x2fd   : > { %v937_v26 = vpop.f32.mrf.mxu2 }
 0x2fe   : > { %v941_v1 = vsel %vm764_vm3, %v937_v26, -inf }
 0x2ff   : > { %v1057_v27 = vpop.f32.mrf.mxu0 }
 0x301   : > { %942 = vmax.xlane.f32.xlu2 %v941_v1 }
 0x305   : > { %v939_v28 = vpop.f32.mrf.mxu2 }
 0x307   : > { %v1173_v29 = vpop.f32.mrf.mxu0 }
 0x308   : > { %v1177_v30 = vsel %vm764_vm3, %v1173_v29, -inf }
 0x309   : > { %1178 = vmax.xlane.f32.xlu2 %v1177_v30 }
 0x30d   : > { %885 = vmax.xlane.f32.xlu0 %v884_v31  ;;  %v1113_v32 = vpop.f32.mrf.mxu2 }
 0x30e   : > { %v1117_v34 = vsel %vm764_vm3, %v1113_v32, -inf }
 0x30f   : > { %v1175_v33 = vpop.f32.mrf.mxu0 }
 0x315   : > { %1118 = vmax.xlane.f32.xlu0 %v1117_v34  ;;  %v1115_v35 = vpop.f32.mrf.mxu2 }
 0x31d   : > { %v9243_v36 = vpop.f32.mrf.mxu2 }
 0x31e   : > { %v1234_v39 = vsel %vm764_vm3, %v9243_v36, -inf }
 0x31f   : > { %1235 = vmax.xlane.f32.xlu2 %v1234_v39 }
 0x325   : > { %v1232_v40 = vpop.f32.mrf.mxu2 }
 0x329   : > { %1187 = vrot.lane.b32.xlu0 %v1129_v21, %s11282_s22 }
 0x337   : > { %1244 = vrot.lane.b32.xlu2 %v1129_v21, %s11284_s24 }
 0x342   : > { %v767_v41 = vpop.xlane.xlu0 %766 }
 0x343   : > { %v768_v42 = vsub.f32 %v760_v16, %v767_v41 }
 0x345   : > { %v769_v43 = vmul.f32 1.442695, %v768_v42 }
 0x347   : > { %8914 = vpow2.f32 %v769_v43 }
 0x34d   : > { %v8915_v45 = vpop.eup %8914 }
 0x34e   : > { %v774_v46 = vpack.c.bf16 %v8915_v45, %v8915_v45  ;;  %v771_v54 = vsel %vm764_vm3, %v8915_v45, 0.0 }
 0x350   : > { %6330 = vmatmul.msk.bf16.vlgmr.msra.gmra.mxu3 %vm764_vm3, %v774_v46 }
 0x351   : > { %966 = vmatpush.bf16.msra.mxu3 %v957_v47 }
 0x352   : > { %v826_v48 = vpop.xlane.xlu2 %825 }
 0x353   : > { %v827_v49 = vsub.f32 %v820_v19, %v826_v48 }
 0x355   : > { %v828_v50 = vmul.f32 1.442695, %v827_v49  ;;  %v1131_v52 = vpop.permute.xlu0 %1130 }
 0x356   : > { %v1136_v56 = vsel %vm778_vm1, %v1131_v52, 0 }
 0x357   : > { %8916 = vpow2.f32 %v828_v50 }
 0x35d   : > { %v8917_v51 = vpop.eup %8916 }
 0x35e   : > { %v830_v53 = vsel %vm764_vm3, %v8917_v51, 0.0  ;;  %v833_v55 = vpack.c.bf16 %v8917_v51, %v8917_v51 }
 0x35f   : > { %831 = vadd.xlane.f32.xlu0 %v830_v53 }
 0x360   : > { %6332 = vmatmul.msk.bf16.vlgmr.msrb.gmra.mxu3 %vm764_vm3, %v833_v55 }
 0x361   : > { %1145 = vmatpush.bf16.msrb.mxu3 %v1136_v56 }
 0x36c   : > { %v1061_v57 = vpop.xlane.xlu2 %1060 }
 0x36d   : > { %v1062_v13 = vsub.f32 %v9234_v63, %v1061_v57 }
 0x36f   : > { %v1063_v17 = vmul.f32 1.442695, %v1062_v13  ;;  %v8354_v13 = vld [vmem:[%s11266_s6 + $0x8] sm:$0xff] }
 0x374   : > { %v943_v58 = vpop.xlane.xlu2 %942 }
 0x375   : > { %v944_v59 = vsub.f32 %v937_v26, %v943_v58 }
 0x377   : > { %v945_v61 = vmul.f32 1.442695, %v944_v59 }
 0x379   : > { %8918 = vpow2.f32 %v945_v61 }
 0x37c   : > { %v1179_v62 = vpop.xlane.xlu2 %1178 }
 0x37d   : > { %v1180_v0 = vsub.f32 %v1173_v29, %v1179_v62 }
 0x37f   : > { %v8919_v2 = vpop.eup %8918  ;;  %v1181_v3 = vmul.f32 1.442695, %v1180_v0 }
 0x380   : > { %v950_v4 = vpack.c.bf16 %v8919_v2, %v8919_v2  ;;  %v886_v5 = vpop.xlane.xlu0 %885  ;;  %v947_v6 = vsel %vm764_vm3, %v8919_v2, 0.0 }
 0x381   : > { %8920 = vpow2.f32 %v1181_v3  ;;  %v887_v7 = vsub.f32 %v9232_v23, %v886_v5  ;;  %948 = vadd.xlane.f32.xlu0 %v947_v6 }
 0x382   : > { %6336 = vmatmul.msk.bf16.vlgmr.msra.gmra.mxu3 %vm764_vm3, %v950_v4 }
 0x383   : > { %v888_v8 = vmul.f32 1.442695, %v887_v7 }
 0x385   : > { %8922 = vpow2.f32 %v888_v8 }
 0x387   : > { %v8921_v9 = vpop.eup %8920 }
 0x388   : > { %v1119_v60 = vpop.xlane.xlu0 %1118  ;;  %v1183_v10 = vsel %vm764_vm3, %v8921_v9, 0.0 }
 0x389   : > { %v1120_v11 = vsub.f32 %v1113_v32, %v1119_v60  ;;  %1184 = vadd.xlane.f32.xlu0 %v1183_v10  ;;  %v1186_v32 = vpack.c.bf16 %v8921_v9, %v8921_v9 }
 0x38b   : > { %v8923_v12 = vpop.eup %8922  ;;  %v1121_v14 = vmul.f32 1.442695, %v1120_v11  ;;  %v8356_v11 = vld [vmem:[%s11266_s6 + $0x18] sm:$0xff] }
 0x38c   : > { %v890_v15 = vsel %vm764_vm3, %v8923_v12, 0.0  ;;  %v893_v16 = vpack.c.bf16 %v8923_v12, %v8923_v12  ;;  %1326 = vmatpush.bf16.msra.mxu0 %v8356_v11  ;;  %v8355_v12 = vld [vmem:[%s11266_s6 + $0x10] sm:$0xff]  ;;  %v6492_v11 = vld [vmem:[%s11270_s10 + $0x100] sm:$0xf] }
 0x38d   : > { %8924 = vpow2.f32 %v1121_v14  ;;  %891 = vadd.xlane.f32.xlu1 %v890_v15  ;;  %v8353_v14 = vld [vmem:[%s11266_s6] sm:$0xff] }
 0x38e   : > { %6334 = vmatmul.msk.bf16.vlgmr.msrb.gmra.mxu1 %vm764_vm3, %v893_v16  ;;  %8926 = vpow2.f32 %v1063_v17 }
 0x390   : > { %1327 = vmatpush.bf16.msra.mxu0 %v8355_v12  ;;  %v8397_v12 = vld [vmem:[%s11270_s10 + $0x13c] sm:$0xf0] }
 0x391   : > { %772 = vadd.xlane.f32.xlu0 %v771_v54 }
 0x392   : > { %v1236_v18 = vpop.xlane.xlu2 %1235 }
 0x393   : > { %v8925_v19 = vpop.eup %8924  ;;  %v1237_v20 = vsub.f32 %v9243_v36, %v1236_v18 }
 0x394   : > { %v1126_v21 = vpack.c.bf16 %v8925_v19, %v8925_v19  ;;  %v1123_v22 = vsel %vm764_vm3, %v8925_v19, 0.0  ;;  %v8927_v24 = vpop.eup %8926  ;;  %1328 = vmatpush.bf16.msra.mxu0 %v8354_v13  ;;  %v8389_v13 = vld [vmem:[%s11270_s10 + $0x104] sm:$0xf] }
 0x395   : > { %v1238_v23 = vmul.f32 1.442695, %v1237_v20  ;;  %1124 = vadd.xlane.f32.xlu2 %v1123_v22  ;;  %v1068_v27 = vpack.c.bf16 %v8927_v24, %v8927_v24  ;;  %v1065_v31 = vsel %vm764_vm3, %v8927_v24, 0.0 }
 0x396   : > { %6340 = vmatmul.msk.bf16.vlgmr.msrb.gmra.mxu3 %vm764_vm3, %v1126_v21 }
 0x397   : > { %8928 = vpow2.f32 %v1238_v23 }
 0x398   : > { %1329 = vmatpush.bf16.msra.mxu0 %v8353_v14  ;;  %v6493_v14 = vor.u32 %v8397_v12, %v6492_v11  ;;  %v8392_v11 = vld [vmem:[%s11270_s10 + $0x11c] sm:$0xf] }
 0x39a   : > { %v1245_v63 = vpop.permute.xlu2 %1244 }
 0x39b   : > { %v1250_v25 = vsel %vm778_vm1, %v1245_v63, 0  ;;  %v1188_v26 = vpop.permute.xlu0 %1187 }
 0x39c   : > { %v1193_v1 = vsel %vm778_vm1, %v1188_v26, 0  ;;  %1259 = vmatpush.bf16.msra.mxu3 %v1250_v25 }
 0x39d   : > { %v8929_v28 = vpop.eup %8928  ;;  %1202 = vmatpush.bf16.msrb.mxu1 %v1193_v1 }
 0x39e   : > { %6338 = vmatmul.msk.bf16.vlgmr.msra.gmra.mxu1 %vm764_vm3, %v1068_v27  ;;  %v1240_v29 = vsel %vm764_vm3, %v8929_v28, 0.0  ;;  %v1243_v30 = vpack.c.bf16 %v8929_v28, %v8929_v28 }
 0x39f   : > { %1241 = vadd.xlane.f32.xlu2 %v1240_v29 }
 0x3a6   : > { %6344 = vmatmul.msk.bf16.vlgmr.msra.gmra.mxu3 %vm764_vm3, %v1243_v30 }
 0x3a7   : > { %1066 = vadd.xlane.f32.xlu2 %v1065_v31 }
 0x3ae   : > { %6342 = vmatmul.msk.bf16.vlgmr.msrb.gmra.mxu1 %vm764_vm3, %v1186_v32 }
 0x3d2   : > { %v832_v42 = vpop.xlane.xlu0 %831 }
 0x3d3   : > { %v9272_v33 = vpop.f32.mrf.mxu3  ;;  %8930 = vrcp.f32 %v832_v42 }
 0x3d9   : > { %v8931_v46 = vpop.eup %8930 }
 0x3db   : > { %v793_v34 = vpop.f32.mrf.mxu3 }
 0x3dc   : > { %v8898_v34 = vld [vmem:[%s11267_s7] ss:$0 sm:$0xff] }
 0x3e3   : > { %v854_v35 = vpop.f32.mrf.mxu3 }
 0x3e4   : > { %v859_v49 = vmul.f32 %v8931_v46, %v854_v35 }
 0x3eb   : > { %v856_v36 = vpop.f32.mrf.mxu3 }
 0x3f4   : > { %v949_v45 = vpop.xlane.xlu0 %948 }
 0x3fc   : > { %v1185_v55 = vpop.xlane.xlu0 %1184 }
 0x400   : > { %v892_v57 = vpop.xlane.xlu1 %891 }
 0x404   : > { %v773_v15 = vpop.xlane.xlu0 %772 }
 0x405   : > { %v968_v39 = vpop.f32.mrf.mxu3 }
 0x408   : > { %v1125_v43 = vpop.xlane.xlu2 %1124 }
 0x409   : > { %8932 = vrcp.f32 %v1125_v43 }
 0x40a   : > { %8934 = vrcp.f32 %v949_v45  ;;  %v9012_v45 = vmov 64.0  }
 0x40b   : > { %v911_v40 = vpop.f32.mrf.mxu1 }
 0x40d   : > { %v970_v41 = vpop.f32.mrf.mxu3 }
 0x40f   : > { %v8933_v47 = vpop.eup %8932 }
 0x410   : > { %v8935_v59 = vpop.eup %8934 }
 0x411   : > { %v973_v2 = vmul.f32 %v8935_v59, %v968_v39 }
 0x412   : > { %v1242_v53 = vpop.xlane.xlu2 %1241 }
 0x413   : > { %v913_v44 = vpop.f32.mrf.mxu1  ;;  %8936 = vrcp.f32 %v1242_v53 }
 0x414   : > { %8938 = vrcp.f32 %v1185_v55 }
 0x415   : > { %8940 = vrcp.f32 %v892_v57 }
 0x416   : > { %8942 = vrcp.f32 %v773_v15  ;;  %v6494_v15 = vld [vmem:[%s11270_s10 + $0x140] sm:$0xf0] }
 0x419   : > { %v1147_v48 = vpop.f32.mrf.mxu3  ;;  %v8937_v61 = vpop.eup %8936 }
 0x41a   : > { %v1152_v50 = vmul.f32 %v8933_v47, %v1147_v48  ;;  %v8939_v0 = vpop.eup %8938  ;;  %v1067_v16 = vpop.xlane.xlu2 %1066 }
 0x41b   : > { %v1084_v51 = vpop.f32.mrf.mxu1  ;;  %v8941_v4 = vpop.eup %8940  ;;  %8944 = vrcp.f32 %v1067_v16  ;;  %v6500_v16 = vld [vmem:[%s11270_s10 + $0x108] sm:$0xf] }
 0x41c   : > { %v8819_v52 = vpack.i.bf16 %v1152_v50, %v859_v49  ;;  %v916_v6 = vmul.f32 %v8941_v4, %v911_v40  ;;  %v8943_v54 = vpop.eup %8942  ;;  %8946 = vrcp.f32 %v9012_v45  ;;  %v6558_v4 = vld [vmem:[%s11270_s10 + $0x1c0] sm:$0xf0]  ;;  %v8358_v45 = vld [vmem:[%s11270_s10 + $0xc] sm:$0xf] }
 0x41d   : > { %v796_v21 = vmul.f32 %v8943_v54, %v9272_v33  ;;  %v6497_v54 = vor.u32 %v8389_v13, %v6494_v15  ;;  %v6518_v15 = vld [vmem:[%s11270_s10 + $0x158] sm:$0xf0] }
 0x41e   : > { %8820 = vrot.lane.b32.xlu0 %v8819_v52, %s11281_s25 }
 0x421   : > { %v1149_v56 = vpop.f32.mrf.mxu3  ;;  %v8945_v18 = vpop.eup %8944 }
 0x422   : > { %v1089_v22 = vmul.f32 %v8945_v18, %v1084_v51  ;;  %v8947_v46 = vpop.eup %8946 }
 0x423   : > { %v1086_v58 = vpop.f32.mrf.mxu1  ;;  %v1347_v47 = vmul.f32 64.0, %v8947_v46  ;;  %vm1351_vm6 = vweird.f32 %v8947_v46 }
 0x425   : > { %v1348_v48 = vsub.f32 1.0, %v1347_v47 }
 0x427   : > { %v1349_v49 = vmul.f32 %v8947_v46, %v1348_v48 }
 0x429   : > { %v1261_v62 = vpop.f32.mrf.mxu3  ;;  %v1350_v50 = vadd.f32 %v8947_v46, %v1349_v49  ;;  %v6572_v49 = vld [vmem:[%s11270_s10 + $0x190] sm:$0xf] }
 0x42a   : > { %v1266_v3 = vmul.f32 %v8937_v61, %v1261_v62  ;;  %v6556_v62 = vld [vmem:[%s11270_s10 + $0x180] sm:$0xf] }
 0x42b   : > { %v1204_v5 = vpop.f32.mrf.mxu1  ;;  %v9304_v51 = vsel %vm1351_vm6, %v8947_v46, %v1350_v50  ;;  %v6374_v46 = vld [vmem:[%s11270_s10 + $0x48] sm:$0xf0]  ;;  %v8415_v50 = vld [vmem:[%s11270_s10 + $0x1cc] sm:$0xf0] }
 0x42c   : > { %v8829_v7 = vpack.i.bf16 %v1266_v3, %v973_v2  ;;  %v1209_v8 = vmul.f32 %v8939_v0, %v1204_v5  ;;  %v8413_v0 = vld [vmem:[%s11270_s10 + $0x1bc] sm:$0xf0]  ;;  %v8405_v2 = vld [vmem:[%s11270_s10 + $0x184] sm:$0xf]  ;;  %v6564_v5 = vld [vmem:[%s11270_s10 + $0x188] sm:$0xf]  ;;  %v6377_v48 = vor.u32 %v8358_v45, %v6374_v46 }
 0x42d   : > { %v6557_v3 = vor.u32 %v8413_v0, %v6556_v62  ;;  %v8408_v62 = vld [vmem:[%s11270_s10 + $0x19c] sm:$0xf] }
 0x42e   : > { %v8824_v9 = vpack.i.bf16 %v1209_v8, %v916_v6  ;;  %8830 = vrot.lane.b32.xlu1 %v8829_v7, %s11279_s26  ;;  %v8414_v6 = vld [vmem:[%s11270_s10 + $0x1c4] sm:$0xf0]  ;;  %v6561_v7 = vor.u32 %v8405_v2, %v6558_v4  ;;  %v6582_v0 = vld [vmem:[%s11270_s10 + $0x1d8] sm:$0xf0]  ;;  %v6508_v2 = vld [vmem:[%s11270_s10 + $0x110] sm:$0xf] }
 0x42f   : > { %v6565_v8 = vor.u32 %v8414_v6, %v6564_v5  ;;  %1829 = vmatpush.bf16.msra.mxu1 %v6557_v3  ;;  %v6585_v4 = vor.u32 %v8408_v62, %v6582_v0  ;;  %v8399_v5 = vld [vmem:[%s11270_s10 + $0x14c] sm:$0xf0]  ;;  %v8391_v6 = vld [vmem:[%s11270_s10 + $0x114] sm:$0xf]  ;;  %v6588_v62 = vld [vmem:[%s11270_s10 + $0x1a0] sm:$0xf] }
 0x430   : > { %8825 = vrot.lane.b32.xlu2 %v8824_v9, %s11280_s27  ;;  %v8406_v9 = vld [vmem:[%s11270_s10 + $0x18c] sm:$0xf]  ;;  %1843 = vmatpush.bf16.msrb.mxu2 %v6561_v7  ;;  %v6510_v7 = vld [vmem:[%s11270_s10 + $0x150] sm:$0xf0]  ;;  %v8409_v0 = vld [vmem:[%s11270_s10 + $0x1a4] sm:$0xf] }
 0x431   : > { %v1263_v60 = vpop.f32.mrf.mxu3  ;;  %1857 = vmatpush.bf16.msrb.mxu3 %v6565_v8  ;;  %v6509_v8 = vor.u32 %v8399_v5, %v6508_v2  ;;  %v6590_v2 = vld [vmem:[%s11270_s10 + $0x1e0] sm:$0xf0]  ;;  %v8418_v5 = vld [vmem:[%s11270_s10 + $0x1e4] sm:$0xf0] }
 0x432   : > { %v6566_v60 = vld [vmem:[%s11270_s10 + $0x1c8] sm:$0xf0] }
 0x433   : > { %v1206_v10 = vpop.f32.mrf.mxu1  ;;  %1830 = vmatpush.bf16.msra.mxu1 %v6493_v14 }
 0x434   : > { %v6569_v10 = vor.u32 %v8406_v9, %v6566_v60  ;;  %1844 = vmatpush.bf16.msrb.mxu2 %v6497_v54  ;;  %v6513_v9 = vor.u32 %v8391_v6, %v6510_v7  ;;  %v6516_v60 = vld [vmem:[%s11270_s10 + $0x118] sm:$0xf]  ;;  %v6521_v54 = vor.u32 %v8392_v11, %v6518_v15  ;;  %v8410_v6 = vld [vmem:[%s11270_s10 + $0x1ac] sm:$0xf]  ;;  %v8401_v11 = vld [vmem:[%s11270_s10 + $0x15c] sm:$0xf0] }
 0x435   : > { %v6598_v7 = vld [vmem:[%s11270_s10 + $0x1e8] sm:$0xf0]  ;;  %v6526_v15 = vld [vmem:[%s11270_s10 + $0x160] sm:$0xf0] }
 0x436   : > { %1871 = vmatpush.bf16.msrb.mxu0 %v6569_v10  ;;  %v8400_v10 = vld [vmem:[%s11270_s10 + $0x154] sm:$0xf0] }
 0x437   : > { %v6517_v14 = vor.u32 %v8400_v10, %v6516_v60  ;;  %v6593_v60 = vor.u32 %v8409_v0, %v6590_v2  ;;  %v6524_v10 = vld [vmem:[%s11270_s10 + $0x120] sm:$0xf]  ;;  %v8395_v0 = vld [vmem:[%s11270_s10 + $0x134] sm:$0xf] }
 0x438   : > { %v6542_v2 = vld [vmem:[%s11270_s10 + $0x170] sm:$0xf0] }
 0x48a   : > { %v8826_v23 = vpop.permute.xlu2 %8825 }
 0x48b   : > { %v8828_v25 = vunpack.i.h.bf16 %v8826_v23  ;;  %v8827_v26 = vunpack.i.l.bf16 %v8826_v23  ;;  %v8381_v23 = vld [vmem:[%s11270_s10 + $0xbc] sm:$0xf0] }
 0x490   : > { %v8821_v17 = vpop.permute.xlu0 %8820 }
 0x491   : > { %v8823_v19 = vunpack.i.h.bf16 %v8821_v17  ;;  %v8822_v20 = vunpack.i.l.bf16 %v8821_v17  ;;  %v8398_v17 = vld [vmem:[%s11270_s10 + $0x144] sm:$0xf0] }
 0x492   : > { %v6501_v18 = vor.u32 %v8398_v17, %v6500_v16  ;;  %v6444_v16 = vld [vmem:[%s11270_s10 + $0x90] sm:$0xf] }
 0x493   : > { %v986_v24 = vsel %vm747_vm2, %v796_v21, %v8822_v20  ;;  %v1279_v63 = vsel %vm747_vm2, %v1089_v22, %v8823_v19  ;;  %v8390_v19 = vld [vmem:[%s11270_s10 + $0x10c] sm:$0xf]  ;;  %v6428_v22 = vld [vmem:[%s11270_s10 + $0x80] sm:$0xf] }
 0x494   : > { %v988_v29 = vsel %vm987_vm4, %v986_v24, %v8827_v26  ;;  %v1280_v30 = vsel %vm987_vm4, %v1279_v63, %v8828_v25  ;;  %v6502_v20 = vld [vmem:[%s11270_s10 + $0x148] sm:$0xf0]  ;;  %1858 = vmatpush.bf16.msrb.mxu3 %v6501_v18  ;;  %v8373_v24 = vld [vmem:[%s11270_s10 + $0x84] sm:$0xf]  ;;  %v6429_v63 = vor.u32 %v8381_v23, %v6428_v22  ;;  %v6436_v26 = vld [vmem:[%s11270_s10 + $0x88] sm:$0xf] }
 0x495   : > { %v6505_v21 = vor.u32 %v8390_v19, %v6502_v20  ;;  %v6430_v25 = vld [vmem:[%s11270_s10 + $0xc0] sm:$0xf0]  ;;  %v8383_v18 = vld [vmem:[%s11270_s10 + $0xcc] sm:$0xf0]  ;;  %v8375_v19 = vld [vmem:[%s11270_s10 + $0x94] sm:$0xf] }
 0x496   : > { %1831 = vmatpush.bf16.msra.mxu1 %v6429_v63  ;;  %v6446_v20 = vld [vmem:[%s11270_s10 + $0xd0] sm:$0xf0]  ;;  %v6452_v22 = vld [vmem:[%s11270_s10 + $0x98] sm:$0xf] }
 0x497   : > { %1872 = vmatpush.bf16.msrb.mxu0 %v6505_v21  ;;  %v6445_v21 = vor.u32 %v8383_v18, %v6444_v16  ;;  %v8384_v23 = vld [vmem:[%s11270_s10 + $0xd4] sm:$0xf0]  ;;  %v6449_v63 = vor.u32 %v8375_v19, %v6446_v20  ;;  %v6532_v16 = vld [vmem:[%s11270_s10 + $0x128] sm:$0xf]  ;;  %v6534_v18 = vld [vmem:[%s11270_s10 + $0x168] sm:$0xf0]  ;;  %v6525_v19 = vor.u32 %v8401_v11, %v6524_v10 }
 0x498   : > { %v6476_v10 = vld [vmem:[%s11270_s10 + $0xb0] sm:$0xf] }
 0x499   : > { %v8387_v11 = vld [vmem:[%s11270_s10 + $0xec] sm:$0xf0] }
 0x4a0   : > { %v8831_v27 = vpop.permute.xlu1 %8830 }
 0x4a1   : > { %v8833_v1 = vunpack.i.h.bf16 %v8831_v27  ;;  %v8832_v28 = vunpack.i.l.bf16 %v8831_v27  ;;  %v8382_v27 = vld [vmem:[%s11270_s10 + $0xc4] sm:$0xf0] }
 0x4a3   : > { %v990_v31 = vsel %vm989_vm5, %v988_v29, %v8832_v28  ;;  %v1281_v32 = vsel %vm989_vm5, %v1280_v30, %v8833_v1  ;;  %v6433_v28 = vor.u32 %v8373_v24, %v6430_v25  ;;  %v6437_v29 = vor.u32 %v8382_v27, %v6436_v26  ;;  %v8374_v30 = vld [vmem:[%s11270_s10 + $0x8c] sm:$0xf]  ;;  %v8376_v26 = vld [vmem:[%s11270_s10 + $0x9c] sm:$0xf] }
 0x4a4   : > { %v1282_v33 = vpack.c.bf16 %v1281_v32, %v990_v31  ;;  %v6438_v31 = vld [vmem:[%s11270_s10 + $0xc8] sm:$0xf0]  ;;  %v6453_v25 = vor.u32 %v8384_v23, %v6452_v22  ;;  %v6454_v27 = vld [vmem:[%s11270_s10 + $0xd8] sm:$0xf0]  ;;  %v8385_v22 = vld [vmem:[%s11270_s10 + $0xdc] sm:$0xf0] }
 0x4a5   : > { %1845 = vmatpush.bf16.msrb.mxu2 %v6433_v28  ;;  %1859 = vmatpush.bf16.msrb.mxu3 %v6437_v29  ;;  %v6457_v28 = vor.u32 %v8376_v26, %v6454_v27  ;;  %v8367_v29 = vld [vmem:[%s11270_s10 + $0x4c] sm:$0xf0]  ;;  %v6468_v26 = vld [vmem:[%s11270_s10 + $0xa8] sm:$0xf] }
 0x4a6   : > { %6361 = vmatmul.msk.bf16.vlgmr.msra.gmra.mxu0 %vm663_vm0, %v1282_v33  ;;  %v6441_v33 = vor.u32 %v8374_v30, %v6438_v31  ;;  %v8359_v30 = vld [vmem:[%s11270_s10 + $0x14] sm:$0xf]  ;;  %v8386_v27 = vld [vmem:[%s11270_s10 + $0xe4] sm:$0xf0] }
 0x4a7   : > { %v6382_v31 = vld [vmem:[%s11270_s10 + $0x50] sm:$0xf0] }
 0x4a8   : > { %1873 = vmatpush.bf16.msrb.mxu0 %v6441_v33  ;;  %v6388_v33 = vld [vmem:[%s11270_s10 + $0x18] sm:$0xf] }
 0x4ac   : > { %1874 = vmatpush.bf16.msrb.mxu0 %v6377_v48 }
 0x4b0   : > { %1927 = vmatpush.bf16.msra.mxu0 %v6585_v4 }
 0x4b4   : > { %1928 = vmatpush.bf16.msra.mxu0 %v6521_v54  ;;  %v8394_v54 = vld [vmem:[%s11270_s10 + $0x12c] sm:$0xf] }
 0x4b8   : > { %1929 = vmatpush.bf16.msra.mxu0 %v6457_v28  ;;  %v6470_v28 = vld [vmem:[%s11270_s10 + $0xe8] sm:$0xf0] }
 0x523   : > { %v1331_v35 = vpop.f32.mrf.mxu0 }
 0x524   : > { %v1332_v36 = vadd.f32 %v8898_v34, %v1331_v35  ;;  %v8365_v35 = vld [vmem:[%s11270_s10 + $0x3c] sm:$0xf0] }
 0x526   : > { %v1336_v39 = vadd.f32 %v1332_v36, %v9182_v37  ;;  %v8357_v36 = vld [vmem:[%s11270_s10 + $0x4] sm:$0xf] }
 0x528   : > { %v1340_v40 = vsel %vm663_vm0, %v1336_v39, 0.0 }
 0x529   : > { %1341 = vadd.xlane.f32.xlu0 %v1340_v40 }
 0x52b   : > { %v1333_v41 = vpop.f32.mrf.mxu0 }
 0x52c   : > { %v1334_v42 = vadd.f32 %v8898_v34, %v1333_v41  ;;  %v6364_v34 = vld [vmem:[%s11270_s10] sm:$0xf]  ;;  %v6366_v41 = vld [vmem:[%s11270_s10 + $0x40] sm:$0xf0] }
 0x52d   : > { %v6365_v40 = vor.u32 %v8365_v35, %v6364_v34  ;;  %v8368_v34 = vld [vmem:[%s11270_s10 + $0x54] sm:$0xf0] }
 0x52e   : > { %v1337_v43 = vadd.f32 %v1334_v42, %v9184_v38  ;;  %v6372_v42 = vld [vmem:[%s11270_s10 + $0x8] sm:$0xf] }
 0x52f   : > { %1832 = vmatpush.bf16.msra.mxu1 %v6365_v40  ;;  %v6390_v40 = vld [vmem:[%s11270_s10 + $0x58] sm:$0xf0] }
 0x530   : > { %v1343_v44 = vsel %vm663_vm0, %v1337_v43, 0.0 }
 0x531   : > { %1344 = vadd.xlane.f32.xlu2 %v1343_v44  ;;  %v8366_v44 = vld [vmem:[%s11270_s10 + $0x44] sm:$0xf0] }
 0x532   : > { %v6373_v47 = vor.u32 %v8366_v44, %v6372_v42  ;;  %v6385_v42 = vor.u32 %v8359_v30, %v6382_v31  ;;  %v6396_v31 = vld [vmem:[%s11270_s10 + $0x20] sm:$0xf] }
 0x534   : > { %1860 = vmatpush.bf16.msrb.mxu3 %v6373_v47 }
 0x59c   : > { %v1342_v37 = vpop.xlane.xlu0 %1341 }
 0x59d   : > { %v1353_v52 = vmul.f32 %v9304_v51, %v1342_v37  ;;  %v8407_v37 = vld [vmem:[%s11270_s10 + $0x194] sm:$0xf] }
 0x59f   : > { %v9307_v53 = vsub.f32 %v1336_v39, %v1353_v52  ;;  %v6573_v52 = vor.u32 %v8415_v50, %v6572_v49 }
 0x5a1   : > { %v1357_v38 = vmul.f32 %v9307_v53, %v9307_v53  ;;  %1885 = vmatpush.bf16.msrb.mxu1 %v6573_v52  ;;  %v8899_v52 = vld [vmem:[%s11268_s8] ss:$0 sm:$0xff] }
 0x5a3   : > { %v1359_v55 = vsel %vm663_vm0, %v1357_v38, 0.0  ;;  %v6574_v38 = vld [vmem:[%s11270_s10 + $0x1d0] sm:$0xf0] }
 0x5a4   : > { %v1345_v56 = vpop.xlane.xlu2 %1344  ;;  %1360 = vadd.xlane.f32.xlu1 %v1359_v55  ;;  %v6580_v55 = vld [vmem:[%s11270_s10 + $0x198] sm:$0xf] }
 0x5a5   : > { %v1354_v57 = vmul.f32 %v9304_v51, %v1345_v56  ;;  %v8416_v56 = vld [vmem:[%s11270_s10 + $0x1d4] sm:$0xf0]  ;;  %1886 = vmatpush.bf16.msrb.mxu1 %v6509_v8 }
 0x5a7   : > { %v9313_v58 = vsub.f32 %v1337_v43, %v1354_v57  ;;  %v6369_v43 = vor.u32 %v8357_v36, %v6366_v41  ;;  %v8360_v36 = vld [vmem:[%s11270_s10 + $0x1c] sm:$0xf] }
 0x5a8   : > { %v6393_v45 = vor.u32 %v8360_v36, %v6390_v40  ;;  %v6398_v36 = vld [vmem:[%s11270_s10 + $0x60] sm:$0xf0]  ;;  %v6404_v40 = vld [vmem:[%s11270_s10 + $0x28] sm:$0xf] }
 0x5a9   : > { %v1358_v59 = vmul.f32 %v9313_v58, %v9313_v58  ;;  %1846 = vmatpush.bf16.msrb.mxu2 %v6369_v43  ;;  %1887 = vmatpush.bf16.msrb.mxu1 %v6445_v21  ;;  %v6389_v43 = vor.u32 %v8368_v34, %v6388_v33  ;;  %v6460_v21 = vld [vmem:[%s11270_s10 + $0xa0] sm:$0xf]  ;;  %v6469_v33 = vor.u32 %v8386_v27, %v6468_v26  ;;  %v6420_v26 = vld [vmem:[%s11270_s10 + $0x38] sm:$0xf] }
 0x5aa   : > { %1930 = vmatpush.bf16.msra.mxu0 %v6393_v45  ;;  %v8372_v27 = vld [vmem:[%s11270_s10 + $0x74] sm:$0xf0] }
 0x5ab   : > { %v1362_v61 = vsel %vm663_vm0, %v1358_v59, 0.0  ;;  %v6577_v59 = vor.u32 %v8407_v37, %v6574_v38 }
 0x5ac   : > { %1363 = vadd.xlane.f32.xlu0 %v1362_v61  ;;  %v6581_v61 = vor.u32 %v8416_v56, %v6580_v55 }
 0x5ad   : > { %1899 = vmatpush.bf16.msra.mxu2 %v6577_v59 }
 0x5ae   : > { %1913 = vmatpush.bf16.msra.mxu3 %v6581_v61 }
 0x5b1   : > { %1900 = vmatpush.bf16.msra.mxu2 %v6513_v9 }
 0x5b2   : > { %1914 = vmatpush.bf16.msra.mxu3 %v6517_v14  ;;  %v8393_v14 = vld [vmem:[%s11270_s10 + $0x124] sm:$0xf] }
 0x5b3   : > { %v6529_v20 = vor.u32 %v8393_v14, %v6526_v15  ;;  %v8379_v14 = vld [vmem:[%s11270_s10 + $0xb4] sm:$0xf] }
 0x5b4   : > { %v6478_v15 = vld [vmem:[%s11270_s10 + $0xf0] sm:$0xf0] }
 0x5b5   : > { %1901 = vmatpush.bf16.msra.mxu2 %v6449_v63  ;;  %v8377_v63 = vld [vmem:[%s11270_s10 + $0xa4] sm:$0xf] }
 0x5b6   : > { %1915 = vmatpush.bf16.msra.mxu3 %v6453_v25  ;;  %v6462_v25 = vld [vmem:[%s11270_s10 + $0xe0] sm:$0xf0] }
 0x5b7   : > { %v6465_v30 = vor.u32 %v8377_v63, %v6462_v25  ;;  %v8363_v63 = vld [vmem:[%s11270_s10 + $0x34] sm:$0xf] }
 0x5b8   : > { %v6414_v25 = vld [vmem:[%s11270_s10 + $0x70] sm:$0xf0] }
 0x5b9   : > { %1902 = vmatpush.bf16.msra.mxu2 %v6385_v42  ;;  %v8362_v42 = vld [vmem:[%s11270_s10 + $0x2c] sm:$0xf] }
 0x5ba   : > { %1916 = vmatpush.bf16.msra.mxu3 %v6389_v43  ;;  %v6406_v43 = vld [vmem:[%s11270_s10 + $0x68] sm:$0xf0] }
 0x617   : > { %v1361_v1 = vpop.xlane.xlu1 %1360 }
 0x618   : > { %v1365_v32 = vmul.f32 %v1361_v1, %v9304_v51  ;;  %v6380_v1 = vld [vmem:[%s11270_s10 + $0x10] sm:$0xf] }
 0x619   : > { %v6381_v35 = vor.u32 %v8367_v29, %v6380_v1  ;;  %v8378_v1 = vld [vmem:[%s11270_s10 + $0xac] sm:$0xf]  ;;  %v6461_v29 = vor.u32 %v8385_v22, %v6460_v21  ;;  %v6412_v21 = vld [vmem:[%s11270_s10 + $0x30] sm:$0xf] }
 0x61a   : > { %v9400_v39 = vadd.f32 1e-05, %v1365_v32  ;;  %v6473_v34 = vor.u32 %v8378_v1, %v6470_v28  ;;  %v8371_v22 = vld [vmem:[%s11270_s10 + $0x6c] sm:$0xf0]  ;;  %v8364_v1 = vld [vmem:[%s11270_s10 + $0x3c] sm:$0xf] }
 0x61b   : > { %1888 = vmatpush.bf16.msrb.mxu1 %v6381_v35  ;;  %v8361_v35 = vld [vmem:[%s11270_s10 + $0x24] sm:$0xf]  ;;  %v6422_v28 = vld [vmem:[%s11270_s10 + $0x78] sm:$0xf0] }
 0x61c   : > { %8948 = vrsqrt.f32 %v9400_v39  ;;  %vm1375_vm8 = vweird.f32 %v9400_v39  ;;  %v6401_v45 = vor.u32 %v8361_v35, %v6398_v36  ;;  %v8436_v35 = vld [vmem:[%s11272_s12 + $0x78] sm:$0xff] }
 0x61d   : > { %v8444_v36 = vld [vmem:[%s11272_s12 + $0xb8] sm:$0xff] }
 0x61f   : > { %v1364_v57 = vpop.xlane.xlu0 %1363 }
 0x620   : > { %v1366_v3 = vmul.f32 %v1364_v57, %v9304_v51 }
 0x622   : > { %v8949_v12 = vpop.eup %8948  ;;  %v1368_v13 = vadd.f32 1e-05, %v1366_v3 }
 0x623   : > { %v1370_v17 = vmul.f32 %v8949_v12, %v9400_v39  ;;  %vm1376_vm7 = vweird.f32 %v8949_v12  ;;  %v8900_v39 = vld [vmem:[%s11269_s9] ss:$0 sm:$0xff] }
 0x624   : > { %8950 = vrsqrt.f32 %v1368_v13  ;;  %vm1377_vm9 = vmor %vm1375_vm8, %vm1376_vm7  ;;  %vm1385_vm11 = vweird.f32 %v1368_v13 }
 0x625   : > { %v1371_v24 = vmul.f32 %v8949_v12, %v1370_v17  ;;  %v8402_v17 = vld [vmem:[%s11270_s10 + $0x164] sm:$0xf0] }
 0x626   : > { %v6533_v23 = vor.u32 %v8402_v17, %v6532_v16  ;;  %v6484_v16 = vld [vmem:[%s11270_s10 + $0xb8] sm:$0xf] }
 0x627   : > { %v1372_v32 = vmul.f32 0.5, %v1371_v24  ;;  %v6537_v24 = vor.u32 %v8394_v54, %v6534_v18  ;;  %v8388_v17 = vld [vmem:[%s11270_s10 + $0xf4] sm:$0xf0]  ;;  %v8380_v54 = vld [vmem:[%s11270_s10 + $0xbc] sm:$0xf] }
 0x628   : > { %v6486_v18 = vld [vmem:[%s11270_s10 + $0xf8] sm:$0xf0] }
 0x629   : > { %v1373_v41 = vsub.f32 1.5, %v1372_v32  ;;  %v8369_v32 = vld [vmem:[%s11270_s10 + $0x5c] sm:$0xf0] }
 0x62a   : > { %v8951_v44 = vpop.eup %8950 }
 0x62b   : > { %v1374_v46 = vmul.f32 %v8949_v12, %v1373_v41  ;;  %v1380_v47 = vmul.f32 %v8951_v44, %v1368_v13  ;;  %vm1386_vm10 = vweird.f32 %v8951_v44  ;;  %v6601_v13 = vor.u32 %v8410_v6, %v6598_v7  ;;  %v8370_v41 = vld [vmem:[%s11270_s10 + $0x64] sm:$0xf0]  ;;  %v8396_v6 = vld [vmem:[%s11270_s10 + $0x13c] sm:$0xf] }
 0x62c   : > { %vm1387_vm12 = vmor %vm1385_vm11, %vm1386_vm10  ;;  %v6550_v7 = vld [vmem:[%s11270_s10 + $0x178] sm:$0xf0] }
 0x62d   : > { %v1381_v48 = vmul.f32 %v8951_v44, %v1380_v47  ;;  %v1378_v49 = vsel %vm1377_vm9, %v8949_v12, %v1374_v46  ;;  %v6604_v46 = vld [vmem:[%s11270_s10 + $0x1b0] sm:$0xf] }
 0x62e   : > { %v1389_v38 = vmul.f32 %v1378_v49, %v9307_v53  ;;  %v8417_v53 = vld [vmem:[%s11270_s10 + $0x1dc] sm:$0xf0]  ;;  %v8419_v47 = vld [vmem:[%s11270_s10 + $0x1ec] sm:$0xf0]  ;;  %v6409_v49 = vor.u32 %v8362_v42, %v6406_v43 }
 0x62f   : > { %v1382_v50 = vmul.f32 0.5, %v1381_v48  ;;  %v6589_v9 = vor.u32 %v8417_v53, %v6588_v62  ;;  %v6405_v48 = vor.u32 %v8370_v41, %v6404_v40  ;;  %v8427_v40 = vld [vmem:[%s11272_s12 + $0x30] sm:$0xff] }
 0x630   : > { %v1394_v57 = vmul.f32 %v8899_v52, %v1389_v38  ;;  %v8420_v38 = vld [vmem:[%s11270_s10 + $0x1f4] sm:$0xf0]  ;;  %v8451_v41 = vld [vmem:[%s11272_s12 + $0xf0] sm:$0xff] }
 0x631   : > { %v1383_v37 = vsub.f32 1.5, %v1382_v50  ;;  %v8411_v50 = vld [vmem:[%s11270_s10 + $0x1b4] sm:$0xf] }
 0x632   : > { %v9540_v3 = vadd.f32 %v8900_v39, %v1394_v57  ;;  %v8435_v42 = vld [vmem:[%s11272_s12 + $0x70] sm:$0xff] }
 0x633   : > { %v1384_v55 = vmul.f32 %v8951_v44, %v1383_v37  ;;  %v6606_v37 = vld [vmem:[%s11270_s10 + $0x1f0] sm:$0xf0] }
 0x634   : > { %v6609_v57 = vor.u32 %v8411_v50, %v6606_v37  ;;  %v8443_v43 = vld [vmem:[%s11272_s12 + $0xb0] sm:$0xff]  ;;  %v8433_v50 = vld [vmem:[%s11272_s12 + $0x60] sm:$0xff] }
 0x635   : > { %v1388_v56 = vsel %vm1387_vm12, %v8951_v44, %v1384_v55  ;;  %v6397_v44 = vor.u32 %v8369_v32, %v6396_v31  ;;  %v8412_v55 = vld [vmem:[%s11270_s10 + $0x1bc] sm:$0xf]  ;;  %v6421_v31 = vor.u32 %v8372_v27, %v6420_v26  ;;  %v6425_v32 = vor.u32 %v8364_v1, %v6422_v28  ;;  %v8441_v37 = vld [vmem:[%s11272_s12 + $0xa0] sm:$0xff]  ;;  %v8454_v27 = vld [vmem:[%s11272_s12 + $0x108] sm:$0xff] }
 0x636   : > { %v1390_v59 = vmul.f32 %v1388_v56, %v9313_v58  ;;  %v6596_v58 = vld [vmem:[%s11270_s10 + $0x1a8] sm:$0xf]  ;;  %v6614_v56 = vld [vmem:[%s11270_s10 + $0x1f8] sm:$0xf0]  ;;  %v8463_v28 = vld [vmem:[%s11272_s12 + $0x150] sm:$0xff] }
 0x637   : > { %v6597_v12 = vor.u32 %v8418_v5, %v6596_v58  ;;  %v6617_v53 = vor.u32 %v8412_v55, %v6614_v56  ;;  %v6548_v58 = vld [vmem:[%s11270_s10 + $0x138] sm:$0xf]  ;;  %v8478_v1 = vld [vmem:[%s11272_s12 + $0x1c8] sm:$0xff] }
 0x638   : > { %v1395_v61 = vmul.f32 %v8899_v52, %v1390_v59  ;;  %v6612_v52 = vld [vmem:[%s11270_s10 + $0x1b8] sm:$0xf]  ;;  %v6540_v59 = vld [vmem:[%s11270_s10 + $0x130] sm:$0xf] }
 0x639   : > { %v6613_v62 = vor.u32 %v8420_v38, %v6612_v52  ;;  %v8404_v5 = vld [vmem:[%s11270_s10 + $0x174] sm:$0xf0] }
 0x63a   : > { %v9542_v4 = vadd.f32 %v8900_v39, %v1395_v61  ;;  %v6605_v39 = vor.u32 %v8419_v47, %v6604_v46  ;;  %v8403_v61 = vld [vmem:[%s11270_s10 + $0x16c] sm:$0xf0]  ;;  %v8434_v46 = vld [vmem:[%s11272_s12 + $0x68] sm:$0xff]  ;;  %v8424_v52 = vld [vmem:[%s11272_s12 + $0x18] sm:$0xff] }
 0x63b   : > { %v8442_v47 = vld [vmem:[%s11272_s12 + $0xa8] sm:$0xff]  ;;  %v8448_v38 = vld [vmem:[%s11272_s12 + $0xd8] sm:$0xff] }
 0x63c   : > { %v9555_v8 = vpack.c.bf16 %v9542_v4, %v9540_v3  ;;  %v8432_v55 = vld [vmem:[%s11272_s12 + $0x58] sm:$0xff] }
 0x63d   : > { %v8440_v56 = vld [vmem:[%s11272_s12 + $0x98] sm:$0xff] }
 0x63e   : > { %6618 = vmatmul.msk.bf16.vlgmr.msra.gmra.mxu1 %vm663_vm0, %v9555_v8  ;;  %6619 = vmatmul.msk.bf16.vlgmr.msrb.gmra.mxu2 %vm663_vm0, %v9555_v8  ;;  %v8472_v26 = vld [vmem:[%s11272_s12 + $0x198] sm:$0xff] }
 0x63f   : > { %6620 = vmatmul.msk.bf16.vlgmr.msrb.gmra.mxu3 %vm663_vm0, %v9555_v8  ;;  %6621 = vmatmul.msk.bf16.vlgmr.msrb.gmra.mxu0 %vm663_vm0, %v9555_v8 }
 0x640   : > { %1941 = vmatpush.bf16.msra.mxu1 %v6589_v9  ;;  %1955 = vmatpush.bf16.msrb.mxu2 %v6593_v60  ;;  %v6541_v9 = vor.u32 %v8403_v61, %v6540_v59  ;;  %v6545_v60 = vor.u32 %v8395_v0, %v6542_v2  ;;  %v8431_v59 = vld [vmem:[%s11272_s12 + $0x50] sm:$0xff]  ;;  %v8422_v61 = vld [vmem:[%s11272_s12 + $0x8] sm:$0xff]  ;;  %v8421_v2 = vld [vmem:[%s11272_s12] sm:$0xff] }
 0x641   : > { %1969 = vmatpush.bf16.msrb.mxu3 %v6597_v12  ;;  %1983 = vmatpush.bf16.msrb.mxu0 %v6601_v13  ;;  %v6549_v12 = vor.u32 %v8404_v5, %v6548_v58  ;;  %v6553_v13 = vor.u32 %v8396_v6, %v6550_v7  ;;  %v8438_v0 = vld [vmem:[%s11272_s12 + $0x88] sm:$0xff]  ;;  %v8445_v58 = vld [vmem:[%s11272_s12 + $0xc0] sm:$0xff]  ;;  %v8460_v5 = vld [vmem:[%s11272_s12 + $0x138] sm:$0xff] }
 0x642   : > { %v8484_v6 = vld [vmem:[%s11272_s12 + $0x1f8] sm:$0xff]  ;;  %v8429_v7 = vld [vmem:[%s11272_s12 + $0x40] sm:$0xff] }
 0x644   : > { %1942 = vmatpush.bf16.msra.mxu1 %v6525_v19  ;;  %1956 = vmatpush.bf16.msrb.mxu2 %v6529_v20  ;;  %v6477_v19 = vor.u32 %v8387_v11, %v6476_v10  ;;  %v6481_v20 = vor.u32 %v8379_v14, %v6478_v15  ;;  %v8476_v10 = vld [vmem:[%s11272_s12 + $0x1b8] sm:$0xff]  ;;  %v8459_v11 = vld [vmem:[%s11272_s12 + $0x130] sm:$0xff]  ;;  %v8458_v15 = vld [vmem:[%s11272_s12 + $0x128] sm:$0xff] }
 0x645   : > { %1970 = vmatpush.bf16.msrb.mxu3 %v6533_v23  ;;  %1984 = vmatpush.bf16.msrb.mxu0 %v6537_v24  ;;  %v6485_v23 = vor.u32 %v8388_v17, %v6484_v16  ;;  %v6489_v24 = vor.u32 %v8380_v54, %v6486_v18  ;;  %v8475_v14 = vld [vmem:[%s11272_s12 + $0x1b0] sm:$0xff]  ;;  %v8482_v16 = vld [vmem:[%s11272_s12 + $0x1e8] sm:$0xff]  ;;  %v8457_v17 = vld [vmem:[%s11272_s12 + $0x120] sm:$0xff] }
 0x646   : > { %v8481_v54 = vld [vmem:[%s11272_s12 + $0x1e0] sm:$0xff]  ;;  %v8466_v18 = vld [vmem:[%s11272_s12 + $0x168] sm:$0xff] }
 0x648   : > { %1943 = vmatpush.bf16.msra.mxu1 %v6461_v29  ;;  %1957 = vmatpush.bf16.msrb.mxu2 %v6465_v30  ;;  %v6413_v29 = vor.u32 %v8371_v22, %v6412_v21  ;;  %v6417_v30 = vor.u32 %v8363_v63, %v6414_v25  ;;  %v8480_v21 = vld [vmem:[%s11272_s12 + $0x1d8] sm:$0xff]  ;;  %v8465_v22 = vld [vmem:[%s11272_s12 + $0x160] sm:$0xff]  ;;  %v8479_v63 = vld [vmem:[%s11272_s12 + $0x1d0] sm:$0xff] }
 0x649   : > { %1971 = vmatpush.bf16.msrb.mxu3 %v6469_v33  ;;  %1985 = vmatpush.bf16.msrb.mxu0 %v6473_v34  ;;  %v8428_v33 = vld [vmem:[%s11272_s12 + $0x38] sm:$0xff] }
 0x64a   : > { %v8452_v34 = vld [vmem:[%s11272_s12 + $0xf8] sm:$0xff] }
 0x64b   : > { %v8464_v25 = vld [vmem:[%s11272_s12 + $0x158] sm:$0xff] }
 0x64c   : > { %1944 = vmatpush.bf16.msra.mxu1 %v6397_v44  ;;  %1958 = vmatpush.bf16.msrb.mxu2 %v6401_v45  ;;  %v8426_v44 = vld [vmem:[%s11272_s12 + $0x28] sm:$0xff] }
 0x64d   : > { %1972 = vmatpush.bf16.msrb.mxu3 %v6405_v48  ;;  %1986 = vmatpush.bf16.msrb.mxu0 %v6409_v49  ;;  %v8450_v45 = vld [vmem:[%s11272_s12 + $0xe8] sm:$0xff]  ;;  %v8425_v48 = vld [vmem:[%s11272_s12 + $0x20] sm:$0xff] }
 0x64e   : > { %6622 = vmatmul.msk.bf16.vlgmr.msrb.gmra.mxu1 %vm663_vm0, %v9555_v8  ;;  %6623 = vmatmul.msk.bf16.vlgmr.msra.gmra.mxu2 %vm663_vm0, %v9555_v8  ;;  %v8449_v49 = vld [vmem:[%s11272_s12 + $0xe0] sm:$0xff] }
 0x64f   : > { %6624 = vmatmul.msk.bf16.vlgmr.msra.gmra.mxu3 %vm663_vm0, %v9555_v8  ;;  %6625 = vmatmul.msk.bf16.vlgmr.msra.gmra.mxu0 %vm663_vm0, %v9555_v8 }
 0x650   : > { %1997 = vmatpush.bf16.msrb.mxu1 %v6605_v39  ;;  %2011 = vmatpush.bf16.msra.mxu2 %v6609_v57  ;;  %v8423_v39 = vld [vmem:[%s11272_s12 + $0x10] sm:$0xff] }
 0x651   : > { %2025 = vmatpush.bf16.msra.mxu3 %v6613_v62  ;;  %2039 = vmatpush.bf16.msra.mxu0 %v6617_v53  ;;  %v8447_v57 = vld [vmem:[%s11272_s12 + $0xd0] sm:$0xff]  ;;  %v8446_v62 = vld [vmem:[%s11272_s12 + $0xc8] sm:$0xff] }
 0x652   : > { %v8430_v53 = vld [vmem:[%s11272_s12 + $0x48] sm:$0xff] }
 0x654   : > { %1998 = vmatpush.bf16.msrb.mxu1 %v6541_v9  ;;  %2012 = vmatpush.bf16.msra.mxu2 %v6545_v60  ;;  %v8437_v9 = vld [vmem:[%s11272_s12 + $0x80] sm:$0xff]  ;;  %v8468_v60 = vld [vmem:[%s11272_s12 + $0x178] sm:$0xff] }
 0x655   : > { %2026 = vmatpush.bf16.msra.mxu3 %v6549_v12  ;;  %2040 = vmatpush.bf16.msra.mxu0 %v6553_v13  ;;  %v8483_v12 = vld [vmem:[%s11272_s12 + $0x1f0] sm:$0xff] }
 0x656   : > { %v8467_v13 = vld [vmem:[%s11272_s12 + $0x170] sm:$0xff] }
 0x658   : > { %1999 = vmatpush.bf16.msrb.mxu1 %v6477_v19  ;;  %2013 = vmatpush.bf16.msra.mxu2 %v6481_v20  ;;  %v8474_v19 = vld [vmem:[%s11272_s12 + $0x1a8] sm:$0xff]  ;;  %v8456_v20 = vld [vmem:[%s11272_s12 + $0x118] sm:$0xff] }
 0x659   : > { %2027 = vmatpush.bf16.msra.mxu3 %v6485_v23  ;;  %2041 = vmatpush.bf16.msra.mxu0 %v6489_v24  ;;  %v8473_v23 = vld [vmem:[%s11272_s12 + $0x1a0] sm:$0xff]  ;;  %v8455_v24 = vld [vmem:[%s11272_s12 + $0x110] sm:$0xff] }
 0x65c   : > { %2000 = vmatpush.bf16.msrb.mxu1 %v6413_v29  ;;  %2014 = vmatpush.bf16.msra.mxu2 %v6417_v30  ;;  %v8471_v29 = vld [vmem:[%s11272_s12 + $0x190] sm:$0xff]  ;;  %v8453_v30 = vld [vmem:[%s11272_s12 + $0x100] sm:$0xff] }
 0x65d   : > { %2028 = vmatpush.bf16.msra.mxu3 %v6421_v31  ;;  %2042 = vmatpush.bf16.msra.mxu0 %v6425_v32  ;;  %v8477_v31 = vld [vmem:[%s11272_s12 + $0x1c0] sm:$0xff]  ;;  %v8462_v32 = vld [vmem:[%s11272_s12 + $0x148] sm:$0xff] }
 0x65e   : > { %6626 = vmatmul.msk.bf16.vlgmr.msra.gmra.mxu1 %vm663_vm0, %v9555_v8  ;;  %6627 = vmatmul.msk.bf16.vlgmr.msrb.gmra.mxu2 %vm663_vm0, %v9555_v8 }
 0x65f   : > { %6628 = vmatmul.msk.bf16.vlgmr.msrb.gmra.mxu3 %vm663_vm0, %v9555_v8  ;;  %6629 = vmatmul.msk.bf16.vlgmr.msrb.gmra.mxu0 %vm663_vm0, %v9555_v8 }
 0x660   : > { %3125 = vmatpush.bf16.msra.mxu1 %v8428_v33  ;;  %3139 = vmatpush.bf16.msrb.mxu2 %v8436_v35  ;;  %v8470_v33 = vld [vmem:[%s11272_s12 + $0x188] sm:$0xff]  ;;  %v8469_v35 = vld [vmem:[%s11272_s12 + $0x180] sm:$0xff] }
 0x661   : > { %3167 = vmatpush.bf16.msrb.mxu0 %v8452_v34  ;;  %3153 = vmatpush.bf16.msrb.mxu3 %v8444_v36  ;;  %v8461_v34 = vld [vmem:[%s11272_s12 + $0x140] sm:$0xff] }
 0x662   : > { %v9952_v36 = vld [vmem:[%s11271_s11] sm:$0xff] }
 0x664   : > { %3126 = vmatpush.bf16.msra.mxu1 %v8427_v40  ;;  %3140 = vmatpush.bf16.msrb.mxu2 %v8435_v42  ;;  %v1470_v42 = vperm.slane %v9952_v36, 0 }
 0x665   : > { %3168 = vmatpush.bf16.msrb.mxu0 %v8451_v41  ;;  %3154 = vmatpush.bf16.msrb.mxu3 %v8443_v43  ;;  %v1473_v43 = vperm.slane %v9952_v36, 3 }
 0x668   : > { %3127 = vmatpush.bf16.msra.mxu1 %v8426_v44  ;;  %3141 = vmatpush.bf16.msrb.mxu2 %v8434_v46 }
 0x669   : > { %3169 = vmatpush.bf16.msrb.mxu0 %v8450_v45  ;;  %3155 = vmatpush.bf16.msrb.mxu3 %v8442_v47 }
 0x66c   : > { %3128 = vmatpush.bf16.msra.mxu1 %v8425_v48  ;;  %3142 = vmatpush.bf16.msrb.mxu2 %v8433_v50 }
 0x66d   : > { %3170 = vmatpush.bf16.msrb.mxu0 %v8449_v49  ;;  %3156 = vmatpush.bf16.msrb.mxu3 %v8441_v37  ;;  %v1471_v49 = vperm.slane %v9952_v36, 1 }
 0x66e   : > { %6630 = vmatmul.msk.bf16.vlgmr.msrb.gmra.mxu1 %vm663_vm0, %v9555_v8  ;;  %6631 = vmatmul.msk.bf16.vlgmr.msra.gmra.mxu2 %vm663_vm0, %v9555_v8 }
 0x66f   : > { %6632 = vmatmul.msk.bf16.vlgmr.msra.gmra.mxu3 %vm663_vm0, %v9555_v8  ;;  %6633 = vmatmul.msk.bf16.vlgmr.msra.gmra.mxu0 %vm663_vm0, %v9555_v8  ;;  %v8439_v8 = vld [vmem:[%s11272_s12 + $0x90] sm:$0xff] }
 0x670   : > { %3129 = vmatpush.bf16.msra.mxu1 %v8424_v52  ;;  %3143 = vmatpush.bf16.msrb.mxu2 %v8432_v55  ;;  %v1472_v52 = vperm.slane %v9952_v36, 2 }
 0x671   : > { %3171 = vmatpush.bf16.msrb.mxu0 %v8448_v38  ;;  %3157 = vmatpush.bf16.msrb.mxu3 %v8440_v56 }
 0x674   : > { %3130 = vmatpush.bf16.msra.mxu1 %v8423_v39  ;;  %3144 = vmatpush.bf16.msrb.mxu2 %v8431_v59  ;;  %v8492_v59 = vld [vmem:[%s11272_s12 + $0x238] sm:$0xff] }
 0x675   : > { %3172 = vmatpush.bf16.msrb.mxu0 %v8447_v57  ;;  %3158 = vmatpush.bf16.msrb.mxu3 %v8439_v8 }
 0x678   : > { %3131 = vmatpush.bf16.msra.mxu1 %v8422_v61  ;;  %3145 = vmatpush.bf16.msrb.mxu2 %v8430_v53 }
 0x679   : > { %3173 = vmatpush.bf16.msrb.mxu0 %v8446_v62  ;;  %3159 = vmatpush.bf16.msrb.mxu3 %v8438_v0  ;;  %v8516_v62 = vld [vmem:[%s11272_s12 + $0x2f8] sm:$0xff] }
 0x67c   : > { %3132 = vmatpush.bf16.msra.mxu1 %v8421_v2  ;;  %3146 = vmatpush.bf16.msrb.mxu2 %v8429_v7 }
 0x67d   : > { %3174 = vmatpush.bf16.msrb.mxu0 %v8445_v58  ;;  %3160 = vmatpush.bf16.msrb.mxu3 %v8437_v9  ;;  %v8491_v9 = vld [vmem:[%s11272_s12 + $0x230] sm:$0xff] }
 0x680   : > { %3181 = vmatpush.bf16.msrb.mxu1 %v8460_v5  ;;  %3195 = vmatpush.bf16.msra.mxu2 %v8468_v60 }
 0x681   : > { %3223 = vmatpush.bf16.msra.mxu0 %v8484_v6  ;;  %3209 = vmatpush.bf16.msra.mxu3 %v8476_v10 }
 0x684   : > { %3182 = vmatpush.bf16.msrb.mxu1 %v8459_v11  ;;  %3196 = vmatpush.bf16.msra.mxu2 %v8467_v13 }
 0x685   : > { %3224 = vmatpush.bf16.msra.mxu0 %v8483_v12  ;;  %3210 = vmatpush.bf16.msra.mxu3 %v8475_v14  ;;  %v8515_v12 = vld [vmem:[%s11272_s12 + $0x2f0] sm:$0xff] }
 0x688   : > { %3183 = vmatpush.bf16.msrb.mxu1 %v8458_v15  ;;  %3197 = vmatpush.bf16.msra.mxu2 %v8466_v18  ;;  %v8500_v15 = vld [vmem:[%s11272_s12 + $0x278] sm:$0xff] }
 0x689   : > { %3225 = vmatpush.bf16.msra.mxu0 %v8482_v16  ;;  %3211 = vmatpush.bf16.msra.mxu3 %v8474_v19  ;;  %v1477_v19 = vperm.slane %v9952_v36, 7 }
 0x68c   : > { %3184 = vmatpush.bf16.msrb.mxu1 %v8457_v17  ;;  %3198 = vmatpush.bf16.msra.mxu2 %v8465_v22  ;;  %v1474_v17 = vperm.slane %v9952_v36, 4 }
 0x68d   : > { %3226 = vmatpush.bf16.msra.mxu0 %v8481_v54  ;;  %3212 = vmatpush.bf16.msra.mxu3 %v8473_v23  ;;  %v8508_v54 = vld [vmem:[%s11272_s12 + $0x2b8] sm:$0xff]  ;;  %v8499_v23 = vld [vmem:[%s11272_s12 + $0x270] sm:$0xff] }
 0x690   : > { %3185 = vmatpush.bf16.msrb.mxu1 %v8456_v20  ;;  %3199 = vmatpush.bf16.msra.mxu2 %v8464_v25  ;;  %v8490_v20 = vld [vmem:[%s11272_s12 + $0x228] sm:$0xff]  ;;  %v8507_v25 = vld [vmem:[%s11272_s12 + $0x2b0] sm:$0xff] }
 0x691   : > { %3227 = vmatpush.bf16.msra.mxu0 %v8480_v21  ;;  %3213 = vmatpush.bf16.msra.mxu3 %v8472_v26  ;;  %v8514_v21 = vld [vmem:[%s11272_s12 + $0x2e8] sm:$0xff] }
 0x694   : > { %3186 = vmatpush.bf16.msrb.mxu1 %v8455_v24  ;;  %3200 = vmatpush.bf16.msra.mxu2 %v8463_v28  ;;  %v1475_v28 = vperm.slane %v9952_v36, 5 }
 0x695   : > { %3228 = vmatpush.bf16.msra.mxu0 %v8479_v63  ;;  %3214 = vmatpush.bf16.msra.mxu3 %v8471_v29 }
 0x698   : > { %3187 = vmatpush.bf16.msrb.mxu1 %v8454_v27  ;;  %3201 = vmatpush.bf16.msra.mxu2 %v8462_v32  ;;  %v1476_v32 = vperm.slane %v9952_v36, 6  ;;  %v8488_v36 = vld [vmem:[%s11272_s12 + $0x218] sm:$0xff] }
 0x699   : > { %3229 = vmatpush.bf16.msra.mxu0 %v8478_v1  ;;  %3215 = vmatpush.bf16.msra.mxu3 %v8470_v33  ;;  %v8489_v1 = vld [vmem:[%s11272_s12 + $0x220] sm:$0xff] }
 0x69c   : > { %3188 = vmatpush.bf16.msrb.mxu1 %v8453_v30  ;;  %3202 = vmatpush.bf16.msra.mxu2 %v8461_v34  ;;  %v8498_v34 = vld [vmem:[%s11272_s12 + $0x268] sm:$0xff] }
 0x69d   : > { %3230 = vmatpush.bf16.msra.mxu0 %v8477_v31  ;;  %3216 = vmatpush.bf16.msra.mxu3 %v8469_v35  ;;  %v8513_v31 = vld [vmem:[%s11272_s12 + $0x2e0] sm:$0xff] }
 0x6bb   : > { %v1834_v40 = vpop.f32.mrf.mxu1 }
 0x6bc   : > { %v1876_v41 = vpop.f32.mrf.mxu0  ;;  %v1835_v45 = vadd.f32 %v1834_v40, %v1470_v42 }
 0x6bd   : > { %v1877_v47 = vadd.f32 %v1876_v41, %v1473_v43  ;;  %v8506_v41 = vld [vmem:[%s11272_s12 + $0x2a8] sm:$0xff] }
 0x6be   : > { %v2049_v55 = vmax.f32 %v1835_v45, 0.0 }
 0x6bf   : > { %v2052_v39 = vmax.f32 %v1877_v47, 0.0 }
 0x6c1   : > { %v1848_v44 = vpop.f32.mrf.mxu2 }
 0x6c2   : > { %v1862_v46 = vpop.f32.mrf.mxu3  ;;  %v1849_v8 = vadd.f32 %v1848_v44, %v1471_v49 }
 0x6c3   : > { %v1836_v48 = vpop.f32.mrf.mxu1  ;;  %v1863_v53 = vadd.f32 %v1862_v46, %v1472_v52  ;;  %v8512_v46 = vld [vmem:[%s11272_s12 + $0x2d8] sm:$0xff] }
 0x6c4   : > { %v1837_v50 = vadd.f32 %v1836_v48, %v1470_v42  ;;  %v1878_v37 = vpop.f32.mrf.mxu0  ;;  %v2050_v60 = vmax.f32 %v1849_v8, 0.0 }
 0x6c5   : > { %v1879_v38 = vadd.f32 %v1878_v37, %v1473_v43  ;;  %v2051_v13 = vmax.f32 %v1863_v53, 0.0 }
 0x6c6   : > { %v2065_v56 = vmax.f32 %v1837_v50, 0.0  ;;  %v8497_v50 = vld [vmem:[%s11272_s12 + $0x260] sm:$0xff] }
 0x6c7   : > { %v2068_v57 = vmax.f32 %v1879_v38, 0.0  ;;  %v8505_v38 = vld [vmem:[%s11272_s12 + $0x2a0] sm:$0xff] }
 0x6c8   : > { %v2081_v61 = vpack.c.bf16 %v2065_v56, %v2049_v55  ;;  %v10019_v56 = vld [vmem:[%s11271_s11 + $0x8] sm:$0xff] }
 0x6c9   : > { %v2084_v0 = vpack.c.bf16 %v2068_v57, %v2052_v39  ;;  %v1850_v2 = vpop.f32.mrf.mxu2  ;;  %v8487_v57 = vld [vmem:[%s11272_s12 + $0x210] sm:$0xff] }
 0x6ca   : > { %v1851_v58 = vadd.f32 %v1850_v2, %v1471_v49  ;;  %v1864_v5 = vpop.f32.mrf.mxu3  ;;  %3133 = vmatmul.bf16.vlgmr.msra.gmra.mxu1 %v2081_v61  ;;  %v8496_v2 = vld [vmem:[%s11272_s12 + $0x258] sm:$0xff] }
 0x6cb   : > { %v1865_v6 = vadd.f32 %v1864_v5, %v1472_v52  ;;  %3175 = vmatmul.bf16.vlgmr.msrb.gmra.mxu0 %v2084_v0  ;;  %3237 = vmatpush.bf16.msra.mxu1 %v8492_v59  ;;  %v1890_v7 = vpop.f32.mrf.mxu1  ;;  %v1478_v5 = vperm.slane %v10019_v56, 0 }
 0x6cc   : > { %v2066_v10 = vmax.f32 %v1851_v58, 0.0  ;;  %3279 = vmatpush.bf16.msrb.mxu0 %v8516_v62  ;;  %v1932_v11 = vpop.f32.mrf.mxu0  ;;  %v1891_v24 = vadd.f32 %v1890_v7, %v1474_v17  ;;  %v8511_v62 = vld [vmem:[%s11272_s12 + $0x2d0] sm:$0xff] }
 0x6cd   : > { %v2067_v14 = vmax.f32 %v1865_v6, 0.0  ;;  %v1933_v26 = vadd.f32 %v1932_v11, %v1477_v19  ;;  %v8504_v6 = vld [vmem:[%s11272_s12 + $0x298] sm:$0xff] }
 0x6ce   : > { %v2082_v16 = vpack.c.bf16 %v2066_v10, %v2050_v60  ;;  %v2053_v35 = vmax.f32 %v1891_v24, 0.0  ;;  %v8486_v60 = vld [vmem:[%s11272_s12 + $0x208] sm:$0xff] }
 0x6cf   : > { %v2083_v18 = vpack.c.bf16 %v2067_v14, %v2051_v13  ;;  %3238 = vmatpush.bf16.msra.mxu1 %v8491_v9  ;;  %v2056_v42 = vmax.f32 %v1933_v26, 0.0  ;;  %v1481_v9 = vperm.slane %v10019_v56, 3  ;;  %v8510_v10 = vld [vmem:[%s11272_s12 + $0x2c8] sm:$0xff] }
 0x6d0   : > { %3280 = vmatpush.bf16.msrb.mxu0 %v8515_v12  ;;  %3147 = vmatmul.bf16.vlgmr.msrb.gmra.mxu2 %v2082_v16  ;;  %v8495_v12 = vld [vmem:[%s11272_s12 + $0x250] sm:$0xff] }
 0x6d1   : > { %3161 = vmatmul.bf16.vlgmr.msrb.gmra.mxu3 %v2083_v18  ;;  %3251 = vmatpush.bf16.msrb.mxu2 %v8500_v15  ;;  %v1904_v22 = vpop.f32.mrf.mxu2  ;;  %v8503_v15 = vld [vmem:[%s11272_s12 + $0x290] sm:$0xff]  ;;  %v1479_v18 = vperm.slane %v10019_v56, 1 }
 0x6d2   : > { %3265 = vmatpush.bf16.msrb.mxu3 %v8508_v54  ;;  %v1918_v63 = vpop.f32.mrf.mxu3  ;;  %v1905_v44 = vadd.f32 %v1904_v22, %v1475_v28  ;;  %v8485_v54 = vld [vmem:[%s11272_s12 + $0x200] sm:$0xff]  ;;  %v8524_v22 = vld [vmem:[%s11272_s12 + $0x338] sm:$0xff] }
 0x6d3   : > { %3239 = vmatpush.bf16.msra.mxu1 %v8490_v20  ;;  %v1892_v27 = vpop.f32.mrf.mxu1  ;;  %v1919_v47 = vadd.f32 %v1918_v63, %v1476_v32  ;;  %v8548_v63 = vld [vmem:[%s11272_s12 + $0x3f8] sm:$0xff] }
 0x6d4   : > { %3281 = vmatpush.bf16.msrb.mxu0 %v8514_v21  ;;  %v1893_v29 = vadd.f32 %v1892_v27, %v1474_v17  ;;  %v1934_v30 = vpop.f32.mrf.mxu0  ;;  %v2054_v59 = vmax.f32 %v1905_v44, 0.0  ;;  %v8509_v21 = vld [vmem:[%s11272_s12 + $0x2c0] sm:$0xff]  ;;  %v8532_v44 = vld [vmem:[%s11272_s12 + $0x378] sm:$0xff] }
 0x6d5   : > { %v1935_v33 = vadd.f32 %v1934_v30, %v1477_v19  ;;  %3252 = vmatpush.bf16.msrb.mxu2 %v8499_v23  ;;  %v2055_v53 = vmax.f32 %v1919_v47, 0.0  ;;  %v1480_v23 = vperm.slane %v10019_v56, 2 }
 0x6d6   : > { %v2069_v40 = vmax.f32 %v1893_v29, 0.0  ;;  %3266 = vmatpush.bf16.msrb.mxu3 %v8507_v25  ;;  %v8494_v25 = vld [vmem:[%s11272_s12 + $0x248] sm:$0xff] }
 0x6d7   : > { %v2072_v43 = vmax.f32 %v1935_v33, 0.0  ;;  %3240 = vmatpush.bf16.msra.mxu1 %v8489_v1  ;;  %v8502_v1 = vld [vmem:[%s11272_s12 + $0x288] sm:$0xff] }
 0x6d8   : > { %v2085_v45 = vpack.c.bf16 %v2069_v40, %v2053_v35  ;;  %3282 = vmatpush.bf16.msrb.mxu0 %v8513_v31  ;;  %v8547_v40 = vld [vmem:[%s11272_s12 + $0x3f0] sm:$0xff] }
 0x6d9   : > { %v2088_v48 = vpack.c.bf16 %v2072_v43, %v2056_v42  ;;  %3253 = vmatpush.bf16.msrb.mxu2 %v8498_v34  ;;  %v1906_v49 = vpop.f32.mrf.mxu2 }
 0x6da   : > { %3267 = vmatpush.bf16.msrb.mxu3 %v8506_v41  ;;  %v1907_v37 = vadd.f32 %v1906_v49, %v1475_v28  ;;  %v1920_v52 = vpop.f32.mrf.mxu3  ;;  %3189 = vmatmul.bf16.vlgmr.msrb.gmra.mxu1 %v2085_v45  ;;  %v8493_v41 = vld [vmem:[%s11272_s12 + $0x240] sm:$0xff]  ;;  %v8522_v49 = vld [vmem:[%s11272_s12 + $0x328] sm:$0xff] }
 0x6db   : > { %v1921_v55 = vadd.f32 %v1920_v52, %v1476_v32  ;;  %3231 = vmatmul.bf16.vlgmr.msra.gmra.mxu0 %v2088_v48  ;;  %3241 = vmatpush.bf16.msra.mxu1 %v8488_v36  ;;  %v1946_v39 = vpop.f32.mrf.mxu1  ;;  %v8523_v32 = vld [vmem:[%s11272_s12 + $0x330] sm:$0xff]  ;;  %v8501_v36 = vld [vmem:[%s11272_s12 + $0x280] sm:$0xff]  ;;  %v8546_v52 = vld [vmem:[%s11272_s12 + $0x3e8] sm:$0xff] }
 0x6dc   : > { %v2070_v8 = vmax.f32 %v1907_v37, 0.0  ;;  %3283 = vmatpush.bf16.msrb.mxu0 %v8512_v46  ;;  %v1988_v61 = vpop.f32.mrf.mxu0  ;;  %v1947_v13 = vadd.f32 %v1946_v39, %v1478_v5  ;;  %v8540_v46 = vld [vmem:[%s11272_s12 + $0x3b8] sm:$0xff] }
 0x6dd   : > { %v2071_v0 = vmax.f32 %v1921_v55, 0.0  ;;  %3254 = vmatpush.bf16.msrb.mxu2 %v8497_v50  ;;  %v1989_v16 = vadd.f32 %v1988_v61, %v1481_v9  ;;  %v8531_v55 = vld [vmem:[%s11272_s12 + $0x370] sm:$0xff] }
 0x6de   : > { %v2086_v58 = vpack.c.bf16 %v2070_v8, %v2054_v59  ;;  %3268 = vmatpush.bf16.msrb.mxu3 %v8505_v38  ;;  %v2057_v26 = vmax.f32 %v1947_v13, 0.0  ;;  %v8521_v8 = vld [vmem:[%s11272_s12 + $0x320] sm:$0xff]  ;;  %v1482_v13 = vperm.slane %v10019_v56, 4 }
 0x6df   : > { %v2087_v7 = vpack.c.bf16 %v2071_v0, %v2055_v53  ;;  %3242 = vmatpush.bf16.msra.mxu1 %v8487_v57  ;;  %v2060_v28 = vmax.f32 %v1989_v16, 0.0  ;;  %v8539_v57 = vld [vmem:[%s11272_s12 + $0x3b0] sm:$0xff]  ;;  %v8530_v53 = vld [vmem:[%s11272_s12 + $0x368] sm:$0xff]  ;;  %v1485_v16 = vperm.slane %v10019_v56, 7 }
 0x6e0   : > { %3284 = vmatpush.bf16.msrb.mxu0 %v8511_v62  ;;  %3203 = vmatmul.bf16.vlgmr.msra.gmra.mxu2 %v2086_v58  ;;  %v8545_v62 = vld [vmem:[%s11272_s12 + $0x3e0] sm:$0xff]  ;;  %v8538_v0 = vld [vmem:[%s11272_s12 + $0x3a8] sm:$0xff]  ;;  %v8544_v58 = vld [vmem:[%s11272_s12 + $0x3d8] sm:$0xff] }
 0x6e1   : > { %3217 = vmatmul.bf16.vlgmr.msra.gmra.mxu3 %v2087_v7  ;;  %3255 = vmatpush.bf16.msrb.mxu2 %v8496_v2  ;;  %v1960_v11 = vpop.f32.mrf.mxu2  ;;  %v8520_v2 = vld [vmem:[%s11272_s12 + $0x318] sm:$0xff] }
 0x6e2   : > { %3269 = vmatpush.bf16.msrb.mxu3 %v8504_v6  ;;  %v1974_v14 = vpop.f32.mrf.mxu3  ;;  %v1961_v30 = vadd.f32 %v1960_v11, %v1479_v18  ;;  %v8529_v6 = vld [vmem:[%s11272_s12 + $0x360] sm:$0xff] }
 0x6e3   : > { %3243 = vmatpush.bf16.msra.mxu1 %v8486_v60  ;;  %v1948_v17 = vpop.f32.mrf.mxu1  ;;  %v1975_v33 = vadd.f32 %v1974_v14, %v1480_v23  ;;  %v8519_v60 = vld [vmem:[%s11272_s12 + $0x310] sm:$0xff] }
 0x6e4   : > { %3285 = vmatpush.bf16.msrb.mxu0 %v8510_v10  ;;  %v1949_v19 = vadd.f32 %v1948_v17, %v1478_v5  ;;  %v1990_v20 = vpop.f32.mrf.mxu0  ;;  %v2058_v47 = vmax.f32 %v1961_v30, 0.0  ;;  %v8543_v10 = vld [vmem:[%s11272_s12 + $0x3d0] sm:$0xff]  ;;  %v8518_v17 = vld [vmem:[%s11272_s12 + $0x308] sm:$0xff] }
 0x6e5   : > { %v1991_v24 = vadd.f32 %v1990_v20, %v1481_v9  ;;  %3256 = vmatpush.bf16.msrb.mxu2 %v8495_v12  ;;  %v2059_v50 = vmax.f32 %v1975_v33, 0.0  ;;  %v8537_v9 = vld [vmem:[%s11272_s12 + $0x3a0] sm:$0xff]  ;;  %v8528_v12 = vld [vmem:[%s11272_s12 + $0x358] sm:$0xff]  ;;  %v8527_v20 = vld [vmem:[%s11272_s12 + $0x350] sm:$0xff] }
 0x6e6   : > { %v2073_v27 = vmax.f32 %v1949_v19, 0.0  ;;  %3270 = vmatpush.bf16.msrb.mxu3 %v8503_v15  ;;  %v8536_v15 = vld [vmem:[%s11272_s12 + $0x398] sm:$0xff]  ;;  %v8526_v30 = vld [vmem:[%s11272_s12 + $0x348] sm:$0xff] }
 0x6e7   : > { %v2076_v29 = vmax.f32 %v1991_v24, 0.0  ;;  %3244 = vmatpush.bf16.msra.mxu1 %v8485_v54  ;;  %v8534_v33 = vld [vmem:[%s11272_s12 + $0x388] sm:$0xff] }
 0x6e8   : > { %v2089_v31 = vpack.c.bf16 %v2073_v27, %v2057_v26  ;;  %3286 = vmatpush.bf16.msrb.mxu0 %v8509_v21 }
 0x6e9   : > { %v2092_v34 = vpack.c.bf16 %v2076_v29, %v2060_v28  ;;  %3257 = vmatpush.bf16.msrb.mxu2 %v8494_v25  ;;  %v1962_v35 = vpop.f32.mrf.mxu2  ;;  %v1483_v25 = vperm.slane %v10019_v56, 5  ;;  %v1484_v28 = vperm.slane %v10019_v56, 6 }
 0x6ea   : > { %3271 = vmatpush.bf16.msrb.mxu3 %v8502_v1  ;;  %v1963_v42 = vadd.f32 %v1962_v35, %v1479_v18  ;;  %v1976_v43 = vpop.f32.mrf.mxu3  ;;  %3245 = vmatmul.bf16.vlgmr.msra.gmra.mxu1 %v2089_v31  ;;  %v8542_v18 = vld [vmem:[%s11272_s12 + $0x3c8] sm:$0xff]  ;;  %v8541_v1 = vld [vmem:[%s11272_s12 + $0x3c0] sm:$0xff] }
 0x6eb   : > { %3293 = vmatpush.bf16.msrb.mxu1 %v8524_v22  ;;  %v1977_v45 = vadd.f32 %v1976_v43, %v1480_v23  ;;  %3287 = vmatmul.bf16.vlgmr.msrb.gmra.mxu0 %v2092_v34  ;;  %v2002_v59 = vpop.f32.mrf.mxu1  ;;  %v8535_v22 = vld [vmem:[%s11272_s12 + $0x390] sm:$0xff]  ;;  %v8525_v43 = vld [vmem:[%s11272_s12 + $0x340] sm:$0xff] }
 0x6ec   : > { %3335 = vmatpush.bf16.msra.mxu0 %v8548_v63  ;;  %v2074_v48 = vmax.f32 %v1963_v42, 0.0  ;;  %v2044_v61 = vpop.f32.mrf.mxu0  ;;  %v2003_v21 = vadd.f32 %v2002_v59, %v1482_v13  ;;  %v8517_v63 = vld [vmem:[%s11272_s12 + $0x300] sm:$0xff] }
 0x6ed   : > { %v2075_v37 = vmax.f32 %v1977_v45, 0.0  ;;  %3258 = vmatpush.bf16.msrb.mxu2 %v8493_v41  ;;  %v2045_v23 = vadd.f32 %v2044_v61, %v1485_v16 }
 0x6ee   : > { %v2090_v38 = vpack.c.bf16 %v2074_v48, %v2058_v47  ;;  %3272 = vmatpush.bf16.msrb.mxu3 %v8501_v36  ;;  %v2061_v31 = vmax.f32 %v2003_v21, 0.0 }
 0x6ef   : > { %3294 = vmatpush.bf16.msrb.mxu1 %v8523_v32  ;;  %v2091_v39 = vpack.c.bf16 %v2075_v37, %v2059_v50  ;;  %v2064_v34 = vmax.f32 %v2045_v23, 0.0 }
 0x6f0   : > { %3336 = vmatpush.bf16.msra.mxu0 %v8547_v40  ;;  %3259 = vmatmul.bf16.vlgmr.msrb.gmra.mxu2 %v2090_v38 }
 0x6f1   : > { %3307 = vmatpush.bf16.msra.mxu2 %v8532_v44  ;;  %3273 = vmatmul.bf16.vlgmr.msrb.gmra.mxu3 %v2091_v39  ;;  %v2016_v5 = vpop.f32.mrf.mxu2  ;;  %v8533_v44 = vld [vmem:[%s11272_s12 + $0x380] sm:$0xff] }
 0x6f2   : > { %3321 = vmatpush.bf16.msra.mxu3 %v8540_v46  ;;  %v2030_v7 = vpop.f32.mrf.mxu3  ;;  %v2017_v40 = vadd.f32 %v2016_v5, %v1483_v25 }
 0x6f3   : > { %3295 = vmatpush.bf16.msrb.mxu1 %v8522_v49  ;;  %v2004_v11 = vpop.f32.mrf.mxu1  ;;  %v2031_v56 = vadd.f32 %v2030_v7, %v1484_v28 }
 0x6f4   : > { %3337 = vmatpush.bf16.msra.mxu0 %v8546_v52  ;;  %v2046_v14 = vpop.f32.mrf.mxu0  ;;  %v2005_v54 = vadd.f32 %v2004_v11, %v1482_v13  ;;  %v2062_v46 = vmax.f32 %v2017_v40, 0.0 }
 0x6f5   : > { %3308 = vmatpush.bf16.msra.mxu2 %v8531_v55  ;;  %v2047_v19 = vadd.f32 %v2046_v14, %v1485_v16  ;;  %v2063_v47 = vmax.f32 %v2031_v56, 0.0 }
 0x6f6   : > { %3322 = vmatpush.bf16.msra.mxu3 %v8539_v57  ;;  %v2077_v26 = vmax.f32 %v2005_v54, 0.0 }
 0x6f7   : > { %3296 = vmatpush.bf16.msrb.mxu1 %v8521_v8  ;;  %v2080_v29 = vmax.f32 %v2047_v19, 0.0  ;;  %v8901_v8 = vld [vmem:[%s11273_s13] ss:$0 sm:$0xff] }
 0x6f8   : > { %3338 = vmatpush.bf16.msra.mxu0 %v8545_v62  ;;  %v2093_v41 = vpack.c.bf16 %v2077_v26, %v2061_v31 }
 0x6f9   : > { %3309 = vmatpush.bf16.msra.mxu2 %v8530_v53  ;;  %v2018_v24 = vpop.f32.mrf.mxu2  ;;  %v2096_v42 = vpack.c.bf16 %v2080_v29, %v2064_v34 }
 0x6fa   : > { %3323 = vmatpush.bf16.msra.mxu3 %v8538_v0  ;;  %v2032_v27 = vpop.f32.mrf.mxu3  ;;  %v2019_v32 = vadd.f32 %v2018_v24, %v1483_v25 }
 0x6fb   : > { %3297 = vmatpush.bf16.msrb.mxu1 %v8520_v2  ;;  %v2033_v35 = vadd.f32 %v2032_v27, %v1484_v28 }
 0x6fc   : > { %3339 = vmatpush.bf16.msra.mxu0 %v8544_v58  ;;  %v2078_v36 = vmax.f32 %v2019_v32, 0.0 }
 0x6fd   : > { %3310 = vmatpush.bf16.msra.mxu2 %v8529_v6  ;;  %v2079_v45 = vmax.f32 %v2033_v35, 0.0 }
 0x6fe   : > { %3324 = vmatpush.bf16.msra.mxu3 %v8537_v9  ;;  %v2094_v48 = vpack.c.bf16 %v2078_v36, %v2062_v46 }
 0x6ff   : > { %3298 = vmatpush.bf16.msrb.mxu1 %v8519_v60  ;;  %v2095_v49 = vpack.c.bf16 %v2079_v45, %v2063_v47 }
 0x700   : > { %3340 = vmatpush.bf16.msra.mxu0 %v8543_v10 }
 0x701   : > { %3311 = vmatpush.bf16.msra.mxu2 %v8528_v12 }
 0x702   : > { %3325 = vmatpush.bf16.msra.mxu3 %v8536_v15 }
 0x703   : > { %3299 = vmatpush.bf16.msrb.mxu1 %v8518_v17 }
 0x704   : > { %3341 = vmatpush.bf16.msra.mxu0 %v8542_v18 }
 0x705   : > { %3312 = vmatpush.bf16.msra.mxu2 %v8527_v20 }
 0x706   : > { %3326 = vmatpush.bf16.msra.mxu3 %v8535_v22 }
 0x707   : > { %3300 = vmatpush.bf16.msrb.mxu1 %v8517_v63 }
 0x708   : > { %3342 = vmatpush.bf16.msra.mxu0 %v8541_v1 }
 0x709   : > { %3313 = vmatpush.bf16.msra.mxu2 %v8526_v30 }
 0x70a   : > { %3327 = vmatpush.bf16.msra.mxu3 %v8534_v33  ;;  %3301 = vmatmul.bf16.vlgmr.msrb.gmra.mxu1 %v2093_v41 }
 0x70b   : > { %3343 = vmatmul.bf16.vlgmr.msra.gmra.mxu0 %v2096_v42 }
 0x70d   : > { %3314 = vmatpush.bf16.msra.mxu2 %v8525_v43 }
 0x70e   : > { %3328 = vmatpush.bf16.msra.mxu3 %v8533_v44 }
 0x710   : > { %3315 = vmatmul.bf16.vlgmr.msra.gmra.mxu2 %v2094_v48 }
 0x711   : > { %3329 = vmatmul.bf16.vlgmr.msra.gmra.mxu3 %v2095_v49 }
 0x747   : > { %v3134_v50 = vpop.f32.mrf.mxu1 }
 0x748   : > { %v3176_v38 = vpop.f32.mrf.mxu0  ;;  %v3135_v62 = vadd.f32 %v8901_v8, %v3134_v50 }
 0x74f   : > { %v3136_v55 = vpop.f32.mrf.mxu1 }
 0x750   : > { %v3178_v59 = vpop.f32.mrf.mxu0  ;;  %v3137_v7 = vadd.f32 %v8901_v8, %v3136_v55 }
 0x753   : > { %v3148_v37 = vpop.f32.mrf.mxu2 }
 0x754   : > { %v3162_v52 = vpop.f32.mrf.mxu3  ;;  %v3149_v53 = vadd.f32 %v3148_v37, %v3135_v62 }
 0x756   : > { %v3163_v5 = vadd.f32 %v3162_v52, %v3149_v53 }
 0x757   : > { %v3190_v61 = vpop.f32.mrf.mxu1 }
 0x758   : > { %v3232_v58 = vpop.f32.mrf.mxu0  ;;  %v3177_v9 = vadd.f32 %v3176_v38, %v3163_v5 }
 0x75a   : > { %v3191_v11 = vadd.f32 %v3190_v61, %v3177_v9  ;;  %v8555_v9 = vld [vmem:[%s11264_s4 + $0x74] sm:$0xf] }
 0x75b   : > { %v3150_v39 = vpop.f32.mrf.mxu2 }
 0x75c   : > { %v3164_v57 = vpop.f32.mrf.mxu3  ;;  %v3151_v60 = vadd.f32 %v3150_v39, %v3137_v7  ;;  %v8556_v7 = vld [vmem:[%s11264_s4 + $0x74] sm:$0xf0] }
 0x75e   : > { %v3165_v12 = vadd.f32 %v3164_v57, %v3151_v60 }
 0x75f   : > { %v3192_v6 = vpop.f32.mrf.mxu1 }
 0x760   : > { %v3234_v14 = vpop.f32.mrf.mxu0  ;;  %v3179_v17 = vadd.f32 %v3178_v59, %v3165_v12  ;;  %v7173_v12 = vld [vmem:[%s11264_s4 + $0x60] sm:$0xf] }
 0x762   : > { %v3193_v18 = vadd.f32 %v3192_v6, %v3179_v17  ;;  %v7181_v6 = vld [vmem:[%s11264_s4 + $0x70] sm:$0xf] }
 0x763   : > { %v3204_v0 = vpop.f32.mrf.mxu2  ;;  %v7182_v60 = vor.u32 %v8556_v7, %v7181_v6 }
 0x764   : > { %v3218_v2 = vpop.f32.mrf.mxu3  ;;  %v3205_v15 = vadd.f32 %v3204_v0, %v3191_v11 }
 0x765   : > { %3471 = vmatpush.bf16.msra.mxu1 %v7182_v60 }
 0x766   : > { %v3219_v54 = vadd.f32 %v3218_v2, %v3205_v15 }
 0x767   : > { %v3246_v16 = vpop.f32.mrf.mxu1 }
 0x768   : > { %v3233_v20 = vadd.f32 %v3232_v58, %v3219_v54  ;;  %v3288_v23 = vpop.f32.mrf.mxu0  ;;  %v7165_v54 = vld [vmem:[%s11264_s4 + $0x50] sm:$0xf] }
 0x76a   : > { %v3247_v63 = vadd.f32 %v3246_v16, %v3233_v20  ;;  %v7175_v16 = vld [vmem:[%s11264_s4 + $0x68] sm:$0xf0] }
 0x76b   : > { %v3206_v10 = vpop.f32.mrf.mxu2 }
 0x76c   : > { %v3220_v13 = vpop.f32.mrf.mxu3  ;;  %v3207_v21 = vadd.f32 %v3206_v10, %v3193_v18  ;;  %v7183_v10 = vld [vmem:[%s11264_s4 + $0x78] sm:$0xf0]  ;;  %v8552_v18 = vld [vmem:[%s11264_s4 + $0x54] sm:$0xf0] }
 0x76d   : > { %v7186_v11 = vor.u32 %v8555_v9, %v7183_v10  ;;  %v7166_v20 = vor.u32 %v8552_v18, %v7165_v54 }
 0x76e   : > { %v3221_v25 = vadd.f32 %v3220_v13, %v3207_v21  ;;  %v8554_v13 = vld [vmem:[%s11264_s4 + $0x64] sm:$0xf0]  ;;  %v7167_v21 = vld [vmem:[%s11264_s4 + $0x58] sm:$0xf0] }
 0x76f   : > { %v3248_v24 = vpop.f32.mrf.mxu1  ;;  %3485 = vmatpush.bf16.msrb.mxu2 %v7186_v11  ;;  %v7174_v15 = vor.u32 %v8554_v13, %v7173_v12 }
 0x770   : > { %v3235_v27 = vadd.f32 %v3234_v14, %v3221_v25  ;;  %v3290_v30 = vpop.f32.mrf.mxu0  ;;  %v8553_v14 = vld [vmem:[%s11264_s4 + $0x64] sm:$0xf]  ;;  %v8550_v25 = vld [vmem:[%s11264_s4 + $0x44] sm:$0xf0] }
 0x771   : > { %v7178_v17 = vor.u32 %v8553_v14, %v7175_v16  ;;  %3472 = vmatpush.bf16.msra.mxu1 %v7174_v15 }
 0x772   : > { %v3249_v32 = vadd.f32 %v3248_v24, %v3235_v27 }
 0x773   : > { %v3260_v19 = vpop.f32.mrf.mxu2  ;;  %3486 = vmatpush.bf16.msrb.mxu2 %v7178_v17 }
 0x774   : > { %v3274_v22 = vpop.f32.mrf.mxu3  ;;  %v3261_v26 = vadd.f32 %v3260_v19, %v3247_v63  ;;  %v8551_v19 = vld [vmem:[%s11264_s4 + $0x54] sm:$0xf]  ;;  %v7157_v63 = vld [vmem:[%s11264_s4 + $0x40] sm:$0xf] }
 0x775   : > { %3473 = vmatpush.bf16.msra.mxu1 %v7166_v20 }
 0x776   : > { %v3275_v28 = vadd.f32 %v3274_v22, %v3261_v26  ;;  %v8549_v26 = vld [vmem:[%s11264_s4 + $0x44] sm:$0xf] }
 0x778   : > { %v3289_v34 = vadd.f32 %v3288_v23, %v3275_v28  ;;  %v7170_v23 = vor.u32 %v8551_v19, %v7167_v21  ;;  %v7159_v28 = vld [vmem:[%s11264_s4 + $0x48] sm:$0xf0] }
 0x77a   : > { %3487 = vmatpush.bf16.msrb.mxu2 %v7170_v23 }
 0x77b   : > { %v3262_v1 = vpop.f32.mrf.mxu2 }
 0x77c   : > { %v3276_v29 = vpop.f32.mrf.mxu3  ;;  %v3263_v33 = vadd.f32 %v3262_v1, %v3249_v32  ;;  %v7158_v1 = vor.u32 %v8550_v25, %v7157_v63 }
 0x77e   : > { %v3277_v41 = vadd.f32 %v3276_v29, %v3263_v33  ;;  %v7162_v29 = vor.u32 %v8549_v26, %v7159_v28  ;;  %3474 = vmatpush.bf16.msra.mxu1 %v7158_v1 }
 0x780   : > { %v3291_v45 = vadd.f32 %v3290_v30, %v3277_v41  ;;  %3488 = vmatpush.bf16.msrb.mxu2 %v7162_v29 }
 0x787   : > { %v3302_v31 = vpop.f32.mrf.mxu1 }
 0x788   : > { %v3303_v35 = vadd.f32 %v3302_v31, %v3289_v34  ;;  %v3344_v43 = vpop.f32.mrf.mxu0 }
 0x78f   : > { %v3304_v44 = vpop.f32.mrf.mxu1 }
 0x790   : > { %v3305_v47 = vadd.f32 %v3304_v44, %v3291_v45  ;;  %v3346_v55 = vpop.f32.mrf.mxu0 }
 0x793   : > { %v3316_v40 = vpop.f32.mrf.mxu2 }
 0x794   : > { %v3317_v56 = vadd.f32 %v3316_v40, %v3303_v35  ;;  %v3330_v42 = vpop.f32.mrf.mxu3 }
 0x796   : > { %v3331_v36 = vadd.f32 %v3330_v42, %v3317_v56 }
 0x798   : > { %v3345_v46 = vadd.f32 %v3344_v43, %v3331_v36 }
 0x79a   : > { %v3349_v48 = vadd.f32 %v3345_v46, %v9540_v3 }
 0x79b   : > { %v3318_v49 = vpop.f32.mrf.mxu2 }
 0x79c   : > { %v3319_v50 = vadd.f32 %v3318_v49, %v3305_v47  ;;  %v3353_v37 = vsel %vm663_vm0, %v3349_v48, 0.0  ;;  %v3332_v52 = vpop.f32.mrf.mxu3  ;;  %v8902_v47 = vld [vmem:[%s11274_s14] ss:$0 sm:$0xff] }
 0x79d   : > { %3354 = vadd.xlane.f32.xlu0 %v3353_v37  ;;  %v8903_v37 = vld [vmem:[%s11275_s15] ss:$0 sm:$0xff] }
 0x79e   : > { %v3333_v38 = vadd.f32 %v3332_v52, %v3319_v50 }
 0x7a0   : > { %v3347_v39 = vadd.f32 %v3346_v55, %v3333_v38 }
 0x7a2   : > { %v3350_v57 = vadd.f32 %v3347_v39, %v9542_v4 }
 0x7a4   : > { %v3356_v59 = vsel %vm663_vm0, %v3350_v57, 0.0 }
 0x7a5   : > { %3357 = vadd.xlane.f32.xlu2 %v3356_v59 }
 0x810   : > { %v3355_v8 = vpop.xlane.xlu0 %3354 }
 0x811   : > { %v3359_v61 = vmul.f32 %v3355_v8, %v9304_v51  ;;  %v7154_v8 = vld [vmem:[%s11265_s5 + $0x2] sm:$0x3] }
 0x813   : > { %v10175_v62 = vsub.f32 %v3349_v48, %v3359_v61  ;;  %v3420_v61 = vperm.slane %v7154_v8, 0 }
 0x815   : > { %v3363_v3 = vmul.f32 %v10175_v62, %v10175_v62 }
 0x817   : > { %v3365_v53 = vsel %vm663_vm0, %v3363_v3, 0.0 }
 0x818   : > { %v3358_v0 = vpop.xlane.xlu2 %3357  ;;  %3366 = vadd.xlane.f32.xlu0 %v3365_v53 }
 0x819   : > { %v3360_v2 = vmul.f32 %v3358_v0, %v9304_v51  ;;  %v3421_v0 = vperm.slane %v7154_v8, 1 }
 0x81b   : > { %v10181_v58 = vsub.f32 %v3350_v57, %v3360_v2 }
 0x81d   : > { %v3364_v4 = vmul.f32 %v10181_v58, %v10181_v58 }
 0x81f   : > { %v3368_v5 = vsel %vm663_vm0, %v3364_v4, 0.0 }
 0x820   : > { %3369 = vadd.xlane.f32.xlu1 %v3368_v5 }
 0x88b   : > { %v3367_v22 = vpop.xlane.xlu0 %3366 }
 0x88c   : > { %v3371_v24 = vmul.f32 %v3367_v22, %v9304_v51 }
 0x88e   : > { %v3373_v27 = vadd.f32 1e-05, %v3371_v24 }
 0x890   : > { %8952 = vrsqrt.f32 %v3373_v27  ;;  %vm3381_vm14 = vweird.f32 %v3373_v27 }
 0x893   : > { %v3370_v30 = vpop.xlane.xlu1 %3369 }
 0x894   : > { %v3372_v31 = vmul.f32 %v3370_v30, %v9304_v51 }
 0x896   : > { %v8953_v32 = vpop.eup %8952  ;;  %v3374_v33 = vadd.f32 1e-05, %v3372_v31 }
 0x897   : > { %v3376_v34 = vmul.f32 %v8953_v32, %v3373_v27  ;;  %vm3382_vm13 = vweird.f32 %v8953_v32 }
 0x898   : > { %8954 = vrsqrt.f32 %v3374_v33  ;;  %vm3383_vm15 = vmor %vm3381_vm14, %vm3382_vm13  ;;  %vm3391_vm7 = vweird.f32 %v3374_v33  ;;  %vm6210_vm14 = vcmask 523271  }
 0x899   : > { %v3377_v35 = vmul.f32 %v8953_v32, %v3376_v34 }
 0x89b   : > { %v3378_v40 = vmul.f32 0.5, %v3377_v35 }
 0x89d   : > { %v3379_v41 = vsub.f32 1.5, %v3378_v40 }
 0x89e   : > { %v8955_v56 = vpop.eup %8954 }
 0x89f   : > { %v3380_v42 = vmul.f32 %v8953_v32, %v3379_v41  ;;  %v3386_v43 = vmul.f32 %v8955_v56, %v3374_v33  ;;  %vm3392_vm6 = vweird.f32 %v8955_v56 }
 0x8a0   : > { %vm3393_vm8 = vmor %vm3391_vm7, %vm3392_vm6  ;;  %vm6219_vm6 = vcmask 7175  }
 0x8a1   : > { %v3387_v36 = vmul.f32 %v8955_v56, %v3386_v43  ;;  %v3384_v44 = vsel %vm3383_vm15, %v8953_v32, %v3380_v42 }
 0x8a2   : > { %v3395_v48 = vmul.f32 %v3384_v44, %v10175_v62 }
 0x8a3   : > { %v3388_v45 = vmul.f32 0.5, %v3387_v36 }
 0x8a4   : > { %v3400_v52 = vmul.f32 %v8902_v47, %v3395_v48 }
 0x8a5   : > { %v3389_v46 = vsub.f32 1.5, %v3388_v45 }
 0x8a6   : > { %v10244_v39 = vadd.f32 %v8903_v37, %v3400_v52 }
 0x8a7   : > { %v3390_v49 = vmul.f32 %v8955_v56, %v3389_v46 }
 0x8a9   : > { %v3394_v50 = vsel %vm3393_vm8, %v8955_v56, %v3390_v49 }
 0x8aa   : > { %v3396_v38 = vmul.f32 %v3394_v50, %v10181_v58 }
 0x8ac   : > { %v3401_v55 = vmul.f32 %v8902_v47, %v3396_v38 }
 0x8ae   : > { %v10246_v57 = vadd.f32 %v8903_v37, %v3401_v55 }
 0x8b0   : > { %v3407_v59 = vpack.c.bf16 %v10246_v57, %v10244_v39 }
 0x8b2   : > { %7187 = vmatmul.msk.bf16.vlgmr.msra.gmra.mxu1 %vm663_vm0, %v3407_v59  ;;  %7188 = vmatmul.msk.bf16.vlgmr.msrb.gmra.mxu2 %vm663_vm0, %v3407_v59 }
 0x92f   : > { %v3476_v62 = vpop.f32.mrf.mxu1 }
 0x930   : > { %v3477_v3 = vadd.f32 %v3476_v62, %v3420_v61 }
 0x932   : > { %v3495_v53 = vpack.c.bf16 %v3477_v3, %v3477_v3 }
 0x934   : > { %v3595_v2 = vunpack.c.l.b16 %v3495_v53 }
 0x935   : > { %v3490_v58 = vpop.f32.mrf.mxu2 }
 0x936   : > { %v3491_v4 = vadd.f32 %v3490_v58, %v3421_v0  ;;  %v3596_v5 = vpack.c.b16 %v3595_v2, %v3595_v2 }
 0x937   : > { %v3478_v6 = vpop.f32.mrf.mxu1 }
 0x938   : > { %v3540_v7 = vpack.c.bf16 %v3491_v4, %v3491_v4  ;;  %v3479_v9 = vadd.f32 %v3478_v6, %v3420_v61  ;;  %3597 = vrot.lane.b32.xlu0 %v3596_v5, %s9006_s2 }
 0x93a   : > { %v3577_v60 = vsel %vm778_vm1, %v3540_v7, 0  ;;  %v8834_v10 = vpack.i.bf16 %v3479_v9, %v3477_v3  ;;  %v10258_v11 = vpack.c.bf16 %v3479_v9, %v3479_v9  ;;  %v3632_v15 = vunpack.c.l.b16 %v3540_v7 }
 0x93b   : > { %3586 = vmatpush.bf16.msrb.mxu0 %v3577_v60 }
 0x93c   : > { %8835 = vrot.lane.b32.xlu2 %v8834_v10, %s9007_s23  ;;  %v3886_v12 = vunpack.c.l.b16 %v10258_v11  ;;  %v3633_v17 = vpack.c.b16 %v3632_v15, %v3632_v15  ;;  %s11295_s23 = smov 32  }
 0x93d   : > { %v3492_v14 = vpop.f32.mrf.mxu2 }
 0x93e   : > { %v3887_v13 = vpack.c.b16 %v3886_v12, %v3886_v12  ;;  %v3493_v16 = vadd.f32 %v3492_v14, %v3421_v0 }
 0x940   : > { %3714 = vrot.lane.b32.xlu0 %v3596_v5, %s11292_s28  ;;  %v10265_v54 = vpack.c.bf16 %v3493_v16, %v3493_v16 }
 0x942   : > { %v3923_v18 = vunpack.c.l.b16 %v10265_v54 }
 0x944   : > { %3657 = vrot.lane.b32.xlu2 %v3596_v5, %s11293_s30  ;;  %v10270_v19 = vpack.c.b16 %v3923_v18, %v3923_v18 }
 0x948   : > { %3948 = vrot.lane.b32.xlu0 %v3887_v13, %s11293_s30 }
 0x94c   : > { %3888 = vrot.lane.b32.xlu2 %v3887_v13, %s9006_s2 }
 0x950   : > { %3748 = vrot.lane.b32.xlu0 %v3633_v17, %s11292_s28 }
 0x954   : > { %4005 = vrot.lane.b32.xlu2 %v3887_v13, %s11292_s28 }
 0x958   : > { %3925 = vrot.lane.b32.xlu0 %v10270_v19, %s9006_s2 }
 0x95c   : > { %3691 = vrot.lane.b32.xlu2 %v3633_v17, %s11293_s30 }
 0x996   : > { %v8836_v20 = vpop.permute.xlu2 %8835 }
 0x997   : > { %8840 = vxpose.xlu1.b32.start.end [1/1] (short) (narrow) %v8836_v20, 64 }
 0x99e   : > { %v3658_v21 = vpop.permute.xlu2 %3657 }
 0x9a6   : > { %v10275_v22 = vpop.permute.xlu2 %3888 }
 0x9aa   : > { %v3598_v45 = vpop.permute.xlu0 %3597 }
 0x9ae   : > { %v10277_v23 = vpop.permute.xlu2 %4005 }
 0x9b6   : > { %v3692_v24 = vpop.permute.xlu2 %3691 }
 0x9b7   : > { %v3697_v63 = vsel %vm778_vm1, %v3692_v24, 0 }
 0x9b8   : > { %3706 = vmatpush.bf16.msra.mxu0 %v3697_v63 }
 0xa29   : > { %3634 = vrot.lane.b32.xlu1 %v3633_v17, %s9006_s2  ;;  %s11294_s2 = smov 16  }
 0xa3b   : > { %v8841_v25 = vpop.trf.xlu1 }
 0xa3c   : > { %v8842_v26 = vunpack.i.l.bf16 %v8841_v25  ;;  %v8845_v48 = vunpack.i.h.bf16 %v8841_v25 }
 0xa3e   : > { %v3532_v1 = vpack.c.bf16 %v8842_v26, %v8842_v26  ;;  %v3823_v59 = vpack.c.bf16 %v8845_v48, %v8845_v48 }
 0xa40   : > { %v3543_v30 = vunpack.c.l.b16 %v3532_v1  ;;  %v3834_v2 = vunpack.c.l.b16 %v3823_v59 }
 0xa43   : > { %v8846_v27 = vpop.trf.xlu1 }
 0xa44   : > { %v8847_v28 = vunpack.i.l.bf16 %v8846_v27  ;;  %v8850_v46 = vunpack.i.h.bf16 %v8846_v27 }
 0xa46   : > { %v3533_v29 = vpack.c.bf16 %v8847_v28, %v8847_v28  ;;  %v3824_v49 = vpack.c.bf16 %v8850_v46, %v8850_v46 }
 0xa48   : > { %v3544_v31 = vunpack.c.l.b16 %v3533_v29  ;;  %v3835_v62 = vunpack.c.l.b16 %v3824_v49 }
 0xa4a   : > { %v3545_v32 = vpack.c.b16 %v3544_v31, %v3543_v30  ;;  %v3836_v6 = vpack.c.b16 %v3835_v62, %v3834_v2 }
 0xa4b   : > { %v8851_v33 = vpop.trf.xlu1 }
 0xa4c   : > { %3557 = vmatpush.bf16.msrb.mxu3 %v3545_v32  ;;  %v8852_v34 = vunpack.i.l.bf16 %v8851_v33  ;;  %v8855_v12 = vunpack.i.h.bf16 %v8851_v33  ;;  %v3715_v32 = vpop.permute.xlu0 %3714 }
 0xa4e   : > { %v3534_v40 = vpack.c.bf16 %v8852_v34, %v8852_v34  ;;  %v3825_v20 = vpack.c.bf16 %v8855_v12, %v8855_v12  ;;  %v3868_v12 = vsel %vm778_vm1, %v10265_v54, 0 }
 0xa4f   : > { %7189 = vmatmul.msk.bf16.vlgmr.msrb.gmra.mxu3 %vm747_vm2, %v3495_v53 }
 0xa50   : > { %v3601_v42 = vunpack.c.l.b16 %v3534_v40  ;;  %v3892_v28 = vunpack.c.l.b16 %v3825_v20 }
 0xa53   : > { %v8856_v35 = vpop.trf.xlu1 }
 0xa54   : > { %v8857_v41 = vunpack.i.l.bf16 %v8856_v35  ;;  %v8860_v60 = vunpack.i.h.bf16 %v8856_v35  ;;  %v3949_v34 = vpop.permute.xlu0 %3948 }
 0xa56   : > { %v3535_v56 = vpack.c.bf16 %v8857_v41, %v8857_v41  ;;  %v3826_v13 = vpack.c.bf16 %v8860_v60, %v8860_v60 }
 0xa58   : > { %v3602_v43 = vunpack.c.l.b16 %v3535_v56  ;;  %v3893_v25 = vunpack.c.l.b16 %v3826_v13 }
 0xa5a   : > { %v3603_v36 = vpack.c.b16 %v3602_v43, %v3601_v42  ;;  %v3894_v31 = vpack.c.b16 %v3893_v25, %v3892_v28 }
 0xa5b   : > { %v8861_v44 = vpop.trf.xlu1 }
 0xa5c   : > { %3615 = vmatpush.bf16.msrb.mxu1 %v3603_v36  ;;  %v8862_v47 = vunpack.i.l.bf16 %v8861_v44  ;;  %v8865_v50 = vunpack.i.h.bf16 %v8861_v44  ;;  %v3749_v35 = vpop.permute.xlu0 %3748 }
 0xa5d   : > { %v3754_v56 = vsel %vm778_vm1, %v3749_v35, 0 }
 0xa5e   : > { %v3536_v37 = vpack.c.bf16 %v8862_v47, %v8862_v47  ;;  %v3827_v3 = vpack.c.bf16 %v8865_v50, %v8865_v50 }
 0xa5f   : > { %7191 = vmatmul.msk.bf16.vlgmr.msrb.gmra.mxu1 %vm747_vm2, %v3598_v45 }
 0xa60   : > { %v3661_v53 = vunpack.c.l.b16 %v3536_v37  ;;  %v3952_v7 = vunpack.c.l.b16 %v3827_v3 }
 0xa63   : > { %v8866_v52 = vpop.trf.xlu1 }
 0xa64   : > { %v8870_v38 = vunpack.i.h.bf16 %v8866_v52  ;;  %v8867_v55 = vunpack.i.l.bf16 %v8866_v52 }
 0xa66   : > { %v3828_v8 = vpack.c.bf16 %v8870_v38, %v8870_v38  ;;  %v3537_v61 = vpack.c.bf16 %v8867_v55, %v8867_v55 }
 0xa68   : > { %v3662_v0 = vunpack.c.l.b16 %v3537_v61  ;;  %v3953_v58 = vunpack.c.l.b16 %v3828_v8 }
 0xa6a   : > { %v3663_v4 = vpack.c.b16 %v3662_v0, %v3661_v53  ;;  %v3954_v9 = vpack.c.b16 %v3953_v58, %v3952_v7 }
 0xa6b   : > { %v8871_v5 = vpop.trf.xlu1 }
 0xa6c   : > { %3675 = vmatpush.bf16.msra.mxu3 %v3663_v4  ;;  %v8872_v10 = vunpack.i.l.bf16 %v8871_v5  ;;  %v8875_v14 = vunpack.i.h.bf16 %v8871_v5  ;;  %v3926_v4 = vpop.permute.xlu0 %3925 }
 0xa6e   : > { %v3538_v15 = vpack.c.bf16 %v8872_v10, %v8872_v10  ;;  %v3829_v26 = vpack.c.bf16 %v8875_v14, %v8875_v14 }
 0xa6f   : > { %7193 = vmatmul.msk.bf16.vlgmr.msra.gmra.mxu3 %vm747_vm2, %v3658_v21 }
 0xa70   : > { %3848 = vmatpush.bf16.msrb.mxu3 %v3836_v6  ;;  %v3718_v27 = vunpack.c.l.b16 %v3538_v15  ;;  %v4009_v21 = vunpack.c.l.b16 %v3829_v26  ;;  %v3931_v15 = vsel %vm778_vm1, %v3926_v4, 0 }
 0xa73   : > { %v8876_v16 = vpop.trf.xlu1 }
 0xa74   : > { %3966 = vmatpush.bf16.msra.mxu3 %v3954_v9  ;;  %v8880_v17 = vunpack.i.h.bf16 %v8876_v16  ;;  %v8877_v18 = vunpack.i.l.bf16 %v8876_v16 }
 0xa76   : > { %v3830_v24 = vpack.c.bf16 %v8880_v17, %v8880_v17  ;;  %v3539_v63 = vpack.c.bf16 %v8877_v18, %v8877_v18 }
 0xa78   : > { %v3719_v1 = vunpack.c.l.b16 %v3539_v63  ;;  %v4010_v29 = vunpack.c.l.b16 %v3830_v24 }
 0xa7a   : > { %v3720_v30 = vpack.c.b16 %v3719_v1, %v3718_v27  ;;  %v4011_v33 = vpack.c.b16 %v4010_v29, %v4009_v21 }
 0xa7c   : > { %3732 = vmatpush.bf16.msra.mxu1 %v3720_v30 }
 0xa7f   : > { %7195 = vmatmul.msk.bf16.vlgmr.msra.gmra.mxu1 %vm747_vm2, %v3715_v32  ;;  %7197 = vmatmul.msk.bf16.vlgmr.msrb.gmra.mxu3 %vm747_vm2, %v10258_v11 }
 0xa80   : > { %3906 = vmatpush.bf16.msrb.mxu1 %v3894_v31 }
 0xa84   : > { %4023 = vmatpush.bf16.msra.mxu1 %v4011_v33 }
 0xa8f   : > { %7199 = vmatmul.msk.bf16.vlgmr.msrb.gmra.mxu1 %vm747_vm2, %v10275_v22  ;;  %7201 = vmatmul.msk.bf16.vlgmr.msra.gmra.mxu3 %vm747_vm2, %v3949_v34 }
 0xa9b   : > { %v3635_v40 = vpop.permute.xlu1 %3634 }
 0xa9c   : > { %v3640_v41 = vsel %vm778_vm1, %v3635_v40, 0 }
 0xa9d   : > { %3649 = vmatpush.bf16.msra.mxu2 %v3640_v41 }
 0xa9f   : > { %7203 = vmatmul.msk.bf16.vlgmr.msra.gmra.mxu1 %vm747_vm2, %v10277_v23 }
 0xaa1   : > { %3763 = vmatpush.bf16.msrb.mxu2 %v3754_v56 }
 0xad2   : > { %v3559_v42 = vpop.f32.mrf.mxu3 }
 0xad3   : > { %v3563_v11 = vsel %vm764_vm3, %v3559_v42, -inf }
 0xad4   : > { %3564 = vmax.xlane.f32.xlu2 %v3563_v11 }
 0xada   : > { %v3561_v43 = vpop.f32.mrf.mxu3 }
 0xadc   : > { %v3617_v36 = vpop.f32.mrf.mxu1 }
 0xadd   : > { %v3621_v22 = vsel %vm764_vm3, %v3617_v36, -inf }
 0xade   : > { %3622 = vmax.xlane.f32.xlu0 %v3621_v22 }
 0xae4   : > { %v3619_v44 = vpop.f32.mrf.mxu1 }
 0xaf2   : > { %v3677_v45 = vpop.f32.mrf.mxu3 }
 0xaf3   : > { %v3681_v46 = vsel %vm764_vm3, %v3677_v45, -inf }
 0xaf4   : > { %3682 = vmax.xlane.f32.xlu2 %v3681_v46 }
 0xafa   : > { %v3679_v47 = vpop.f32.mrf.mxu3 }
 0xafc   : > { %v3734_v48 = vpop.f32.mrf.mxu1 }
 0xafd   : > { %v3738_v49 = vsel %vm764_vm3, %v3734_v48, -inf }
 0xafe   : > { %3739 = vmax.xlane.f32.xlu0 %v3738_v49 }
 0xb02   : > { %v3850_v23 = vpop.f32.mrf.mxu3 }
 0xb03   : > { %v3854_v50 = vsel %vm764_vm3, %v3850_v23, -inf }
 0xb04   : > { %v3736_v37 = vpop.f32.mrf.mxu1  ;;  %3855 = vmax.xlane.f32.xlu2 %v3854_v50 }
 0xb0a   : > { %v3852_v52 = vpop.f32.mrf.mxu3 }
 0xb0c   : > { %v3908_v38 = vpop.f32.mrf.mxu1 }
 0xb0d   : > { %v3912_v55 = vsel %vm764_vm3, %v3908_v38, -inf }
 0xb0e   : > { %3913 = vmax.xlane.f32.xlu0 %v3912_v55 }
 0xb12   : > { %v10300_v59 = vpop.f32.mrf.mxu3 }
 0xb13   : > { %v3972_v8 = vsel %vm764_vm3, %v10300_v59, -inf }
 0xb14   : > { %v3910_v61 = vpop.f32.mrf.mxu1  ;;  %3973 = vmax.xlane.f32.xlu2 %v3972_v8 }
 0xb1a   : > { %v3970_v62 = vpop.f32.mrf.mxu3 }
 0xb1c   : > { %v10304_v3 = vpop.f32.mrf.mxu1 }
 0xb1d   : > { %v4029_v53 = vsel %vm764_vm3, %v10304_v3, -inf }
 0xb1e   : > { %4030 = vmax.xlane.f32.xlu2 %v4029_v53 }
 0xb22   : > { %4039 = vrot.lane.b32.xlu0 %v10270_v19, %s11292_s28 }
 0xb24   : > { %v4027_v0 = vpop.f32.mrf.mxu1 }
 0xb36   : > { %3982 = vrot.lane.b32.xlu2 %v10270_v19, %s11293_s30  ;;  %s577_s30 = scalar_lea.vmem %s11278_s18, %s11298_s0 }
 0xb47   : > { %v3565_v2 = vpop.xlane.xlu2 %3564 }
 0xb48   : > { %v3566_v58 = vsub.f32 %v3559_v42, %v3565_v2 }
 0xb4a   : > { %v3567_v5 = vmul.f32 1.442695, %v3566_v58 }
 0xb4c   : > { %8956 = vpow2.f32 %v3567_v5 }
 0xb51   : > { %v3623_v6 = vpop.xlane.xlu0 %3622 }
 0xb52   : > { %v8957_v7 = vpop.eup %8956  ;;  %v3624_v9 = vsub.f32 %v3617_v36, %v3623_v6 }
 0xb53   : > { %v3572_v60 = vpack.c.bf16 %v8957_v7, %v8957_v7  ;;  %v3569_v49 = vsel %vm764_vm3, %v8957_v7, 0.0 }
 0xb54   : > { %v3625_v10 = vmul.f32 1.442695, %v3624_v9 }
 0xb55   : > { %7190 = vmatmul.msk.bf16.vlgmr.msrb.gmra.mxu0 %vm764_vm3, %v3572_v60 }
 0xb56   : > { %8958 = vpow2.f32 %v3625_v10  ;;  %3877 = vmatpush.bf16.msrb.mxu0 %v3868_v12 }
 0xb5c   : > { %v8959_v13 = vpop.eup %8958 }
 0xb5d   : > { %v3630_v14 = vpack.c.bf16 %v8959_v13, %v8959_v13  ;;  %v3627_v19 = vsel %vm764_vm3, %v8959_v13, 0.0 }
 0xb5e   : > { %3628 = vadd.xlane.f32.xlu0 %v3627_v19 }
 0xb5f   : > { %7192 = vmatmul.msk.bf16.vlgmr.msra.gmra.mxu2 %vm764_vm3, %v3630_v14 }
 0xb60   : > { %3940 = vmatpush.bf16.msra.mxu2 %v3931_v15 }
 0xb67   : > { %v3683_v16 = vpop.xlane.xlu2 %3682 }
 0xb68   : > { %v3684_v17 = vsub.f32 %v3677_v45, %v3683_v16 }
 0xb6a   : > { %v3685_v18 = vmul.f32 1.442695, %v3684_v17 }
 0xb6c   : > { %8960 = vpow2.f32 %v3685_v18 }
 0xb71   : > { %v3740_v20 = vpop.xlane.xlu0 %3739 }
 0xb72   : > { %v8961_v24 = vpop.eup %8960  ;;  %v3741_v63 = vsub.f32 %v3734_v48, %v3740_v20 }
 0xb73   : > { %v3690_v54 = vpack.c.bf16 %v8961_v24, %v8961_v24  ;;  %v3687_v25 = vsel %vm764_vm3, %v8961_v24, 0.0 }
 0xb74   : > { %v3742_v26 = vmul.f32 1.442695, %v3741_v63  ;;  %3688 = vadd.xlane.f32.xlu1 %v3687_v25 }
 0xb75   : > { %7194 = vmatmul.msk.bf16.vlgmr.msra.gmra.mxu0 %vm764_vm3, %v3690_v54 }
 0xb76   : > { %8962 = vpow2.f32 %v3742_v26 }
 0xb77   : > { %v3856_v27 = vpop.xlane.xlu2 %3855 }
 0xb78   : > { %v3857_v1 = vsub.f32 %v3850_v23, %v3856_v27 }
 0xb7a   : > { %v3858_v28 = vmul.f32 1.442695, %v3857_v1 }
 0xb7c   : > { %v8963_v29 = vpop.eup %8962  ;;  %8964 = vpow2.f32 %v3858_v28 }
 0xb7d   : > { %v3747_v30 = vpack.c.bf16 %v8963_v29, %v8963_v29  ;;  %v3744_v31 = vsel %vm764_vm3, %v8963_v29, 0.0 }
 0xb7e   : > { %3745 = vadd.xlane.f32.xlu0 %v3744_v31 }
 0xb7f   : > { %7196 = vmatmul.msk.bf16.vlgmr.msrb.gmra.mxu2 %vm764_vm3, %v3747_v30 }
 0xb81   : > { %v3914_v21 = vpop.xlane.xlu0 %3913 }
 0xb82   : > { %v8965_v32 = vpop.eup %8964  ;;  %v3915_v33 = vsub.f32 %v3908_v38, %v3914_v21 }
 0xb83   : > { %v3863_v34 = vpack.c.bf16 %v8965_v32, %v8965_v32 }
 0xb84   : > { %v3916_v35 = vmul.f32 1.442695, %v3915_v33  ;;  %v8560_v33 = vld [vmem:[%s11266_s6 + $0x38] sm:$0xff] }
 0xb85   : > { %7198 = vmatmul.msk.bf16.vlgmr.msrb.gmra.mxu0 %vm764_vm3, %v3863_v34  ;;  %4123 = vmatpush.bf16.msrb.mxu3 %v8560_v33  ;;  %v8559_v34 = vld [vmem:[%s11266_s6 + $0x30] sm:$0xff]  ;;  %v8602_v33 = vld [vmem:[%s11270_s10 + $0x344] sm:$0xf0] }
 0xb86   : > { %8966 = vpow2.f32 %v3916_v35  ;;  %v8558_v35 = vld [vmem:[%s11266_s6 + $0x28] sm:$0xff] }
 0xb87   : > { %v3974_v40 = vpop.xlane.xlu2 %3973 }
 0xb88   : > { %v3975_v41 = vsub.f32 %v10300_v59, %v3974_v40  ;;  %v3860_v59 = vsel %vm764_vm3, %v8965_v32, 0.0  ;;  %v8557_v40 = vld [vmem:[%s11266_s6 + $0x20] sm:$0xff] }
 0xb89   : > { %4124 = vmatpush.bf16.msrb.mxu3 %v8559_v34 }
 0xb8a   : > { %v3976_v56 = vmul.f32 1.442695, %v3975_v41 }
 0xb8c   : > { %v8967_v42 = vpop.eup %8966  ;;  %8968 = vpow2.f32 %v3976_v56 }
 0xb8d   : > { %v3921_v11 = vpack.c.bf16 %v8967_v42, %v8967_v42  ;;  %v3918_v43 = vsel %vm764_vm3, %v8967_v42, 0.0  ;;  %4125 = vmatpush.bf16.msrb.mxu3 %v8558_v35 }
 0xb8e   : > { %3919 = vadd.xlane.f32.xlu2 %v3918_v43 }
 0xb8f   : > { %7200 = vmatmul.msk.bf16.vlgmr.msra.gmra.mxu2 %vm764_vm3, %v3921_v11 }
 0xb91   : > { %v4031_v36 = vpop.xlane.xlu2 %4030  ;;  %4126 = vmatpush.bf16.msrb.mxu3 %v8557_v40  ;;  %v8594_v40 = vld [vmem:[%s11270_s10 + $0x30c] sm:$0xf] }
 0xb92   : > { %v8969_v22 = vpop.eup %8968  ;;  %v4032_v44 = vsub.f32 %v10304_v3, %v4031_v36 }
 0xb93   : > { %v3978_v45 = vsel %vm764_vm3, %v8969_v22, 0.0  ;;  %v3981_v52 = vpack.c.bf16 %v8969_v22, %v8969_v22 }
 0xb94   : > { %v4033_v46 = vmul.f32 1.442695, %v4032_v44  ;;  %v4040_v47 = vpop.permute.xlu0 %4039  ;;  %3979 = vadd.xlane.f32.xlu0 %v3978_v45 }
 0xb95   : > { %v4045_v48 = vsel %vm778_vm1, %v4040_v47, 0 }
 0xb96   : > { %8970 = vpow2.f32 %v4033_v46  ;;  %4054 = vmatpush.bf16.msrb.mxu2 %v4045_v48  ;;  %3570 = vadd.xlane.f32.xlu2 %v3569_v49 }
 0xb99   : > { %v3983_v23 = vpop.permute.xlu2 %3982 }
 0xb9a   : > { %v3988_v50 = vsel %vm778_vm1, %v3983_v23, 0 }
 0xb9b   : > { %3997 = vmatpush.bf16.msra.mxu0 %v3988_v50 }
 0xb9c   : > { %v8971_v37 = vpop.eup %8970 }
 0xb9d   : > { %v4038_v38 = vpack.c.bf16 %v8971_v37, %v8971_v37  ;;  %v4035_v55 = vsel %vm764_vm3, %v8971_v37, 0.0 }
 0xb9e   : > { %4036 = vadd.xlane.f32.xlu0 %v4035_v55  ;;  %7202 = vmatmul.msk.bf16.vlgmr.msra.gmra.mxu0 %vm764_vm3, %v3981_v52 }
 0xb9f   : > { %7204 = vmatmul.msk.bf16.vlgmr.msrb.gmra.mxu2 %vm764_vm3, %v4038_v38 }
 0xba6   : > { %3861 = vadd.xlane.f32.xlu0 %v3860_v59 }
 0xbd1   : > { %v3629_v2 = vpop.xlane.xlu0 %3628 }
 0xbd2   : > { %v10335_v8 = vpop.f32.mrf.mxu0  ;;  %8972 = vrcp.f32 %v3629_v2 }
 0xbd8   : > { %v8973_v60 = vpop.eup %8972 }
 0xbda   : > { %v3590_v61 = vpop.f32.mrf.mxu0 }
 0xbe2   : > { %v3651_v62 = vpop.f32.mrf.mxu2 }
 0xbe3   : > { %v3656_v19 = vmul.f32 %v8973_v60, %v3651_v62 }
 0xbe7   : > { %v3689_v10 = vpop.xlane.xlu1 %3688 }
 0xbea   : > { %v3653_v3 = vpop.f32.mrf.mxu2 }
 0xbf1   : > { %v3746_v5 = vpop.xlane.xlu0 %3745 }
 0xbf2   : > { %v3708_v53 = vpop.f32.mrf.mxu0 }
 0xbfa   : > { %v3710_v0 = vpop.f32.mrf.mxu0 }
 0xc01   : > { %v3920_v6 = vpop.xlane.xlu2 %3919 }
 0xc02   : > { %v3765_v58 = vpop.f32.mrf.mxu2  ;;  %v3879_v4 = vpop.f32.mrf.mxu0  ;;  %8974 = vrcp.f32 %v3920_v6 }
 0xc03   : > { %8976 = vrcp.f32 %v3689_v10 }
 0xc07   : > { %v3980_v12 = vpop.xlane.xlu0 %3979 }
 0xc08   : > { %v8975_v13 = vpop.eup %8974  ;;  %8978 = vrcp.f32 %v3980_v12 }
 0xc09   : > { %v8977_v18 = vpop.eup %8976  ;;  %8980 = vrcp.f32 %v3746_v5  ;;  %v3571_v41 = vpop.xlane.xlu2 %3570 }
 0xc0a   : > { %v3767_v7 = vpop.f32.mrf.mxu2  ;;  %v3881_v9 = vpop.f32.mrf.mxu0  ;;  %v3713_v54 = vmul.f32 %v8977_v18, %v3708_v53 }
 0xc0e   : > { %v8979_v24 = vpop.eup %8978 }
 0xc0f   : > { %v8981_v27 = vpop.eup %8980 }
 0xc10   : > { %v3770_v29 = vmul.f32 %v8981_v27, %v3765_v58  ;;  %v7503_v27 = vld [vmem:[%s11270_s10 + $0x3c8] sm:$0xf0] }
 0xc11   : > { %v4037_v17 = vpop.xlane.xlu0 %4036 }
 0xc12   : > { %v3942_v14 = vpop.f32.mrf.mxu2  ;;  %8982 = vrcp.f32 %v4037_v17  ;;  %v8609_v17 = vld [vmem:[%s11270_s10 + $0x384] sm:$0xf] }
 0xc13   : > { %v3947_v15 = vmul.f32 %v8975_v13, %v3942_v14  ;;  %8984 = vrcp.f32 %v3571_v41  ;;  %v7439_v41 = vld [vmem:[%s11270_s10 + $0x348] sm:$0xf0] }
 0xc15   : > { %v8881_v16 = vpack.i.bf16 %v3947_v15, %v3656_v19  ;;  %v7493_v15 = vld [vmem:[%s11270_s10 + $0x380] sm:$0xf] }
 0xc17   : > { %8882 = vrot.lane.b32.xlu2 %v8881_v16, %s11294_s2  ;;  %v8617_v16 = vld [vmem:[%s11270_s10 + $0x3bc] sm:$0xf0] }
 0xc18   : > { %v8983_v1 = vpop.eup %8982  ;;  %v7494_v18 = vor.u32 %v8617_v16, %v7493_v15  ;;  %v8612_v15 = vld [vmem:[%s11270_s10 + $0x39c] sm:$0xf] }
 0xc19   : > { %v3862_v56 = vpop.xlane.xlu0 %3861  ;;  %v8985_v11 = vpop.eup %8984  ;;  %v7519_v16 = vld [vmem:[%s11270_s10 + $0x3d8] sm:$0xf0] }
 0xc1a   : > { %v3944_v20 = vpop.f32.mrf.mxu2  ;;  %8986 = vrcp.f32 %v3862_v56  ;;  %v3593_v47 = vmul.f32 %v8985_v11, %v10335_v8  ;;  %v8904_v8 = vld [vmem:[%s11267_s7 + $0x1] ss:$0 sm:$0xff]  ;;  %4623 = vmatpush.bf16.msrb.mxu0 %v7494_v18  ;;  %v7442_v56 = vor.u32 %v8594_v40, %v7439_v41  ;;  %v8579_v40 = vld [vmem:[%s11270_s10 + $0x294] sm:$0xf] }
 0xc1b   : > { %v3999_v63 = vpop.f32.mrf.mxu0  ;;  %v7495_v20 = vld [vmem:[%s11270_s10 + $0x3c0] sm:$0xf0]  ;;  %v8585_v11 = vld [vmem:[%s11270_s10 + $0x2bc] sm:$0xf0]  ;;  %v7383_v41 = vld [vmem:[%s11270_s10 + $0x2d0] sm:$0xf0] }
 0xc1c   : > { %v4004_v25 = vmul.f32 %v8979_v24, %v3999_v63  ;;  %v7501_v24 = vld [vmem:[%s11270_s10 + $0x388] sm:$0xf] }
 0xc1d   : > { %v8618_v63 = vld [vmem:[%s11270_s10 + $0x3c4] sm:$0xf0] }
 0xc1e   : > { %v8886_v26 = vpack.i.bf16 %v4004_v25, %v3713_v54  ;;  %v7498_v54 = vor.u32 %v8609_v17, %v7495_v20  ;;  %v7502_v25 = vor.u32 %v8618_v63, %v7501_v24  ;;  %v7445_v17 = vld [vmem:[%s11270_s10 + $0x310] sm:$0xf]  ;;  %v7522_v20 = vor.u32 %v8612_v15, %v7519_v16  ;;  %v8595_v63 = vld [vmem:[%s11270_s10 + $0x314] sm:$0xf]  ;;  %v7525_v15 = vld [vmem:[%s11270_s10 + $0x3a0] sm:$0xf] }
 0xc1f   : > { %v8603_v24 = vld [vmem:[%s11270_s10 + $0x34c] sm:$0xf0]  ;;  %v8613_v16 = vld [vmem:[%s11270_s10 + $0x3a4] sm:$0xf] }
 0xc20   : > { %8887 = vrot.lane.b32.xlu1 %v8886_v26, %s11295_s23  ;;  %v8987_v36 = vpop.eup %8986  ;;  %v8610_v26 = vld [vmem:[%s11270_s10 + $0x38c] sm:$0xf]  ;;  %4637 = vmatpush.bf16.msrb.mxu1 %v7498_v54  ;;  %v7447_v54 = vld [vmem:[%s11270_s10 + $0x350] sm:$0xf0] }
 0xc21   : > { %v3884_v48 = vmul.f32 %v8987_v36, %v3879_v4  ;;  %4651 = vmatpush.bf16.msra.mxu2 %v7502_v25  ;;  %v7446_v25 = vor.u32 %v8603_v24, %v7445_v17  ;;  %v7527_v17 = vld [vmem:[%s11270_s10 + $0x3e0] sm:$0xf0]  ;;  %v8622_v24 = vld [vmem:[%s11270_s10 + $0x3e4] sm:$0xf0] }
 0xc22   : > { %v4056_v28 = vpop.f32.mrf.mxu2 }
 0xc23   : > { %v4061_v30 = vmul.f32 %v8983_v1, %v4056_v28  ;;  %v4001_v31 = vpop.f32.mrf.mxu0  ;;  %v7506_v1 = vor.u32 %v8610_v26, %v7503_v27  ;;  %v7429_v28 = vld [vmem:[%s11270_s10 + $0x300] sm:$0xf]  ;;  %v7450_v26 = vor.u32 %v8595_v63, %v7447_v54  ;;  %v7453_v27 = vld [vmem:[%s11270_s10 + $0x318] sm:$0xf]  ;;  %v8614_v63 = vld [vmem:[%s11270_s10 + $0x3ac] sm:$0xf] }
 0xc24   : > { %v7535_v54 = vld [vmem:[%s11270_s10 + $0x3e8] sm:$0xf0] }
 0xc25   : > { %v8891_v21 = vpack.i.bf16 %v4061_v30, %v3770_v29  ;;  %v8601_v29 = vld [vmem:[%s11270_s10 + $0x33c] sm:$0xf0]  ;;  %v8593_v30 = vld [vmem:[%s11270_s10 + $0x304] sm:$0xf]  ;;  %4665 = vmatpush.bf16.msra.mxu3 %v7506_v1  ;;  %v8604_v1 = vld [vmem:[%s11270_s10 + $0x354] sm:$0xf0] }
 0xc26   : > { %v7430_v31 = vor.u32 %v8601_v29, %v7429_v28  ;;  %v8596_v28 = vld [vmem:[%s11270_s10 + $0x31c] sm:$0xf] }
 0xc27   : > { %8892 = vrot.lane.b32.xlu0 %v8891_v21, %s11296_s17  ;;  %v7431_v21 = vld [vmem:[%s11270_s10 + $0x340] sm:$0xf0] }
 0xc28   : > { %v7434_v34 = vor.u32 %v8593_v30, %v7431_v21  ;;  %4624 = vmatpush.bf16.msrb.mxu0 %v7430_v31  ;;  %v7454_v31 = vor.u32 %v8604_v1, %v7453_v27  ;;  %v7455_v21 = vld [vmem:[%s11270_s10 + $0x358] sm:$0xf0]  ;;  %v7530_v27 = vor.u32 %v8613_v16, %v7527_v17  ;;  %v7461_v1 = vld [vmem:[%s11270_s10 + $0x320] sm:$0xf]  ;;  %v8599_v16 = vld [vmem:[%s11270_s10 + $0x334] sm:$0xf] }
 0xc29   : > { %4666 = vmatpush.bf16.msra.mxu3 %v7442_v56  ;;  %v7479_v17 = vld [vmem:[%s11270_s10 + $0x370] sm:$0xf0] }
 0xc2a   : > { %v4058_v32 = vpop.f32.mrf.mxu2  ;;  %4638 = vmatpush.bf16.msrb.mxu1 %v7434_v34  ;;  %v7458_v34 = vor.u32 %v8596_v28, %v7455_v21  ;;  %v8605_v28 = vld [vmem:[%s11270_s10 + $0x35c] sm:$0xf0]  ;;  %v7463_v21 = vld [vmem:[%s11270_s10 + $0x360] sm:$0xf0] }
 0xc2b   : > { %v7437_v32 = vld [vmem:[%s11270_s10 + $0x308] sm:$0xf] }
 0xc2c   : > { %v7438_v35 = vor.u32 %v8602_v33, %v7437_v32  ;;  %v7381_v32 = vld [vmem:[%s11270_s10 + $0x290] sm:$0xf] }
 0xc2e   : > { %4652 = vmatpush.bf16.msra.mxu2 %v7438_v35  ;;  %v8587_v35 = vld [vmem:[%s11270_s10 + $0x2cc] sm:$0xf0] }
 0xc2f   : > { %v7382_v56 = vor.u32 %v8587_v35, %v7381_v32  ;;  %v7469_v32 = vld [vmem:[%s11270_s10 + $0x328] sm:$0xf]  ;;  %v7471_v35 = vld [vmem:[%s11270_s10 + $0x368] sm:$0xf0] }
 0xc71   : > { %v8883_v42 = vpop.permute.xlu2 %8882 }
 0xc72   : > { %v8885_v22 = vunpack.i.h.bf16 %v8883_v42  ;;  %v8884_v44 = vunpack.i.l.bf16 %v8883_v42  ;;  %v7365_v42 = vld [vmem:[%s11270_s10 + $0x280] sm:$0xf] }
 0xc73   : > { %v7366_v36 = vor.u32 %v8585_v11, %v7365_v42  ;;  %v7389_v42 = vld [vmem:[%s11270_s10 + $0x298] sm:$0xf] }
 0xc74   : > { %v4074_v23 = vsel %vm747_vm2, %v3884_v48, %v8885_v22  ;;  %v3783_v50 = vsel %vm747_vm2, %v3593_v47, %v8884_v44  ;;  %v7367_v22 = vld [vmem:[%s11270_s10 + $0x2c0] sm:$0xf0]  ;;  %v7373_v44 = vld [vmem:[%s11270_s10 + $0x288] sm:$0xf]  ;;  %v8588_v11 = vld [vmem:[%s11270_s10 + $0x2d4] sm:$0xf0] }
 0xc75   : > { %4625 = vmatpush.bf16.msrb.mxu0 %v7366_v36  ;;  %v7386_v36 = vor.u32 %v8579_v40, %v7383_v41  ;;  %v7462_v40 = vor.u32 %v8605_v28, %v7461_v1  ;;  %v7413_v1 = vld [vmem:[%s11270_s10 + $0x2b0] sm:$0xf] }
 0xc76   : > { %v8591_v28 = vld [vmem:[%s11270_s10 + $0x2ec] sm:$0xf0] }
 0xc92   : > { %v8888_v43 = vpop.permute.xlu1 %8887 }
 0xc93   : > { %v8890_v45 = vunpack.i.h.bf16 %v8888_v43  ;;  %v8889_v46 = vunpack.i.l.bf16 %v8888_v43  ;;  %v8577_v43 = vld [vmem:[%s11270_s10 + $0x284] sm:$0xf] }
 0xc94   : > { %v7370_v47 = vor.u32 %v8577_v43, %v7367_v22  ;;  %v7390_v22 = vor.u32 %v8588_v11, %v7389_v42  ;;  %v8589_v42 = vld [vmem:[%s11270_s10 + $0x2dc] sm:$0xf0] }
 0xc95   : > { %v3784_v38 = vsel %vm987_vm4, %v3783_v50, %v8889_v46  ;;  %v4075_v55 = vsel %vm987_vm4, %v4074_v23, %v8890_v45  ;;  %v8586_v45 = vld [vmem:[%s11270_s10 + $0x2c4] sm:$0xf0]  ;;  %v7375_v23 = vld [vmem:[%s11270_s10 + $0x2c8] sm:$0xf0] }
 0xc96   : > { %v7374_v48 = vor.u32 %v8586_v45, %v7373_v44  ;;  %4639 = vmatpush.bf16.msrb.mxu1 %v7370_v47  ;;  %v8580_v44 = vld [vmem:[%s11270_s10 + $0x29c] sm:$0xf] }
 0xc97   : > { %v7391_v45 = vld [vmem:[%s11270_s10 + $0x2d8] sm:$0xf0] }
 0xc98   : > { %4653 = vmatpush.bf16.msra.mxu2 %v7374_v48  ;;  %v7394_v47 = vor.u32 %v8580_v44, %v7391_v45  ;;  %v8571_v48 = vld [vmem:[%s11270_s10 + $0x24c] sm:$0xf0]  ;;  %v7405_v44 = vld [vmem:[%s11270_s10 + $0x2a8] sm:$0xf] }
 0xc99   : > { %v8893_v49 = vpop.permute.xlu0 %8892  ;;  %v8590_v45 = vld [vmem:[%s11270_s10 + $0x2e4] sm:$0xf0] }
 0xc9a   : > { %v8895_v37 = vunpack.i.h.bf16 %v8893_v49  ;;  %v8894_v52 = vunpack.i.l.bf16 %v8893_v49  ;;  %v8578_v49 = vld [vmem:[%s11270_s10 + $0x28c] sm:$0xf] }
 0xc9c   : > { %v3785_v59 = vsel %vm989_vm5, %v3784_v38, %v8894_v52  ;;  %v4076_v61 = vsel %vm989_vm5, %v4075_v55, %v8895_v37  ;;  %v7378_v37 = vor.u32 %v8578_v49, %v7375_v23  ;;  %v7301_v52 = vld [vmem:[%s11270_s10 + $0x200] sm:$0xf]  ;;  %v8561_v55 = vld [vmem:[%s11270_s10 + $0x204] sm:$0xf]  ;;  %v8563_v49 = vld [vmem:[%s11270_s10 + $0x214] sm:$0xf] }
 0xc9d   : > { %v4077_v62 = vpack.c.bf16 %v4076_v61, %v3785_v59  ;;  %v8569_v38 = vld [vmem:[%s11270_s10 + $0x23c] sm:$0xf0]  ;;  %v7319_v23 = vld [vmem:[%s11270_s10 + $0x250] sm:$0xf0] }
 0xc9e   : > { %4667 = vmatpush.bf16.msra.mxu3 %v7378_v37  ;;  %v7302_v61 = vor.u32 %v8569_v38, %v7301_v52  ;;  %v7325_v37 = vld [vmem:[%s11270_s10 + $0x218] sm:$0xf] }
 0xc9f   : > { %7230 = vmatmul.msk.bf16.vlgmr.msrb.gmra.mxu3 %vm663_vm0, %v4077_v62  ;;  %v7303_v62 = vld [vmem:[%s11270_s10 + $0x240] sm:$0xf0]  ;;  %v8572_v52 = vld [vmem:[%s11270_s10 + $0x254] sm:$0xf0] }
 0xca0   : > { %4626 = vmatpush.bf16.msrb.mxu0 %v7302_v61  ;;  %v7327_v61 = vld [vmem:[%s11270_s10 + $0x258] sm:$0xf0] }
 0xd22   : > { %v4128_v3 = vpop.f32.mrf.mxu3 }
 0xd23   : > { %v4129_v53 = vadd.f32 %v8904_v8, %v4128_v3  ;;  %v7306_v3 = vor.u32 %v8561_v55, %v7303_v62  ;;  %v8564_v55 = vld [vmem:[%s11270_s10 + $0x21c] sm:$0xf] }
 0xd25   : > { %v4133_v0 = vadd.f32 %v4129_v53, %v10244_v39  ;;  %v8570_v53 = vld [vmem:[%s11270_s10 + $0x244] sm:$0xf0]  ;;  %4640 = vmatpush.bf16.msrb.mxu1 %v7306_v3  ;;  %v7326_v3 = vor.u32 %v8572_v52, %v7325_v37  ;;  %v7406_v37 = vor.u32 %v8590_v45, %v7405_v44  ;;  %v7357_v44 = vld [vmem:[%s11270_s10 + $0x238] sm:$0xf] }
 0xd26   : > { %v8576_v45 = vld [vmem:[%s11270_s10 + $0x274] sm:$0xf0] }
 0xd27   : > { %v4139_v2 = vsel %vm663_vm0, %v4133_v0, 0.0 }
 0xd28   : > { %4140 = vadd.xlane.f32.xlu2 %v4139_v2  ;;  %v7311_v2 = vld [vmem:[%s11270_s10 + $0x248] sm:$0xf0] }
 0xd2a   : > { %v4130_v58 = vpop.f32.mrf.mxu3 }
 0xd2b   : > { %v4131_v4 = vadd.f32 %v8904_v8, %v4130_v58  ;;  %v7309_v8 = vld [vmem:[%s11270_s10 + $0x208] sm:$0xf] }
 0xd2c   : > { %v7310_v58 = vor.u32 %v8570_v53, %v7309_v8  ;;  %v7322_v8 = vor.u32 %v8563_v49, %v7319_v23  ;;  %v7333_v23 = vld [vmem:[%s11270_s10 + $0x220] sm:$0xf] }
 0xd2d   : > { %v4134_v5 = vadd.f32 %v4131_v4, %v10246_v57 }
 0xd2e   : > { %4654 = vmatpush.bf16.msra.mxu2 %v7310_v58 }
 0xd2f   : > { %v4142_v6 = vsel %vm663_vm0, %v4134_v5, 0.0 }
 0xd30   : > { %4143 = vadd.xlane.f32.xlu0 %v4142_v6  ;;  %v8619_v6 = vld [vmem:[%s11270_s10 + $0x3cc] sm:$0xf0] }
 0xd9b   : > { %v4141_v7 = vpop.xlane.xlu2 %4140 }
 0xd9c   : > { %v4145_v9 = vmul.f32 %v4141_v7, %v9304_v51  ;;  %v8611_v7 = vld [vmem:[%s11270_s10 + $0x394] sm:$0xf] }
 0xd9e   : > { %v10368_v60 = vsub.f32 %v4133_v0, %v4145_v9  ;;  %v8562_v0 = vld [vmem:[%s11270_s10 + $0x20c] sm:$0xf] }
 0xd9f   : > { %v7314_v4 = vor.u32 %v8562_v0, %v7311_v2  ;;  %v7330_v0 = vor.u32 %v8564_v55, %v7327_v61  ;;  %v7335_v55 = vld [vmem:[%s11270_s10 + $0x260] sm:$0xf0]  ;;  %v7341_v61 = vld [vmem:[%s11270_s10 + $0x228] sm:$0xf] }
 0xda0   : > { %v4149_v10 = vmul.f32 %v10368_v60, %v10368_v60 }
 0xda1   : > { %4668 = vmatpush.bf16.msra.mxu3 %v7314_v4 }
 0xda2   : > { %v4151_v39 = vsel %vm663_vm0, %v4149_v10, 0.0  ;;  %v7511_v10 = vld [vmem:[%s11270_s10 + $0x3d0] sm:$0xf0] }
 0xda3   : > { %v4144_v12 = vpop.xlane.xlu0 %4143  ;;  %4152 = vadd.xlane.f32.xlu1 %v4151_v39  ;;  %v7517_v39 = vld [vmem:[%s11270_s10 + $0x398] sm:$0xf] }
 0xda4   : > { %v4146_v13 = vmul.f32 %v4144_v12, %v9304_v51  ;;  %v8620_v12 = vld [vmem:[%s11270_s10 + $0x3d4] sm:$0xf0] }
 0xda5   : > { %4721 = vmatpush.bf16.msrb.mxu3 %v7522_v20 }
 0xda6   : > { %v10374_v14 = vsub.f32 %v4134_v5, %v4146_v13  ;;  %v7509_v5 = vld [vmem:[%s11270_s10 + $0x390] sm:$0xf] }
 0xda7   : > { %v7510_v9 = vor.u32 %v8619_v6, %v7509_v5 }
 0xda8   : > { %v4150_v57 = vmul.f32 %v10374_v14, %v10374_v14 }
 0xda9   : > { %4679 = vmatpush.bf16.msra.mxu0 %v7510_v9  ;;  %4722 = vmatpush.bf16.msrb.mxu3 %v7458_v34  ;;  %v8905_v9 = vld [vmem:[%s11268_s8 + $0x1] ss:$0 sm:$0xff]  ;;  %v8598_v34 = vld [vmem:[%s11270_s10 + $0x32c] sm:$0xf] }
 0xdaa   : > { %v4154_v19 = vsel %vm663_vm0, %v4150_v57, 0.0  ;;  %v7514_v57 = vor.u32 %v8611_v7, %v7511_v10 }
 0xdab   : > { %4155 = vadd.xlane.f32.xlu2 %v4154_v19  ;;  %v7518_v19 = vor.u32 %v8620_v12, %v7517_v39 }
 0xdac   : > { %4693 = vmatpush.bf16.msra.mxu1 %v7514_v57 }
 0xdad   : > { %4707 = vmatpush.bf16.msrb.mxu2 %v7518_v19  ;;  %4680 = vmatpush.bf16.msra.mxu0 %v7446_v25 }
 0xdae   : > { %4723 = vmatpush.bf16.msrb.mxu3 %v7394_v47  ;;  %v7407_v47 = vld [vmem:[%s11270_s10 + $0x2e8] sm:$0xf0] }
 0xdb0   : > { %4694 = vmatpush.bf16.msra.mxu1 %v7450_v26 }
 0xdb1   : > { %4708 = vmatpush.bf16.msrb.mxu2 %v7454_v31  ;;  %4681 = vmatpush.bf16.msra.mxu0 %v7382_v56  ;;  %v8597_v31 = vld [vmem:[%s11270_s10 + $0x324] sm:$0xf]  ;;  %v7397_v56 = vld [vmem:[%s11270_s10 + $0x2a0] sm:$0xf] }
 0xdb2   : > { %4724 = vmatpush.bf16.msrb.mxu3 %v7330_v0  ;;  %v7466_v41 = vor.u32 %v8597_v31, %v7463_v21  ;;  %v8583_v31 = vld [vmem:[%s11270_s10 + $0x2b4] sm:$0xf] }
 0xdb3   : > { %v7415_v21 = vld [vmem:[%s11270_s10 + $0x2f0] sm:$0xf0] }
 0xdb4   : > { %4695 = vmatpush.bf16.msra.mxu1 %v7386_v36  ;;  %v8581_v36 = vld [vmem:[%s11270_s10 + $0x2a4] sm:$0xf] }
 0xdb5   : > { %4709 = vmatpush.bf16.msrb.mxu2 %v7390_v22  ;;  %v7399_v22 = vld [vmem:[%s11270_s10 + $0x2e0] sm:$0xf0] }
 0xdb6   : > { %v7402_v49 = vor.u32 %v8581_v36, %v7399_v22  ;;  %v8567_v36 = vld [vmem:[%s11270_s10 + $0x234] sm:$0xf] }
 0xdb7   : > { %v7351_v22 = vld [vmem:[%s11270_s10 + $0x270] sm:$0xf0] }
 0xdb8   : > { %4696 = vmatpush.bf16.msra.mxu1 %v7322_v8  ;;  %v8566_v8 = vld [vmem:[%s11270_s10 + $0x22c] sm:$0xf] }
 0xdb9   : > { %4710 = vmatpush.bf16.msrb.mxu2 %v7326_v3  ;;  %v7343_v3 = vld [vmem:[%s11270_s10 + $0x268] sm:$0xf0] }
 0xe16   : > { %v4153_v46 = vpop.xlane.xlu1 %4152 }
 0xe17   : > { %v4157_v50 = vmul.f32 %v4153_v46, %v9304_v51  ;;  %v7317_v46 = vld [vmem:[%s11270_s10 + $0x210] sm:$0xf] }
 0xe18   : > { %v7318_v38 = vor.u32 %v8571_v48, %v7317_v46  ;;  %v8582_v46 = vld [vmem:[%s11270_s10 + $0x2ac] sm:$0xf]  ;;  %v7398_v48 = vor.u32 %v8589_v42, %v7397_v56  ;;  %v7349_v56 = vld [vmem:[%s11270_s10 + $0x230] sm:$0xf] }
 0xe19   : > { %v10461_v59 = vadd.f32 1e-05, %v4157_v50  ;;  %v7410_v52 = vor.u32 %v8582_v46, %v7407_v47  ;;  %v8575_v42 = vld [vmem:[%s11270_s10 + $0x26c] sm:$0xf0]  ;;  %v8568_v46 = vld [vmem:[%s11270_s10 + $0x23c] sm:$0xf] }
 0xe1a   : > { %4682 = vmatpush.bf16.msra.mxu0 %v7318_v38  ;;  %v8565_v38 = vld [vmem:[%s11270_s10 + $0x224] sm:$0xf]  ;;  %v7359_v47 = vld [vmem:[%s11270_s10 + $0x278] sm:$0xf0] }
 0xe1b   : > { %8988 = vrsqrt.f32 %v10461_v59  ;;  %vm4167_vm2 = vweird.f32 %v10461_v59  ;;  %v7338_v0 = vor.u32 %v8565_v38, %v7335_v55  ;;  %v8648_v38 = vld [vmem:[%s11272_s12 + $0x4b8] sm:$0xff] }
 0xe1c   : > { %v8656_v55 = vld [vmem:[%s11272_s12 + $0x4f8] sm:$0xff] }
 0xe1e   : > { %v4156_v13 = vpop.xlane.xlu2 %4155 }
 0xe1f   : > { %v4158_v18 = vmul.f32 %v4156_v13, %v9304_v51 }
 0xe21   : > { %v8989_v29 = vpop.eup %8988  ;;  %v4160_v30 = vadd.f32 1e-05, %v4158_v18 }
 0xe22   : > { %v4162_v33 = vmul.f32 %v8989_v29, %v10461_v59  ;;  %vm4168_vm1 = vweird.f32 %v8989_v29  ;;  %v8906_v59 = vld [vmem:[%s11269_s9 + $0x1] ss:$0 sm:$0xff] }
 0xe23   : > { %8990 = vrsqrt.f32 %v4160_v30  ;;  %vm4169_vm3 = vmor %vm4167_vm2, %vm4168_vm1  ;;  %vm4177_vm5 = vweird.f32 %v4160_v30 }
 0xe24   : > { %v4163_v43 = vmul.f32 %v8989_v29, %v4162_v33  ;;  %v8606_v33 = vld [vmem:[%s11270_s10 + $0x364] sm:$0xf0] }
 0xe25   : > { %v7470_v11 = vor.u32 %v8606_v33, %v7469_v32  ;;  %v7421_v32 = vld [vmem:[%s11270_s10 + $0x2b8] sm:$0xf] }
 0xe26   : > { %v4164_v50 = vmul.f32 0.5, %v4163_v43  ;;  %v7474_v43 = vor.u32 %v8598_v34, %v7471_v35  ;;  %v8592_v33 = vld [vmem:[%s11270_s10 + $0x2f4] sm:$0xf0]  ;;  %v8584_v34 = vld [vmem:[%s11270_s10 + $0x2bc] sm:$0xf] }
 0xe27   : > { %v7423_v35 = vld [vmem:[%s11270_s10 + $0x2f8] sm:$0xf0] }
 0xe28   : > { %v4165_v62 = vsub.f32 1.5, %v4164_v50  ;;  %v8573_v50 = vld [vmem:[%s11270_s10 + $0x25c] sm:$0xf0] }
 0xe29   : > { %v8991_v53 = vpop.eup %8990 }
 0xe2a   : > { %v4166_v2 = vmul.f32 %v8989_v29, %v4165_v62  ;;  %v4172_v58 = vmul.f32 %v8991_v53, %v4160_v30  ;;  %vm4178_vm4 = vweird.f32 %v8991_v53  ;;  %v7538_v30 = vor.u32 %v8614_v63, %v7535_v54  ;;  %v8574_v62 = vld [vmem:[%s11270_s10 + $0x264] sm:$0xf0]  ;;  %v8600_v63 = vld [vmem:[%s11270_s10 + $0x33c] sm:$0xf] }
 0xe2b   : > { %vm4179_vm9 = vmor %vm4177_vm5, %vm4178_vm4  ;;  %v7487_v54 = vld [vmem:[%s11270_s10 + $0x378] sm:$0xf0] }
 0xe2c   : > { %v4173_v4 = vmul.f32 %v8991_v53, %v4172_v58  ;;  %v4170_v5 = vsel %vm4169_vm3, %v8989_v29, %v4166_v2  ;;  %v7541_v2 = vld [vmem:[%s11270_s10 + $0x3b0] sm:$0xf] }
 0xe2d   : > { %v4181_v10 = vmul.f32 %v4170_v5, %v10368_v60  ;;  %v8621_v60 = vld [vmem:[%s11270_s10 + $0x3dc] sm:$0xf0]  ;;  %v8623_v58 = vld [vmem:[%s11270_s10 + $0x3ec] sm:$0xf0]  ;;  %v7346_v5 = vor.u32 %v8566_v8, %v7343_v3 }
 0xe2e   : > { %v4174_v6 = vmul.f32 0.5, %v4173_v4  ;;  %v7526_v26 = vor.u32 %v8621_v60, %v7525_v15  ;;  %v7342_v4 = vor.u32 %v8574_v62, %v7341_v61  ;;  %v8631_v61 = vld [vmem:[%s11272_s12 + $0x430] sm:$0xff] }
 0xe2f   : > { %v4186_v13 = vmul.f32 %v8905_v9, %v4181_v10  ;;  %v8624_v10 = vld [vmem:[%s11270_s10 + $0x3f4] sm:$0xf0]  ;;  %v8639_v62 = vld [vmem:[%s11272_s12 + $0x470] sm:$0xff] }
 0xe30   : > { %v4175_v7 = vsub.f32 1.5, %v4174_v6  ;;  %v8615_v6 = vld [vmem:[%s11270_s10 + $0x3b4] sm:$0xf] }
 0xe31   : > { %v10601_v18 = vadd.f32 %v8906_v59, %v4186_v13  ;;  %v8647_v8 = vld [vmem:[%s11272_s12 + $0x4b0] sm:$0xff] }
 0xe32   : > { %v4176_v39 = vmul.f32 %v8991_v53, %v4175_v7  ;;  %v7543_v7 = vld [vmem:[%s11270_s10 + $0x3f0] sm:$0xf0] }
 0xe33   : > { %v7546_v13 = vor.u32 %v8615_v6, %v7543_v7  ;;  %v8655_v3 = vld [vmem:[%s11272_s12 + $0x4f0] sm:$0xff]  ;;  %v8645_v6 = vld [vmem:[%s11272_s12 + $0x4a0] sm:$0xff] }
 0xe34   : > { %v4180_v12 = vsel %vm4179_vm9, %v8991_v53, %v4176_v39  ;;  %v7334_v53 = vor.u32 %v8573_v50, %v7333_v23  ;;  %v8616_v39 = vld [vmem:[%s11270_s10 + $0x3bc] sm:$0xf]  ;;  %v7358_v23 = vor.u32 %v8576_v45, %v7357_v44  ;;  %v7362_v50 = vor.u32 %v8568_v46, %v7359_v47  ;;  %v8653_v7 = vld [vmem:[%s11272_s12 + $0x4e0] sm:$0xff]  ;;  %v8658_v45 = vld [vmem:[%s11272_s12 + $0x508] sm:$0xff] }
 0xe35   : > { %v4182_v57 = vmul.f32 %v4180_v12, %v10374_v14  ;;  %v7533_v14 = vld [vmem:[%s11270_s10 + $0x3a8] sm:$0xf]  ;;  %v7551_v12 = vld [vmem:[%s11270_s10 + $0x3f8] sm:$0xf0]  ;;  %v8675_v47 = vld [vmem:[%s11272_s12 + $0x590] sm:$0xff] }
 0xe36   : > { %v7534_v29 = vor.u32 %v8622_v24, %v7533_v14  ;;  %v7554_v60 = vor.u32 %v8616_v39, %v7551_v12  ;;  %v7485_v14 = vld [vmem:[%s11270_s10 + $0x338] sm:$0xf]  ;;  %v8666_v46 = vld [vmem:[%s11272_s12 + $0x548] sm:$0xff] }
 0xe37   : > { %v4187_v19 = vmul.f32 %v8905_v9, %v4182_v57  ;;  %v7549_v9 = vld [vmem:[%s11270_s10 + $0x3b8] sm:$0xf]  ;;  %v7477_v57 = vld [vmem:[%s11270_s10 + $0x330] sm:$0xf] }
 0xe38   : > { %v7550_v15 = vor.u32 %v8624_v10, %v7549_v9  ;;  %v8608_v24 = vld [vmem:[%s11270_s10 + $0x374] sm:$0xf0] }
 0xe39   : > { %v10603_v20 = vadd.f32 %v8906_v59, %v4187_v19  ;;  %v7542_v59 = vor.u32 %v8623_v58, %v7541_v2  ;;  %v8607_v19 = vld [vmem:[%s11270_s10 + $0x36c] sm:$0xf0]  ;;  %v8646_v2 = vld [vmem:[%s11272_s12 + $0x4a8] sm:$0xff]  ;;  %v8628_v9 = vld [vmem:[%s11272_s12 + $0x418] sm:$0xff] }
 0xe3a   : > { %v8654_v58 = vld [vmem:[%s11272_s12 + $0x4e8] sm:$0xff]  ;;  %v8636_v10 = vld [vmem:[%s11272_s12 + $0x458] sm:$0xff] }
 0xe3b   : > { %v10616_v25 = vpack.c.bf16 %v10603_v20, %v10601_v18  ;;  %v8644_v39 = vld [vmem:[%s11272_s12 + $0x498] sm:$0xff] }
 0xe3c   : > { %v8652_v12 = vld [vmem:[%s11272_s12 + $0x4d8] sm:$0xff] }
 0xe3d   : > { %7555 = vmatmul.msk.bf16.vlgmr.msrb.gmra.mxu0 %vm663_vm0, %v10616_v25  ;;  %7556 = vmatmul.msk.bf16.vlgmr.msrb.gmra.mxu1 %vm663_vm0, %v10616_v25  ;;  %v8684_v44 = vld [vmem:[%s11272_s12 + $0x5d8] sm:$0xff] }
 0xe3e   : > { %7557 = vmatmul.msk.bf16.vlgmr.msra.gmra.mxu2 %vm663_vm0, %v10616_v25  ;;  %7558 = vmatmul.msk.bf16.vlgmr.msra.gmra.mxu3 %vm663_vm0, %v10616_v25 }
 0xe3f   : > { %4735 = vmatpush.bf16.msrb.mxu0 %v7526_v26  ;;  %4749 = vmatpush.bf16.msrb.mxu1 %v7530_v27  ;;  %v7478_v26 = vor.u32 %v8607_v19, %v7477_v57  ;;  %v7482_v27 = vor.u32 %v8599_v16, %v7479_v17  ;;  %v8643_v57 = vld [vmem:[%s11272_s12 + $0x490] sm:$0xff]  ;;  %v8626_v19 = vld [vmem:[%s11272_s12 + $0x408] sm:$0xff]  ;;  %v8625_v17 = vld [vmem:[%s11272_s12 + $0x400] sm:$0xff] }
 0xe40   : > { %4763 = vmatpush.bf16.msra.mxu2 %v7534_v29  ;;  %4777 = vmatpush.bf16.msra.mxu3 %v7538_v30  ;;  %v7486_v29 = vor.u32 %v8608_v24, %v7485_v14  ;;  %v7490_v30 = vor.u32 %v8600_v63, %v7487_v54  ;;  %v8650_v16 = vld [vmem:[%s11272_s12 + $0x4c8] sm:$0xff]  ;;  %v8633_v14 = vld [vmem:[%s11272_s12 + $0x440] sm:$0xff]  ;;  %v8664_v24 = vld [vmem:[%s11272_s12 + $0x538] sm:$0xff] }
 0xe41   : > { %v8672_v63 = vld [vmem:[%s11272_s12 + $0x578] sm:$0xff]  ;;  %v8641_v54 = vld [vmem:[%s11272_s12 + $0x480] sm:$0xff] }
 0xe43   : > { %4736 = vmatpush.bf16.msrb.mxu0 %v7462_v40  ;;  %4750 = vmatpush.bf16.msrb.mxu1 %v7466_v41  ;;  %v7414_v40 = vor.u32 %v8591_v28, %v7413_v1  ;;  %v7418_v41 = vor.u32 %v8583_v31, %v7415_v21  ;;  %v8688_v1 = vld [vmem:[%s11272_s12 + $0x5f8] sm:$0xff]  ;;  %v8663_v28 = vld [vmem:[%s11272_s12 + $0x530] sm:$0xff]  ;;  %v8662_v21 = vld [vmem:[%s11272_s12 + $0x528] sm:$0xff] }
 0xe44   : > { %4764 = vmatpush.bf16.msra.mxu2 %v7470_v11  ;;  %4778 = vmatpush.bf16.msra.mxu3 %v7474_v43  ;;  %v7422_v11 = vor.u32 %v8592_v33, %v7421_v32  ;;  %v7426_v43 = vor.u32 %v8584_v34, %v7423_v35  ;;  %v8687_v31 = vld [vmem:[%s11272_s12 + $0x5f0] sm:$0xff]  ;;  %v8670_v32 = vld [vmem:[%s11272_s12 + $0x568] sm:$0xff]  ;;  %v8661_v33 = vld [vmem:[%s11272_s12 + $0x520] sm:$0xff] }
 0xe45   : > { %v8669_v34 = vld [vmem:[%s11272_s12 + $0x560] sm:$0xff]  ;;  %v8678_v35 = vld [vmem:[%s11272_s12 + $0x5a8] sm:$0xff] }
 0xe47   : > { %4737 = vmatpush.bf16.msrb.mxu0 %v7398_v48  ;;  %4751 = vmatpush.bf16.msrb.mxu1 %v7402_v49  ;;  %v7350_v48 = vor.u32 %v8575_v42, %v7349_v56  ;;  %v7354_v49 = vor.u32 %v8567_v36, %v7351_v22  ;;  %v8668_v56 = vld [vmem:[%s11272_s12 + $0x558] sm:$0xff]  ;;  %v8677_v42 = vld [vmem:[%s11272_s12 + $0x5a0] sm:$0xff]  ;;  %v8667_v36 = vld [vmem:[%s11272_s12 + $0x550] sm:$0xff] }
 0xe48   : > { %4765 = vmatpush.bf16.msra.mxu2 %v7406_v37  ;;  %4779 = vmatpush.bf16.msra.mxu3 %v7410_v52  ;;  %v8632_v37 = vld [vmem:[%s11272_s12 + $0x438] sm:$0xff] }
 0xe49   : > { %v8640_v52 = vld [vmem:[%s11272_s12 + $0x478] sm:$0xff] }
 0xe4a   : > { %v8676_v22 = vld [vmem:[%s11272_s12 + $0x598] sm:$0xff] }
 0xe4b   : > { %4738 = vmatpush.bf16.msrb.mxu0 %v7334_v53  ;;  %4752 = vmatpush.bf16.msrb.mxu1 %v7338_v0  ;;  %v8630_v53 = vld [vmem:[%s11272_s12 + $0x428] sm:$0xff] }
 0xe4c   : > { %4766 = vmatpush.bf16.msra.mxu2 %v7342_v4  ;;  %4780 = vmatpush.bf16.msra.mxu3 %v7346_v5  ;;  %v8638_v0 = vld [vmem:[%s11272_s12 + $0x468] sm:$0xff]  ;;  %v8629_v4 = vld [vmem:[%s11272_s12 + $0x420] sm:$0xff] }
 0xe4d   : > { %7559 = vmatmul.msk.bf16.vlgmr.msra.gmra.mxu0 %vm663_vm0, %v10616_v25  ;;  %7560 = vmatmul.msk.bf16.vlgmr.msra.gmra.mxu1 %vm663_vm0, %v10616_v25  ;;  %v8637_v5 = vld [vmem:[%s11272_s12 + $0x460] sm:$0xff] }
 0xe4e   : > { %7561 = vmatmul.msk.bf16.vlgmr.msrb.gmra.mxu2 %vm663_vm0, %v10616_v25  ;;  %7562 = vmatmul.msk.bf16.vlgmr.msrb.gmra.mxu3 %vm663_vm0, %v10616_v25 }
 0xe4f   : > { %4791 = vmatpush.bf16.msra.mxu0 %v7542_v59  ;;  %4805 = vmatpush.bf16.msra.mxu1 %v7546_v13  ;;  %v8627_v59 = vld [vmem:[%s11272_s12 + $0x410] sm:$0xff] }
 0xe50   : > { %4819 = vmatpush.bf16.msrb.mxu2 %v7550_v15  ;;  %4833 = vmatpush.bf16.msrb.mxu3 %v7554_v60  ;;  %v8635_v13 = vld [vmem:[%s11272_s12 + $0x450] sm:$0xff]  ;;  %v8634_v15 = vld [vmem:[%s11272_s12 + $0x448] sm:$0xff] }
 0xe51   : > { %v8642_v60 = vld [vmem:[%s11272_s12 + $0x488] sm:$0xff] }
 0xe53   : > { %4792 = vmatpush.bf16.msra.mxu0 %v7478_v26  ;;  %4806 = vmatpush.bf16.msra.mxu1 %v7482_v27  ;;  %v8649_v26 = vld [vmem:[%s11272_s12 + $0x4c0] sm:$0xff]  ;;  %v8680_v27 = vld [vmem:[%s11272_s12 + $0x5b8] sm:$0xff] }
 0xe54   : > { %4820 = vmatpush.bf16.msrb.mxu2 %v7486_v29  ;;  %4834 = vmatpush.bf16.msrb.mxu3 %v7490_v30  ;;  %v8671_v29 = vld [vmem:[%s11272_s12 + $0x570] sm:$0xff] }
 0xe55   : > { %v8679_v30 = vld [vmem:[%s11272_s12 + $0x5b0] sm:$0xff] }
 0xe57   : > { %4793 = vmatpush.bf16.msra.mxu0 %v7414_v40  ;;  %4807 = vmatpush.bf16.msra.mxu1 %v7418_v41  ;;  %v8686_v40 = vld [vmem:[%s11272_s12 + $0x5e8] sm:$0xff]  ;;  %v8660_v41 = vld [vmem:[%s11272_s12 + $0x518] sm:$0xff] }
 0xe58   : > { %4821 = vmatpush.bf16.msrb.mxu2 %v7422_v11  ;;  %4835 = vmatpush.bf16.msrb.mxu3 %v7426_v43  ;;  %v8685_v11 = vld [vmem:[%s11272_s12 + $0x5e0] sm:$0xff]  ;;  %v8659_v43 = vld [vmem:[%s11272_s12 + $0x510] sm:$0xff] }
 0xe5b   : > { %4794 = vmatpush.bf16.msra.mxu0 %v7350_v48  ;;  %4808 = vmatpush.bf16.msra.mxu1 %v7354_v49  ;;  %v8683_v48 = vld [vmem:[%s11272_s12 + $0x5d0] sm:$0xff]  ;;  %v8657_v49 = vld [vmem:[%s11272_s12 + $0x500] sm:$0xff] }
 0xe5c   : > { %4822 = vmatpush.bf16.msrb.mxu2 %v7358_v23  ;;  %4836 = vmatpush.bf16.msrb.mxu3 %v7362_v50  ;;  %v8665_v23 = vld [vmem:[%s11272_s12 + $0x540] sm:$0xff]  ;;  %v8674_v50 = vld [vmem:[%s11272_s12 + $0x588] sm:$0xff] }
 0xe5d   : > { %7563 = vmatmul.msk.bf16.vlgmr.msrb.gmra.mxu0 %vm663_vm0, %v10616_v25  ;;  %7564 = vmatmul.msk.bf16.vlgmr.msrb.gmra.mxu1 %vm663_vm0, %v10616_v25 }
 0xe5e   : > { %7565 = vmatmul.msk.bf16.vlgmr.msra.gmra.mxu2 %vm663_vm0, %v10616_v25  ;;  %7566 = vmatmul.msk.bf16.vlgmr.msra.gmra.mxu3 %vm663_vm0, %v10616_v25 }
 0xe5f   : > { %5921 = vmatpush.bf16.msrb.mxu0 %v8632_v37  ;;  %5935 = vmatpush.bf16.msrb.mxu1 %v8640_v52  ;;  %v8682_v37 = vld [vmem:[%s11272_s12 + $0x5c8] sm:$0xff]  ;;  %v8673_v52 = vld [vmem:[%s11272_s12 + $0x580] sm:$0xff] }
 0xe60   : > { %5949 = vmatpush.bf16.msra.mxu2 %v8648_v38  ;;  %5963 = vmatpush.bf16.msra.mxu3 %v8656_v55  ;;  %v8681_v38 = vld [vmem:[%s11272_s12 + $0x5c0] sm:$0xff]  ;;  %v11013_v55 = vld [vmem:[%s11271_s11 + $0x10] sm:$0xff] }
 0xe63   : > { %5922 = vmatpush.bf16.msrb.mxu0 %v8631_v61  ;;  %5936 = vmatpush.bf16.msrb.mxu1 %v8639_v62 }
 0xe64   : > { %5950 = vmatpush.bf16.msra.mxu2 %v8647_v8  ;;  %5964 = vmatpush.bf16.msra.mxu3 %v8655_v3  ;;  %v4264_v8 = vperm.slane %v11013_v55, 0  ;;  %v4265_v3 = vperm.slane %v11013_v55, 1 }
 0xe67   : > { %5923 = vmatpush.bf16.msrb.mxu0 %v8630_v53  ;;  %5937 = vmatpush.bf16.msrb.mxu1 %v8638_v0 }
 0xe68   : > { %5951 = vmatpush.bf16.msra.mxu2 %v8646_v2  ;;  %5965 = vmatpush.bf16.msra.mxu3 %v8654_v58 }
 0xe6b   : > { %5924 = vmatpush.bf16.msrb.mxu0 %v8629_v4  ;;  %5938 = vmatpush.bf16.msrb.mxu1 %v8637_v5 }
 0xe6c   : > { %5952 = vmatpush.bf16.msra.mxu2 %v8645_v6  ;;  %5966 = vmatpush.bf16.msra.mxu3 %v8653_v7 }
 0xe6d   : > { %7567 = vmatmul.msk.bf16.vlgmr.msra.gmra.mxu0 %vm663_vm0, %v10616_v25  ;;  %7568 = vmatmul.msk.bf16.vlgmr.msra.gmra.mxu1 %vm663_vm0, %v10616_v25 }
 0xe6e   : > { %7569 = vmatmul.msk.bf16.vlgmr.msrb.gmra.mxu2 %vm663_vm0, %v10616_v25  ;;  %7570 = vmatmul.msk.bf16.vlgmr.msrb.gmra.mxu3 %vm663_vm0, %v10616_v25  ;;  %v8651_v25 = vld [vmem:[%s11272_s12 + $0x4d0] sm:$0xff] }
 0xe6f   : > { %5925 = vmatpush.bf16.msrb.mxu0 %v8628_v9  ;;  %5939 = vmatpush.bf16.msrb.mxu1 %v8636_v10  ;;  %v4266_v9 = vperm.slane %v11013_v55, 2  ;;  %v4267_v10 = vperm.slane %v11013_v55, 3 }
 0xe70   : > { %5953 = vmatpush.bf16.msra.mxu2 %v8644_v39  ;;  %5967 = vmatpush.bf16.msra.mxu3 %v8652_v12 }
 0xe73   : > { %5926 = vmatpush.bf16.msrb.mxu0 %v8627_v59  ;;  %5940 = vmatpush.bf16.msrb.mxu1 %v8635_v13 }
 0xe74   : > { %5954 = vmatpush.bf16.msra.mxu2 %v8643_v57  ;;  %5968 = vmatpush.bf16.msra.mxu3 %v8651_v25  ;;  %v8696_v57 = vld [vmem:[%s11272_s12 + $0x638] sm:$0xff] }
 0xe75   : > { %v8704_v25 = vld [vmem:[%s11272_s12 + $0x678] sm:$0xff] }
 0xe77   : > { %5927 = vmatpush.bf16.msrb.mxu0 %v8626_v19  ;;  %5941 = vmatpush.bf16.msrb.mxu1 %v8634_v15 }
 0xe78   : > { %5955 = vmatpush.bf16.msra.mxu2 %v8642_v60  ;;  %5969 = vmatpush.bf16.msra.mxu3 %v8650_v16 }
 0xe7b   : > { %5928 = vmatpush.bf16.msrb.mxu0 %v8625_v17  ;;  %5942 = vmatpush.bf16.msrb.mxu1 %v8633_v14 }
 0xe7c   : > { %5956 = vmatpush.bf16.msra.mxu2 %v8641_v54  ;;  %5970 = vmatpush.bf16.msra.mxu3 %v8649_v26 }
 0xe7f   : > { %5977 = vmatpush.bf16.msra.mxu0 %v8664_v24  ;;  %5991 = vmatpush.bf16.msra.mxu1 %v8672_v63 }
 0xe80   : > { %6005 = vmatpush.bf16.msrb.mxu2 %v8680_v27  ;;  %6019 = vmatpush.bf16.msrb.mxu3 %v8688_v1  ;;  %v8695_v27 = vld [vmem:[%s11272_s12 + $0x630] sm:$0xff] }
 0xe81   : > { %v8703_v1 = vld [vmem:[%s11272_s12 + $0x670] sm:$0xff] }
 0xe83   : > { %5978 = vmatpush.bf16.msra.mxu0 %v8663_v28  ;;  %5992 = vmatpush.bf16.msra.mxu1 %v8671_v29 }
 0xe84   : > { %6006 = vmatpush.bf16.msrb.mxu2 %v8679_v30  ;;  %6020 = vmatpush.bf16.msrb.mxu3 %v8687_v31 }
 0xe87   : > { %5979 = vmatpush.bf16.msra.mxu0 %v8662_v21  ;;  %5993 = vmatpush.bf16.msra.mxu1 %v8670_v32  ;;  %v4268_v21 = vperm.slane %v11013_v55, 4  ;;  %v4269_v32 = vperm.slane %v11013_v55, 5 }
 0xe88   : > { %6007 = vmatpush.bf16.msrb.mxu2 %v8678_v35  ;;  %6021 = vmatpush.bf16.msrb.mxu3 %v8686_v40 }
 0xe8b   : > { %5980 = vmatpush.bf16.msra.mxu0 %v8661_v33  ;;  %5994 = vmatpush.bf16.msra.mxu1 %v8669_v34  ;;  %v8712_v33 = vld [vmem:[%s11272_s12 + $0x6b8] sm:$0xff] }
 0xe8c   : > { %6008 = vmatpush.bf16.msrb.mxu2 %v8677_v42  ;;  %6022 = vmatpush.bf16.msrb.mxu3 %v8685_v11  ;;  %v8720_v34 = vld [vmem:[%s11272_s12 + $0x6f8] sm:$0xff] }
 0xe8f   : > { %5981 = vmatpush.bf16.msra.mxu0 %v8660_v41  ;;  %5995 = vmatpush.bf16.msra.mxu1 %v8668_v56  ;;  %v8694_v41 = vld [vmem:[%s11272_s12 + $0x628] sm:$0xff] }
 0xe90   : > { %6009 = vmatpush.bf16.msrb.mxu2 %v8676_v22  ;;  %6023 = vmatpush.bf16.msrb.mxu3 %v8684_v44  ;;  %v8702_v56 = vld [vmem:[%s11272_s12 + $0x668] sm:$0xff]  ;;  %v8711_v22 = vld [vmem:[%s11272_s12 + $0x6b0] sm:$0xff] }
 0xe91   : > { %v8719_v44 = vld [vmem:[%s11272_s12 + $0x6f0] sm:$0xff] }
 0xe93   : > { %5982 = vmatpush.bf16.msra.mxu0 %v8659_v43  ;;  %5996 = vmatpush.bf16.msra.mxu1 %v8667_v36 }
 0xe94   : > { %6010 = vmatpush.bf16.msrb.mxu2 %v8675_v47  ;;  %6024 = vmatpush.bf16.msrb.mxu3 %v8683_v48  ;;  %v8693_v47 = vld [vmem:[%s11272_s12 + $0x620] sm:$0xff] }
 0xe95   : > { %v8701_v48 = vld [vmem:[%s11272_s12 + $0x660] sm:$0xff] }
 0xe97   : > { %5983 = vmatpush.bf16.msra.mxu0 %v8658_v45  ;;  %5997 = vmatpush.bf16.msra.mxu1 %v8666_v46 }
 0xe98   : > { %6011 = vmatpush.bf16.msrb.mxu2 %v8674_v50  ;;  %6025 = vmatpush.bf16.msrb.mxu3 %v8682_v37  ;;  %v4270_v50 = vperm.slane %v11013_v55, 6  ;;  %v4271_v37 = vperm.slane %v11013_v55, 7  ;;  %v8692_v55 = vld [vmem:[%s11272_s12 + $0x618] sm:$0xff] }
 0xe9b   : > { %5984 = vmatpush.bf16.msra.mxu0 %v8657_v49  ;;  %5998 = vmatpush.bf16.msra.mxu1 %v8665_v23 }
 0xe9c   : > { %6012 = vmatpush.bf16.msrb.mxu2 %v8673_v52  ;;  %6026 = vmatpush.bf16.msrb.mxu3 %v8681_v38 }
 0xeba   : > { %v4628_v61 = vpop.f32.mrf.mxu0  ;;  %v4642_v62 = vpop.f32.mrf.mxu1 }
 0xebb   : > { %v4629_v53 = vadd.f32 %v4628_v61, %v4264_v8  ;;  %v4643_v0 = vadd.f32 %v4642_v62, %v4265_v3 }
 0xebd   : > { %v4843_v39 = vmax.f32 %v4629_v53, 0.0  ;;  %v4844_v12 = vmax.f32 %v4643_v0, 0.0 }
 0xec1   : > { %v4656_v2 = vpop.f32.mrf.mxu2  ;;  %v4670_v58 = vpop.f32.mrf.mxu3 }
 0xec2   : > { %v4630_v4 = vpop.f32.mrf.mxu0  ;;  %v4644_v5 = vpop.f32.mrf.mxu1  ;;  %v4657_v60 = vadd.f32 %v4656_v2, %v4266_v9  ;;  %v4671_v16 = vadd.f32 %v4670_v58, %v4267_v10  ;;  %v8700_v2 = vld [vmem:[%s11272_s12 + $0x658] sm:$0xff] }
 0xec3   : > { %v4631_v6 = vadd.f32 %v4630_v4, %v4264_v8  ;;  %v4645_v7 = vadd.f32 %v4644_v5, %v4265_v3  ;;  %v8710_v8 = vld [vmem:[%s11272_s12 + $0x6a8] sm:$0xff] }
 0xec4   : > { %v4845_v28 = vmax.f32 %v4657_v60, 0.0  ;;  %v4846_v29 = vmax.f32 %v4671_v16, 0.0  ;;  %v8718_v3 = vld [vmem:[%s11272_s12 + $0x6e8] sm:$0xff] }
 0xec5   : > { %v4859_v59 = vmax.f32 %v4631_v6, 0.0  ;;  %v4860_v13 = vmax.f32 %v4645_v7, 0.0  ;;  %v8709_v7 = vld [vmem:[%s11272_s12 + $0x6a0] sm:$0xff] }
 0xec7   : > { %v4875_v19 = vpack.c.bf16 %v4859_v59, %v4843_v39  ;;  %v4876_v15 = vpack.c.bf16 %v4860_v13, %v4844_v12  ;;  %v11080_v12 = vld [vmem:[%s11271_s11 + $0x18] sm:$0xff] }
 0xec9   : > { %v4658_v17 = vpop.f32.mrf.mxu2  ;;  %v4672_v14 = vpop.f32.mrf.mxu3  ;;  %5929 = vmatmul.bf16.vlgmr.msrb.gmra.mxu0 %v4875_v19  ;;  %5943 = vmatmul.bf16.vlgmr.msrb.gmra.mxu1 %v4876_v15 }
 0xeca   : > { %v4659_v24 = vadd.f32 %v4658_v17, %v4266_v9  ;;  %v4673_v63 = vadd.f32 %v4672_v14, %v4267_v10  ;;  %6033 = vmatpush.bf16.msrb.mxu0 %v8696_v57  ;;  %6047 = vmatpush.bf16.msrb.mxu1 %v8704_v25  ;;  %v4684_v54 = vpop.f32.mrf.mxu0  ;;  %v4698_v26 = vpop.f32.mrf.mxu1  ;;  %v8717_v9 = vld [vmem:[%s11272_s12 + $0x6e0] sm:$0xff]  ;;  %v8691_v57 = vld [vmem:[%s11272_s12 + $0x610] sm:$0xff]  ;;  %v4272_v17 = vperm.slane %v11080_v12, 0  ;;  %v4273_v14 = vperm.slane %v11080_v12, 1 }
 0xecb   : > { %v4685_v42 = vadd.f32 %v4684_v54, %v4268_v21  ;;  %v4699_v11 = vadd.f32 %v4698_v26, %v4269_v32  ;;  %v8699_v25 = vld [vmem:[%s11272_s12 + $0x650] sm:$0xff] }
 0xecc   : > { %v4861_v30 = vmax.f32 %v4659_v24, 0.0  ;;  %v4862_v31 = vmax.f32 %v4673_v63, 0.0  ;;  %v8708_v24 = vld [vmem:[%s11272_s12 + $0x698] sm:$0xff] }
 0xecd   : > { %v4847_v52 = vmax.f32 %v4685_v42, 0.0  ;;  %v4848_v38 = vmax.f32 %v4699_v11, 0.0  ;;  %v8716_v63 = vld [vmem:[%s11272_s12 + $0x6d8] sm:$0xff]  ;;  %v4274_v42 = vperm.slane %v11080_v12, 2  ;;  %v4275_v11 = vperm.slane %v11080_v12, 3 }
 0xece   : > { %v4877_v35 = vpack.c.bf16 %v4861_v30, %v4845_v28  ;;  %v4878_v40 = vpack.c.bf16 %v4862_v31, %v4846_v29  ;;  %6034 = vmatpush.bf16.msrb.mxu0 %v8695_v27  ;;  %6048 = vmatpush.bf16.msrb.mxu1 %v8703_v1  ;;  %v8690_v27 = vld [vmem:[%s11272_s12 + $0x608] sm:$0xff] }
 0xecf   : > { %v8698_v1 = vld [vmem:[%s11272_s12 + $0x648] sm:$0xff] }
 0xed0   : > { %5957 = vmatmul.bf16.vlgmr.msra.gmra.mxu2 %v4877_v35  ;;  %5971 = vmatmul.bf16.vlgmr.msra.gmra.mxu3 %v4878_v40 }
 0xed1   : > { %6061 = vmatpush.bf16.msra.mxu2 %v8712_v33  ;;  %6075 = vmatpush.bf16.msra.mxu3 %v8720_v34  ;;  %v4712_v43 = vpop.f32.mrf.mxu2  ;;  %v4726_v36 = vpop.f32.mrf.mxu3 }
 0xed2   : > { %6035 = vmatpush.bf16.msrb.mxu0 %v8694_v41  ;;  %6049 = vmatpush.bf16.msrb.mxu1 %v8702_v56  ;;  %v4686_v45 = vpop.f32.mrf.mxu0  ;;  %v4700_v46 = vpop.f32.mrf.mxu1  ;;  %v4713_v58 = vadd.f32 %v4712_v43, %v4270_v50  ;;  %v4727_v4 = vadd.f32 %v4726_v36, %v4271_v37  ;;  %v8689_v41 = vld [vmem:[%s11272_s12 + $0x600] sm:$0xff]  ;;  %v8728_v43 = vld [vmem:[%s11272_s12 + $0x738] sm:$0xff] }
 0xed3   : > { %v4687_v49 = vadd.f32 %v4686_v45, %v4268_v21  ;;  %v4701_v23 = vadd.f32 %v4700_v46, %v4269_v32  ;;  %v8707_v21 = vld [vmem:[%s11272_s12 + $0x690] sm:$0xff]  ;;  %v8697_v56 = vld [vmem:[%s11272_s12 + $0x640] sm:$0xff]  ;;  %v8736_v36 = vld [vmem:[%s11272_s12 + $0x778] sm:$0xff] }
 0xed4   : > { %v4849_v19 = vmax.f32 %v4713_v58, 0.0  ;;  %v4850_v15 = vmax.f32 %v4727_v4, 0.0  ;;  %v8715_v32 = vld [vmem:[%s11272_s12 + $0x6d0] sm:$0xff] }
 0xed5   : > { %v4863_v61 = vmax.f32 %v4687_v49, 0.0  ;;  %v4864_v62 = vmax.f32 %v4701_v23, 0.0  ;;  %6062 = vmatpush.bf16.msra.mxu2 %v8711_v22  ;;  %6076 = vmatpush.bf16.msra.mxu3 %v8719_v44 }
 0xed6   : > { %6036 = vmatpush.bf16.msrb.mxu0 %v8693_v47  ;;  %6050 = vmatpush.bf16.msrb.mxu1 %v8701_v48  ;;  %v8706_v47 = vld [vmem:[%s11272_s12 + $0x688] sm:$0xff] }
 0xed7   : > { %v4879_v53 = vpack.c.bf16 %v4863_v61, %v4847_v52  ;;  %v4880_v0 = vpack.c.bf16 %v4864_v62, %v4848_v38  ;;  %v8714_v48 = vld [vmem:[%s11272_s12 + $0x6c8] sm:$0xff]  ;;  %v8727_v52 = vld [vmem:[%s11272_s12 + $0x730] sm:$0xff] }
 0xed8   : > { %v8735_v38 = vld [vmem:[%s11272_s12 + $0x770] sm:$0xff] }
 0xed9   : > { %6063 = vmatpush.bf16.msra.mxu2 %v8710_v8  ;;  %6077 = vmatpush.bf16.msra.mxu3 %v8718_v3  ;;  %v4714_v5 = vpop.f32.mrf.mxu2  ;;  %v4728_v6 = vpop.f32.mrf.mxu3  ;;  %v8705_v8 = vld [vmem:[%s11272_s12 + $0x680] sm:$0xff] }
 0xeda   : > { %v4715_v10 = vadd.f32 %v4714_v5, %v4270_v50  ;;  %v4729_v39 = vadd.f32 %v4728_v6, %v4271_v37  ;;  %5985 = vmatmul.bf16.vlgmr.msra.gmra.mxu0 %v4879_v53  ;;  %5999 = vmatmul.bf16.vlgmr.msra.gmra.mxu1 %v4880_v0  ;;  %v4740_v59 = vpop.f32.mrf.mxu0  ;;  %v4754_v13 = vpop.f32.mrf.mxu1  ;;  %v8713_v3 = vld [vmem:[%s11272_s12 + $0x6c0] sm:$0xff] }
 0xedb   : > { %6037 = vmatpush.bf16.msrb.mxu0 %v8692_v55  ;;  %6051 = vmatpush.bf16.msrb.mxu1 %v8700_v2  ;;  %v4741_v28 = vadd.f32 %v4740_v59, %v4272_v17  ;;  %v4755_v29 = vadd.f32 %v4754_v13, %v4273_v14  ;;  %v8744_v55 = vld [vmem:[%s11272_s12 + $0x7b8] sm:$0xff]  ;;  %v8743_v59 = vld [vmem:[%s11272_s12 + $0x7b0] sm:$0xff] }
 0xedc   : > { %v4865_v60 = vmax.f32 %v4715_v10, 0.0  ;;  %v4866_v16 = vmax.f32 %v4729_v39, 0.0  ;;  %v8752_v2 = vld [vmem:[%s11272_s12 + $0x7f8] sm:$0xff]  ;;  %v8751_v13 = vld [vmem:[%s11272_s12 + $0x7f0] sm:$0xff] }
 0xedd   : > { %6064 = vmatpush.bf16.msra.mxu2 %v8709_v7  ;;  %6078 = vmatpush.bf16.msra.mxu3 %v8717_v9  ;;  %v4851_v22 = vmax.f32 %v4741_v28, 0.0  ;;  %v4852_v44 = vmax.f32 %v4755_v29, 0.0  ;;  %v8726_v7 = vld [vmem:[%s11272_s12 + $0x728] sm:$0xff] }
 0xede   : > { %v4881_v54 = vpack.c.bf16 %v4865_v60, %v4849_v19  ;;  %v4882_v26 = vpack.c.bf16 %v4866_v16, %v4850_v15  ;;  %v8734_v9 = vld [vmem:[%s11272_s12 + $0x768] sm:$0xff]  ;;  %v8725_v19 = vld [vmem:[%s11272_s12 + $0x720] sm:$0xff] }
 0xedf   : > { %6038 = vmatpush.bf16.msrb.mxu0 %v8691_v57  ;;  %6052 = vmatpush.bf16.msrb.mxu1 %v8699_v25  ;;  %v8733_v15 = vld [vmem:[%s11272_s12 + $0x760] sm:$0xff]  ;;  %v8742_v60 = vld [vmem:[%s11272_s12 + $0x7a8] sm:$0xff] }
 0xee0   : > { %6013 = vmatmul.bf16.vlgmr.msrb.gmra.mxu2 %v4881_v54  ;;  %6027 = vmatmul.bf16.vlgmr.msrb.gmra.mxu3 %v4882_v26  ;;  %v8750_v16 = vld [vmem:[%s11272_s12 + $0x7e8] sm:$0xff]  ;;  %v8741_v54 = vld [vmem:[%s11272_s12 + $0x7a0] sm:$0xff] }
 0xee1   : > { %6065 = vmatpush.bf16.msra.mxu2 %v8708_v24  ;;  %6079 = vmatpush.bf16.msra.mxu3 %v8716_v63  ;;  %v4768_v30 = vpop.f32.mrf.mxu2  ;;  %v4782_v31 = vpop.f32.mrf.mxu3  ;;  %v8749_v26 = vld [vmem:[%s11272_s12 + $0x7e0] sm:$0xff] }
 0xee2   : > { %v4742_v33 = vpop.f32.mrf.mxu0  ;;  %v4756_v34 = vpop.f32.mrf.mxu1  ;;  %v4769_v50 = vadd.f32 %v4768_v30, %v4274_v42  ;;  %v4783_v37 = vadd.f32 %v4782_v31, %v4275_v11  ;;  %v8740_v30 = vld [vmem:[%s11272_s12 + $0x798] sm:$0xff] }
 0xee3   : > { %6039 = vmatpush.bf16.msrb.mxu0 %v8690_v27  ;;  %6053 = vmatpush.bf16.msrb.mxu1 %v8698_v1  ;;  %v4743_v35 = vadd.f32 %v4742_v33, %v4272_v17  ;;  %v4757_v40 = vadd.f32 %v4756_v34, %v4273_v14  ;;  %v8724_v17 = vld [vmem:[%s11272_s12 + $0x718] sm:$0xff]  ;;  %v8723_v27 = vld [vmem:[%s11272_s12 + $0x710] sm:$0xff]  ;;  %v8722_v33 = vld [vmem:[%s11272_s12 + $0x708] sm:$0xff] }
 0xee4   : > { %v4853_v58 = vmax.f32 %v4769_v50, 0.0  ;;  %v4854_v4 = vmax.f32 %v4783_v37, 0.0  ;;  %v8732_v14 = vld [vmem:[%s11272_s12 + $0x758] sm:$0xff]  ;;  %v8731_v1 = vld [vmem:[%s11272_s12 + $0x750] sm:$0xff]  ;;  %v8730_v34 = vld [vmem:[%s11272_s12 + $0x748] sm:$0xff] }
 0xee5   : > { %v4867_v45 = vmax.f32 %v4743_v35, 0.0  ;;  %v4868_v46 = vmax.f32 %v4757_v40, 0.0  ;;  %6066 = vmatpush.bf16.msra.mxu2 %v8707_v21  ;;  %6080 = vmatpush.bf16.msra.mxu3 %v8715_v32  ;;  %v8748_v31 = vld [vmem:[%s11272_s12 + $0x7d8] sm:$0xff]  ;;  %v4276_v21 = vperm.slane %v11080_v12, 4  ;;  %v4277_v32 = vperm.slane %v11080_v12, 5 }
 0xee7   : > { %v4883_v49 = vpack.c.bf16 %v4867_v45, %v4851_v22  ;;  %v4884_v23 = vpack.c.bf16 %v4868_v46, %v4852_v44  ;;  %6040 = vmatpush.bf16.msrb.mxu0 %v8689_v41  ;;  %6054 = vmatpush.bf16.msrb.mxu1 %v8697_v56  ;;  %v8739_v41 = vld [vmem:[%s11272_s12 + $0x790] sm:$0xff]  ;;  %v8721_v22 = vld [vmem:[%s11272_s12 + $0x700] sm:$0xff]  ;;  %v4278_v45 = vperm.slane %v11080_v12, 6  ;;  %v4279_v46 = vperm.slane %v11080_v12, 7 }
 0xee8   : > { %v8747_v56 = vld [vmem:[%s11272_s12 + $0x7d0] sm:$0xff]  ;;  %v8729_v44 = vld [vmem:[%s11272_s12 + $0x740] sm:$0xff] }
 0xee9   : > { %6067 = vmatpush.bf16.msra.mxu2 %v8706_v47  ;;  %6081 = vmatpush.bf16.msra.mxu3 %v8714_v48  ;;  %v4770_v61 = vpop.f32.mrf.mxu2  ;;  %v4784_v62 = vpop.f32.mrf.mxu3 }
 0xeea   : > { %v4771_v53 = vadd.f32 %v4770_v61, %v4274_v42  ;;  %v4785_v0 = vadd.f32 %v4784_v62, %v4275_v11  ;;  %6041 = vmatmul.bf16.vlgmr.msrb.gmra.mxu0 %v4883_v49  ;;  %6055 = vmatmul.bf16.vlgmr.msrb.gmra.mxu1 %v4884_v23  ;;  %v4796_v57 = vpop.f32.mrf.mxu0  ;;  %v4810_v25 = vpop.f32.mrf.mxu1  ;;  %v8738_v49 = vld [vmem:[%s11272_s12 + $0x788] sm:$0xff] }
 0xeeb   : > { %6089 = vmatpush.bf16.msra.mxu0 %v8728_v43  ;;  %6103 = vmatpush.bf16.msra.mxu1 %v8736_v36  ;;  %v4797_v42 = vadd.f32 %v4796_v57, %v4276_v21  ;;  %v4811_v11 = vadd.f32 %v4810_v25, %v4277_v32  ;;  %v8746_v23 = vld [vmem:[%s11272_s12 + $0x7c8] sm:$0xff] }
 0xeec   : > { %v4869_v5 = vmax.f32 %v4771_v53, 0.0  ;;  %v4870_v6 = vmax.f32 %v4785_v0, 0.0  ;;  %v8745_v53 = vld [vmem:[%s11272_s12 + $0x7c0] sm:$0xff] }
 0xeed   : > { %6068 = vmatpush.bf16.msra.mxu2 %v8705_v8  ;;  %6082 = vmatpush.bf16.msra.mxu3 %v8713_v3  ;;  %v4855_v50 = vmax.f32 %v4797_v42, 0.0  ;;  %v4856_v37 = vmax.f32 %v4811_v11, 0.0  ;;  %v8737_v3 = vld [vmem:[%s11272_s12 + $0x780] sm:$0xff] }
 0xeee   : > { %v4885_v10 = vpack.c.bf16 %v4869_v5, %v4853_v58  ;;  %v4886_v39 = vpack.c.bf16 %v4870_v6, %v4854_v4 }
 0xeef   : > { %6090 = vmatpush.bf16.msra.mxu0 %v8727_v52  ;;  %6104 = vmatpush.bf16.msra.mxu1 %v8735_v38 }
 0xef0   : > { %6069 = vmatmul.bf16.vlgmr.msra.gmra.mxu2 %v4885_v10  ;;  %6083 = vmatmul.bf16.vlgmr.msra.gmra.mxu3 %v4886_v39 }
 0xef1   : > { %6117 = vmatpush.bf16.msrb.mxu2 %v8744_v55  ;;  %6131 = vmatpush.bf16.msrb.mxu3 %v8752_v2  ;;  %v4824_v24 = vpop.f32.mrf.mxu2  ;;  %v4838_v63 = vpop.f32.mrf.mxu3 }
 0xef2   : > { %v4798_v28 = vpop.f32.mrf.mxu0  ;;  %v4812_v29 = vpop.f32.mrf.mxu1  ;;  %v4825_v61 = vadd.f32 %v4824_v24, %v4278_v45  ;;  %v4839_v12 = vadd.f32 %v4838_v63, %v4279_v46 }
 0xef3   : > { %6091 = vmatpush.bf16.msra.mxu0 %v8726_v7  ;;  %6105 = vmatpush.bf16.msra.mxu1 %v8734_v9  ;;  %v4799_v35 = vadd.f32 %v4798_v28, %v4276_v21  ;;  %v4813_v40 = vadd.f32 %v4812_v29, %v4277_v32 }
 0xef4   : > { %v4857_v2 = vmax.f32 %v4825_v61, 0.0  ;;  %v4858_v58 = vmax.f32 %v4839_v12, 0.0 }
 0xef5   : > { %6118 = vmatpush.bf16.msrb.mxu2 %v8743_v59  ;;  %6132 = vmatpush.bf16.msrb.mxu3 %v8751_v13  ;;  %v4871_v47 = vmax.f32 %v4799_v35, 0.0  ;;  %v4872_v48 = vmax.f32 %v4813_v40, 0.0  ;;  %v8907_v13 = vld [vmem:[%s11273_s13 + $0x1] ss:$0 sm:$0xff] }
 0xef7   : > { %6092 = vmatpush.bf16.msra.mxu0 %v8725_v19  ;;  %6106 = vmatpush.bf16.msra.mxu1 %v8733_v15  ;;  %v4887_v62 = vpack.c.bf16 %v4871_v47, %v4855_v50  ;;  %v4888_v8 = vpack.c.bf16 %v4872_v48, %v4856_v37 }
 0xef9   : > { %6119 = vmatpush.bf16.msrb.mxu2 %v8742_v60  ;;  %6133 = vmatpush.bf16.msrb.mxu3 %v8750_v16  ;;  %v4826_v43 = vpop.f32.mrf.mxu2  ;;  %v4840_v36 = vpop.f32.mrf.mxu3 }
 0xefa   : > { %v4827_v52 = vadd.f32 %v4826_v43, %v4278_v45  ;;  %v4841_v38 = vadd.f32 %v4840_v36, %v4279_v46 }
 0xefb   : > { %6093 = vmatpush.bf16.msra.mxu0 %v8724_v17  ;;  %6107 = vmatpush.bf16.msra.mxu1 %v8732_v14 }
 0xefc   : > { %v4873_v0 = vmax.f32 %v4827_v52, 0.0  ;;  %v4874_v55 = vmax.f32 %v4841_v38, 0.0 }
 0xefd   : > { %6120 = vmatpush.bf16.msrb.mxu2 %v8741_v54  ;;  %6134 = vmatpush.bf16.msrb.mxu3 %v8749_v26 }
 0xefe   : > { %v4889_v4 = vpack.c.bf16 %v4873_v0, %v4857_v2  ;;  %v4890_v5 = vpack.c.bf16 %v4874_v55, %v4858_v58 }
 0xeff   : > { %6094 = vmatpush.bf16.msra.mxu0 %v8723_v27  ;;  %6108 = vmatpush.bf16.msra.mxu1 %v8731_v1 }
 0xf01   : > { %6121 = vmatpush.bf16.msrb.mxu2 %v8740_v30  ;;  %6135 = vmatpush.bf16.msrb.mxu3 %v8748_v31 }
 0xf03   : > { %6095 = vmatpush.bf16.msra.mxu0 %v8722_v33  ;;  %6109 = vmatpush.bf16.msra.mxu1 %v8730_v34 }
 0xf05   : > { %6122 = vmatpush.bf16.msrb.mxu2 %v8739_v41  ;;  %6136 = vmatpush.bf16.msrb.mxu3 %v8747_v56 }
 0xf07   : > { %6096 = vmatpush.bf16.msra.mxu0 %v8721_v22  ;;  %6110 = vmatpush.bf16.msra.mxu1 %v8729_v44 }
 0xf09   : > { %6123 = vmatpush.bf16.msrb.mxu2 %v8738_v49  ;;  %6137 = vmatpush.bf16.msrb.mxu3 %v8746_v23 }
 0xf0a   : > { %6097 = vmatmul.bf16.vlgmr.msra.gmra.mxu0 %v4887_v62  ;;  %6111 = vmatmul.bf16.vlgmr.msra.gmra.mxu1 %v4888_v8 }
 0xf0d   : > { %6124 = vmatpush.bf16.msrb.mxu2 %v8737_v3  ;;  %6138 = vmatpush.bf16.msrb.mxu3 %v8745_v53 }
 0xf10   : > { %6125 = vmatmul.bf16.vlgmr.msrb.gmra.mxu2 %v4889_v4  ;;  %6139 = vmatmul.bf16.vlgmr.msrb.gmra.mxu3 %v4890_v5 }
 0xf46   : > { %v5930_v6 = vpop.f32.mrf.mxu0  ;;  %v5944_v7 = vpop.f32.mrf.mxu1 }
 0xf47   : > { %v5931_v15 = vadd.f32 %v8907_v13, %v5930_v6 }
 0xf49   : > { %v5945_v16 = vadd.f32 %v5944_v7, %v5931_v15 }
 0xf4e   : > { %v5932_v9 = vpop.f32.mrf.mxu0  ;;  %v5946_v59 = vpop.f32.mrf.mxu1 }
 0xf4f   : > { %v5933_v54 = vadd.f32 %v8907_v13, %v5932_v9 }
 0xf51   : > { %v5947_v27 = vadd.f32 %v5946_v59, %v5933_v54 }
 0xf53   : > { %v5958_v10 = vpop.f32.mrf.mxu2  ;;  %v5972_v39 = vpop.f32.mrf.mxu3 }
 0xf54   : > { %v5959_v17 = vadd.f32 %v5958_v10, %v5945_v16 }
 0xf56   : > { %v5973_v26 = vadd.f32 %v5972_v39, %v5959_v17 }
 0xf57   : > { %v5986_v57 = vpop.f32.mrf.mxu0  ;;  %v6000_v60 = vpop.f32.mrf.mxu1 }
 0xf58   : > { %v5987_v28 = vadd.f32 %v5986_v57, %v5973_v26 }
 0xf5a   : > { %v6001_v32 = vadd.f32 %v6000_v60, %v5987_v28 }
 0xf5b   : > { %v5960_v25 = vpop.f32.mrf.mxu2  ;;  %v5974_v19 = vpop.f32.mrf.mxu3 }
 0xf5c   : > { %v5961_v29 = vadd.f32 %v5960_v25, %v5947_v27 }
 0xf5e   : > { %v5975_v33 = vadd.f32 %v5974_v19, %v5961_v29 }
 0xf5f   : > { %v5988_v14 = vpop.f32.mrf.mxu0  ;;  %v6002_v1 = vpop.f32.mrf.mxu1 }
 0xf60   : > { %v5989_v35 = vadd.f32 %v5988_v14, %v5975_v33 }
 0xf62   : > { %v6003_v56 = vadd.f32 %v6002_v1, %v5989_v35 }
 0xf63   : > { %v6014_v24 = vpop.f32.mrf.mxu2  ;;  %v6028_v63 = vpop.f32.mrf.mxu3 }
 0xf64   : > { %v6015_v34 = vadd.f32 %v6014_v24, %v6001_v32 }
 0xf66   : > { %v6029_v41 = vadd.f32 %v6028_v63, %v6015_v34 }
 0xf67   : > { %v6042_v30 = vpop.f32.mrf.mxu0  ;;  %v6056_v40 = vpop.f32.mrf.mxu1 }
 0xf68   : > { %v6043_v36 = vadd.f32 %v6042_v30, %v6029_v41 }
 0xf6a   : > { %v6057_v44 = vadd.f32 %v6056_v40, %v6043_v36  ;;  %v8908_v40 = vld [vmem:[%s11274_s14 + $0x1] ss:$0 sm:$0xff]  ;;  %v8910_v36 = vld [vmem:[%s11276_s16] ss:$0 sm:$0xff] }
 0xf6b   : > { %v6016_v31 = vpop.f32.mrf.mxu2  ;;  %v6030_v21 = vpop.f32.mrf.mxu3 }
 0xf6c   : > { %v6017_v22 = vadd.f32 %v6016_v31, %v6003_v56 }
 0xf6e   : > { %v6031_v45 = vadd.f32 %v6030_v21, %v6017_v22 }
 0xf6f   : > { %v6044_v42 = vpop.f32.mrf.mxu0  ;;  %v6058_v46 = vpop.f32.mrf.mxu1 }
 0xf70   : > { %v6045_v49 = vadd.f32 %v6044_v42, %v6031_v45  ;;  %v8909_v42 = vld [vmem:[%s11275_s15 + $0x1] ss:$0 sm:$0xff] }
 0xf72   : > { %v6059_v52 = vadd.f32 %v6058_v46, %v6045_v49 }
 0xf73   : > { %v6070_v11 = vpop.f32.mrf.mxu2  ;;  %v6084_v43 = vpop.f32.mrf.mxu3 }
 0xf74   : > { %v6071_v47 = vadd.f32 %v6070_v11, %v6057_v44 }
 0xf76   : > { %v6085_v37 = vadd.f32 %v6084_v43, %v6071_v47 }
 0xf7b   : > { %v6072_v23 = vpop.f32.mrf.mxu2  ;;  %v6086_v50 = vpop.f32.mrf.mxu3 }
 0xf7c   : > { %v6073_v12 = vadd.f32 %v6072_v23, %v6059_v52 }
 0xf7e   : > { %v6087_v0 = vadd.f32 %v6086_v50, %v6073_v12  ;;  %v8911_v50 = vld [vmem:[%s11276_s16] ss:$0 sm:$0xff] }
 0xf87   : > { %v6098_v48 = vpop.f32.mrf.mxu0  ;;  %v6112_v61 = vpop.f32.mrf.mxu1 }
 0xf88   : > { %v6099_v38 = vadd.f32 %v6098_v48, %v6085_v37 }
 0xf8a   : > { %v6113_v62 = vadd.f32 %v6112_v61, %v6099_v38  ;;  %v8912_v61 = vld [vmem:[#allocation2] ss:$0 sm:$0xff] }
 0xf8f   : > { %v6100_v8 = vpop.f32.mrf.mxu0  ;;  %v6114_v5 = vpop.f32.mrf.mxu1 }
 0xf90   : > { %v6101_v2 = vadd.f32 %v6100_v8, %v6087_v0  ;;  %v8913_v8 = vld [vmem:[#allocation2] ss:$0 sm:$0xff] }
 0xf92   : > { %v6115_v6 = vadd.f32 %v6114_v5, %v6101_v2 }
 0xf93   : > { %v6126_v3 = vpop.f32.mrf.mxu2  ;;  %v6140_v53 = vpop.f32.mrf.mxu3 }
 0xf94   : > { %v6127_v55 = vadd.f32 %v6126_v3, %v6113_v62 }
 0xf96   : > { %v6141_v58 = vadd.f32 %v6140_v53, %v6127_v55 }
 0xf98   : > { %v6145_v4 = vadd.f32 %v6141_v58, %v10601_v18 }
 0xf9a   : > { %v6151_v7 = vsel %vm663_vm0, %v6145_v4, 0.0 }
 0xf9b   : > { %v6128_v9 = vpop.f32.mrf.mxu2  ;;  %6152 = vadd.xlane.f32.xlu0 %v6151_v7  ;;  %v6142_v39 = vpop.f32.mrf.mxu3 }
 0xf9c   : > { %v6129_v10 = vadd.f32 %v6128_v9, %v6115_v6 }
 0xf9e   : > { %v6143_v59 = vadd.f32 %v6142_v39, %v6129_v10 }
 0xfa0   : > { %v6146_v13 = vadd.f32 %v6143_v59, %v10603_v20 }
 0xfa2   : > { %v6154_v57 = vsel %vm663_vm0, %v6146_v13, 0.0 }
 0xfa3   : > { %6155 = vadd.xlane.f32.xlu1 %v6154_v57 }
0x100e   : > { %v6153_v25 = vpop.xlane.xlu0 %6152 }
0x100f   : > { %v6157_v19 = vmul.f32 %v6153_v25, %v9304_v51 }
0x1011   : > { %v6159_v15 = vsub.f32 %v6145_v4, %v6157_v19 }
0x1013   : > { %v6161_v60 = vmul.f32 %v6159_v15, %v6159_v15 }
0x1015   : > { %v6163_v18 = vsel %vm663_vm0, %v6161_v60, 0.0 }
0x1016   : > { %v6156_v16 = vpop.xlane.xlu1 %6155  ;;  %6164 = vadd.xlane.f32.xlu2 %v6163_v18 }
0x1017   : > { %v6158_v17 = vmul.f32 %v6156_v16, %v9304_v51 }
0x1019   : > { %v6160_v14 = vsub.f32 %v6146_v13, %v6158_v17 }
0x101b   : > { %v6162_v24 = vmul.f32 %v6160_v14, %v6160_v14 }
0x101d   : > { %v6166_v63 = vsel %vm663_vm0, %v6162_v24, 0.0 }
0x101e   : > { %6167 = vadd.xlane.f32.xlu0 %v6166_v63 }
0x1089   : > { %v6165_v20 = vpop.xlane.xlu2 %6164 }
0x108a   : > { %v6169_v54 = vmul.f32 %v6165_v20, %v9304_v51 }
0x108c   : > { %v6171_v26 = vadd.f32 1e-05, %v6169_v54 }
0x108e   : > { %8992 = vrsqrt.f32 %v6171_v26  ;;  %vm6179_vm0 = vweird.f32 %v6171_v26 }
0x1091   : > { %v6168_v27 = vpop.xlane.xlu0 %6167 }
0x1092   : > { %v6170_v1 = vmul.f32 %v6168_v27, %v9304_v51 }
0x1094   : > { %v8993_v28 = vpop.eup %8992  ;;  %v6172_v29 = vadd.f32 1e-05, %v6170_v1 }
0x1095   : > { %v6174_v30 = vmul.f32 %v8993_v28, %v6171_v26  ;;  %vm6180_vm10 = vweird.f32 %v8993_v28 }
0x1096   : > { %8994 = vrsqrt.f32 %v6172_v29  ;;  %vm6181_vm11 = vmor %vm6179_vm0, %vm6180_vm10  ;;  %vm6189_vm13 = vweird.f32 %v6172_v29 }
0x1097   : > { %v6175_v31 = vmul.f32 %v8993_v28, %v6174_v30 }
0x1099   : > { %v6176_v21 = vmul.f32 0.5, %v6175_v31 }
0x109b   : > { %v6177_v32 = vsub.f32 1.5, %v6176_v21 }
0x109c   : > { %v8995_v33 = vpop.eup %8994 }
0x109d   : > { %v6178_v34 = vmul.f32 %v8993_v28, %v6177_v32  ;;  %v6184_v35 = vmul.f32 %v8995_v33, %v6172_v29  ;;  %vm6190_vm12 = vweird.f32 %v8995_v33 }
0x109e   : > { %vm6191_vm15 = vmor %vm6189_vm13, %vm6190_vm12 }
0x109f   : > { %v6182_v41 = vsel %vm6181_vm11, %v8993_v28, %v6178_v34  ;;  %v6185_v56 = vmul.f32 %v8995_v33, %v6184_v35 }
0x10a0   : > { %v6193_v51 = vmul.f32 %v6182_v41, %v6159_v15 }
0x10a1   : > { %v6186_v11 = vmul.f32 0.5, %v6185_v56 }
0x10a2   : > { %v6198_v43 = vmul.f32 %v8908_v40, %v6193_v51 }
0x10a3   : > { %v6187_v22 = vsub.f32 1.5, %v6186_v11 }
0x10a4   : > { %v6203_v44 = vadd.f32 %v8909_v42, %v6198_v43 }
0x10a5   : > { %v6188_v45 = vmul.f32 %v8995_v33, %v6187_v22 }
0x10a6   : > { %v6209_v46 = vmul.f32 %v8910_v36, %v6203_v44 }
0x10a7   : > { %v6192_v47 = vsel %vm6191_vm15, %v8995_v33, %v6188_v45 }
0x10a8   : > { %v6211_v48 = vsel %vm6210_vm14, %v6209_v46, 0.0  ;;  %v6194_v49 = vmul.f32 %v6192_v47, %v6160_v14 }
0x10a9   : > { %6212 = vadd.xlane.f32.xlu1 %v6211_v48 }
0x10aa   : > { %v6199_v23 = vmul.f32 %v8908_v40, %v6194_v49 }
0x10ac   : > { %v6204_v37 = vadd.f32 %v8909_v42, %v6199_v23 }
0x10ae   : > { %v6225_v52 = vmul.f32 %v8911_v50, %v6204_v37 }
0x10b0   : > { %v6226_v38 = vsel %vm6210_vm14, %v6225_v52, 0.0 }
0x10b1   : > { %6227 = vadd.xlane.f32.xlu2 %v6226_v38 }
0x111c   : > { %v6213_v12 = vpop.xlane.xlu1 %6212 }
0x111d   : > { %v6218_v62 = vadd.f32 %v8912_v61, %v6213_v12 }
0x111f   : > { %6220 = vst.msk [vmem:[%s577_s30 - $0x7] sm:$0x80] %vm6219_vm6, %v6218_v62 }
0x1124   : > { %v6228_v3 = vpop.xlane.xlu2 %6227 }
0x1125   : > { %v6233_v53 = vadd.f32 %v8913_v8, %v6228_v3 }
0x1127   : > { %8342 = vst.msk [vmem:[%s577_s30 - $0x6] sm:$0x80] %vm6219_vm6, %v6233_v53 }
0x1128 PF: > { %s30_s29 = sadd.s32 1, %s9002_s29  }
0x1129   : > { %p27_p4 = scmp.ge.s32.totalorder %s30_s29, 4  }
0x112b   :  { %29 = sbr.rel (!%p27_p4) target bundleno = 4 (0x4), region = 136 }

</bundles_post_ra>
